<compile_context>
chip_gen: v7x
topology: tpu7x:2x2x1
jax: 0.10.0
libtpu: 0.0.40
codegen_flags: <defaults>
</compile_context>

<pallas_src>
import functools
import math

import jax
import jax.numpy as jnp
from jax.experimental import pallas as pl
from jax.experimental.pallas import tpu as pltpu


CPAD = 128                      # lane-dense channel padding (TPU lane width)
VMEM_LIMIT = 32 * 1024 * 1024   # fits the scoped default on v5e / v6e / v7x


# ----------------------------- Pallas kernels ------------------------------

def _conv_lrelu_kernel(a_ref, w_ref, b_ref, o_ref):
    """Fused (row-tile of) im2col-matmul + bias + LeakyReLU(0.2)."""
    y = jnp.dot(a_ref[...], w_ref[...], preferred_element_type=jnp.float32)
    y = y + b_ref[...]
    o_ref[...] = jnp.where(y > 0, y, 0.2 * y)


def _conv_bn_lrelu_kernel(a_ref, w_ref, b_ref, g_ref, beta_ref, o_ref, acc_ref):
    """Fused conv (K-chunk accumulated) + bias + training-mode BN + LeakyReLU.

    Grid axis 0 runs over K chunks ("arbitrary"); the full row range stays in
    one block so the BatchNorm statistics are the exact global batch stats.
    """
    k = pl.program_id(0)

    @pl.when(k == 0)
    def _():
        acc_ref[...] = jnp.zeros_like(acc_ref)

    acc_ref[...] += jnp.dot(a_ref[...], w_ref[...],
                            preferred_element_type=jnp.float32)

    @pl.when(k == pl.num_programs(0) - 1)
    def _():
        x = acc_ref[...] + b_ref[...]
        mean = jnp.mean(x, axis=0, keepdims=True)
        var = jnp.mean(jnp.square(x - mean), axis=0, keepdims=True)
        y = (x - mean) * jax.lax.rsqrt(var + 1e-5) * g_ref[...] + beta_ref[...]
        o_ref[...] = jnp.where(y > 0, y, 0.2 * y)


def _tail_kernel(out4_ref, emb_ref, wfc_ref, bfc_ref, w5i_ref, w5e_ref,
                 b5_ref, g5_ref, beta5_ref, w6_ref, b6_ref, o_ref):
    """Whole 4x4 tail in one kernel:
       fc1 -> conv5 (split img/emb halves, no concat) -> BN5 -> LeakyReLU
       -> conv6 (4x4 stride 4 == per-sample weighted sum) -> sigmoid."""
    rows = out4_ref.shape[0]
    B = emb_ref.shape[0]
    md = rows // B                      # 16 spatial positions (4x4)

    # EmbedComp.fc1 (bf16 MXU, f32 accumulate)
    em = jnp.dot(emb_ref[...].astype(jnp.bfloat16), wfc_ref[...],
                 preferred_element_type=jnp.float32) + bfc_ref[...]

    # conv5 (1x1): concat([out4, repeat(em)], C) @ w5  ==  out4@w5_img + em@w5_emb
    s_img = jnp.dot(out4_ref[...].astype(jnp.bfloat16), w5i_ref[...],
                    preferred_element_type=jnp.float32)
    s_emb = jnp.dot(em.astype(jnp.bfloat16), w5e_ref[...],
                    preferred_element_type=jnp.float32)
    s = (s_img.reshape(B, md, CPAD) + s_emb[:, None, :]).reshape(rows, CPAD)
    s = s + b5_ref[...]

    # BN5 (training-mode batch stats, eps=1e-5) + LeakyReLU(0.2)
    mean = jnp.mean(s, axis=0, keepdims=True)
    var = jnp.mean(jnp.square(s - mean), axis=0, keepdims=True)
    y = (s - mean) * jax.lax.rsqrt(var + 1e-5) * g5_ref[...] + beta5_ref[...]
    y = jnp.where(y > 0, y, 0.2 * y)

    # conv6: 4x4 kernel, stride 4 over the 4x4 map -> one scalar per sample.
    y3 = y.reshape(B, md, CPAD)
    t = jnp.sum(y3 * w6_ref[...], axis=1)        # (B, CPAD)  sublane reduce
    v = jnp.sum(t, axis=1, keepdims=True)        # (B, 1)     lane reduce
    out = jax.nn.sigmoid(v + b6_ref[0])          # b6 from SMEM scalar
    o_ref[...] = jnp.broadcast_to(out, o_ref.shape)


# ------------------------------ call wrappers -------------------------------

def conv_lrelu(patches, w, b):
    """conv1: row-tiled, 'parallel' grid (megacore-friendly), fused epilogue."""
    rows, K = patches.shape
    tile = 512 if rows % 512 == 0 else rows
    return pl.pallas_call(
        _conv_lrelu_kernel,
        grid=(rows // tile,),
        in_specs=[
            pl.BlockSpec((tile, K), lambda i: (i, 0)),
            pl.BlockSpec((K, CPAD), lambda i: (0, 0)),
            pl.BlockSpec((1, CPAD), lambda i: (0, 0)),
        ],
        out_specs=pl.BlockSpec((tile, CPAD), lambda i: (i, 0)),
        out_shape=jax.ShapeDtypeStruct((rows, CPAD), jnp.float32),
        compiler_params=pltpu.CompilerParams(
            dimension_semantics=("parallel",),
            vmem_limit_bytes=VMEM_LIMIT),
    )(patches, w, b)


def conv_bn_lrelu(patches, w, b, g, beta):
    """conv2..4: K-chunked 'arbitrary' reduction grid + fused bias/BN/LeakyReLU."""
    rows, K = patches.shape
    tk = 128 if K % 128 == 0 else K
    return pl.pallas_call(
        _conv_bn_lrelu_kernel,
        grid=(K // tk,),
        in_specs=[
            pl.BlockSpec((rows, tk), lambda k: (0, k)),
            pl.BlockSpec((tk, CPAD), lambda k: (k, 0)),
            pl.BlockSpec((1, CPAD), lambda k: (0, 0)),
            pl.BlockSpec((1, CPAD), lambda k: (0, 0)),
            pl.BlockSpec((1, CPAD), lambda k: (0, 0)),
        ],
        out_specs=pl.BlockSpec((rows, CPAD), lambda k: (0, 0)),
        out_shape=jax.ShapeDtypeStruct((rows, CPAD), jnp.float32),
        scratch_shapes=[pltpu.VMEM((rows, CPAD), jnp.float32)],
        compiler_params=pltpu.CompilerParams(
            dimension_semantics=("arbitrary",),
            vmem_limit_bytes=VMEM_LIMIT),
    )(patches, w, b, g, beta)


def d1_tail(out4, embed, p):
    """One fused kernel for the whole <100 KB tail."""
    B = embed.shape[0]
    vmem = pl.BlockSpec(memory_space=pltpu.MemorySpace.VMEM)
    smem = pl.BlockSpec(memory_space=pltpu.MemorySpace.SMEM)
    return pl.pallas_call(
        _tail_kernel,
        in_specs=[vmem] * 10 + [smem],
        out_specs=vmem,
        out_shape=jax.ShapeDtypeStruct((B, CPAD), jnp.float32),
        compiler_params=pltpu.CompilerParams(vmem_limit_bytes=VMEM_LIMIT),
    )(out4, embed, p['wfc'], p['bfc'], p['w5i'], p['w5e'], p['b5'],
      p['g5'], p['beta5'], p['w6'], p['b6'])


# ------------------------------ plain-JAX glue ------------------------------

def _im2col(x_nhwc, kh, kw, stride, pad):
    """x: [B,H,W,C] -> patches [B*OH*OW, KH*KW*C] (flatten order kh, kw, c)."""
    xp = jnp.pad(x_nhwc, ((0, 0), (pad, pad), (pad, pad), (0, 0)))
    B, H, W, C = xp.shape
    oh = (H - kh) // stride + 1
    ow = (W - kw) // stride + 1
    taps = [xp[:, i:i + stride * oh:stride, j:j + stride * ow:stride, :]
            for i in range(kh) for j in range(kw)]
    patches = jnp.concatenate(taps, axis=-1)          # (B, oh, ow, kh*kw*C)
    return patches.reshape(B * oh * ow, kh * kw * C), oh, ow


# ------------------------------- parameters ---------------------------------

def _uniform(key, shape, scale):
    return jax.random.uniform(key, shape, jnp.float32, -scale, scale)


def _pad_cols(x, n):
    return jnp.pad(x, ((0, 0), (0, n - x.shape[1])))


def _pad_rows_cols(x, r, c):
    return jnp.pad(x, ((0, r - x.shape[0]), (0, c - x.shape[1])))


def _init_conv_raw(key, kh, kw, cin, cout):
    kw_key, kb_key = jax.random.split(key)
    scale = 1.0 / math.sqrt(kh * kw * cin)
    w = _uniform(kw_key, (kh, kw, cin, cout), scale).reshape(kh * kw * cin, cout)
    b = _uniform(kb_key, (1, cout), scale)
    return w, b


def _init_conv(key, kh, kw, cin, cout):
    w, b = _init_conv_raw(key, kh, kw, cin, cout)
    return _pad_cols(w, CPAD).astype(jnp.bfloat16), _pad_cols(b, CPAD)


def _init_linear(key, fin, fout):
    kw_key, kb_key = jax.random.split(key)
    scale = 1.0 / math.sqrt(fin)
    w = _uniform(kw_key, (fin, fout), scale)
    b = _uniform(kb_key, (1, fout), scale)
    return _pad_cols(w, CPAD).astype(jnp.bfloat16), _pad_cols(b, CPAD)


def init_d1_params(key, dim, emdim):
    ks = jax.random.split(key, 7)
    p = {}
    p['w1'], p['b1'] = _init_conv(ks[0], 4, 4, 3, dim // 8)
    p['w2'], p['b2'] = _init_conv(ks[1], 4, 4, dim // 8, dim // 4)
    p['w3'], p['b3'] = _init_conv(ks[2], 4, 4, dim // 4, dim // 2)
    p['w4'], p['b4'] = _init_conv(ks[3], 4, 4, dim // 2, dim)
    p['wfc'], p['bfc'] = _init_linear(ks[4], 1024, emdim)

    # conv5 (1x1, dim+emdim -> dim): split into image / embedding halves so
    # the kernel never materializes the channel concat or the 4x4 repeat.
    w5, b5 = _init_conv_raw(ks[5], 1, 1, dim + emdim, dim)
    p['w5i'] = _pad_rows_cols(w5[:dim], CPAD, CPAD).astype(jnp.bfloat16)
    p['w5e'] = _pad_rows_cols(w5[dim:], CPAD, CPAD).astype(jnp.bfloat16)
    p['b5'] = _pad_cols(b5, CPAD)

    # conv6 (4x4, stride 4, dim -> 1): stored as a (16, C) weighted-sum weight.
    w6, b6 = _init_conv_raw(ks[6], 4, 4, dim, 1)
    p['w6'] = _pad_cols(w6.reshape(4 * 4, dim), CPAD)       # (16, CPAD) f32
    p['b6'] = b6.reshape(1)                                  # SMEM scalar f32

    # BatchNorm affine params (PyTorch default: weight=1, bias=0).  Padded
    # channels get gamma=0 so they stay exactly zero through BN + LeakyReLU.
    for name, c in (('2', dim // 4), ('3', dim // 2), ('4', dim), ('5', dim)):
        p['g' + name] = jnp.zeros((1, CPAD), jnp.float32).at[:, :c].set(1.0)
        p['beta' + name] = jnp.zeros((1, CPAD), jnp.float32)
    return p


# --------------------------------- forward ----------------------------------

def d1_forward(params, img_nchw, embed, *, dim, emdim):
    del emdim  # carried by the padded parameter shapes
    B = img_nchw.shape[0]
    x = jnp.transpose(img_nchw, (0, 2, 3, 1)).astype(jnp.float32)   # NHWC

    # conv1 + LeakyReLU (row-tiled "parallel" grid, fused epilogue)
    patches, oh, ow = _im2col(x, 4, 4, 2, 1)
    out = conv_lrelu(patches.astype(jnp.bfloat16), params['w1'], params['b1'])
    x = out.reshape(B, oh, ow, CPAD)[..., :dim // 8]

    # conv2..conv4: fused conv + bias + BN(train) + LeakyReLU
    for idx, cout in (('2', dim // 4), ('3', dim // 2), ('4', dim)):
        patches, oh, ow = _im2col(x, 4, 4, 2, 1)
        out = conv_bn_lrelu(patches.astype(jnp.bfloat16),
                            params['w' + idx], params['b' + idx],
                            params['g' + idx], params['beta' + idx])
        x = out.reshape(B, oh, ow, CPAD)[..., :cout]

    # fused tail: fc1 + conv5 (img/emb split) + BN5 + LeakyReLU + conv6 + sigmoid
    y = d1_tail(out, embed.astype(jnp.float32), params)     # (B, CPAD)
    return y[:, 0]


# ----------------------------------- main ------------------------------------

if __name__ == "__main__":
    B, IMSIZE, DIM, EMDIM = 2, 64, 32, 16   # imsize must be 64 (4 stride-2 convs -> 4x4)
    key = jax.random.PRNGKey(0)
    k_img, k_emb, k_par = jax.random.split(key, 3)

    img = jax.random.normal(k_img, (B, 3, IMSIZE, IMSIZE), jnp.float32)  # NCHW like PyTorch
    embed = jax.random.normal(k_emb, (B, 1024), jnp.float32)
    params = init_d1_params(k_par, DIM, EMDIM)

    fwd = jax.jit(functools.partial(d1_forward, dim=DIM, emdim=EMDIM))
    out = jax.block_until_ready(fwd(params, img, embed))

    assert out.shape == (B,), out.shape
    assert bool(jnp.all(jnp.isfinite(out)))
    assert bool(jnp.all((out >= 0.0) & (out <= 1.0)))
    print("KERNEL_OK")
</pallas_src>

<mosaic_0001>
module attributes {stable_mosaic.version = 11 : i64} {
  func.func @_conv_lrelu_kernel(%arg0: i32, %arg1: memref<512x48xbf16, #tpu.memory_space<vmem>>, %arg2: memref<48x128xbf16, #tpu.memory_space<vmem>>, %arg3: memref<1x128xf32, #tpu.memory_space<vmem>>, %arg4: memref<512x128xf32, #tpu.memory_space<vmem>>) attributes {dimension_semantics = [#tpu.dimension_semantics<parallel>], iteration_bounds = array<i64: 4>, scalar_prefetch = 0 : i64, scratch_operands = 0 : i64, tpu.core_type = #tpu.core_type<tc>, window_params = [{transform_indices = @transform_0, window_bounds = array<i64: 512, 48>}, {pipeline_mode = #tpu.pipeline_mode<synchronous>, transform_indices = @transform_1, window_bounds = array<i64: 48, 128>}, {pipeline_mode = #tpu.pipeline_mode<synchronous>, transform_indices = @transform_2, window_bounds = array<i64: 1, 128>}, {transform_indices = @transform_3, window_bounds = array<i64: 512, 128>}]} {
    %c0 = arith.constant 0 : index
    %c0_0 = arith.constant 0 : index
    %0 = vector.load %arg1[%c0, %c0_0] : memref<512x48xbf16, #tpu.memory_space<vmem>>, vector<512x48xbf16>
    %c0_1 = arith.constant 0 : index
    %c0_2 = arith.constant 0 : index
    %1 = vector.load %arg2[%c0_1, %c0_2] : memref<48x128xbf16, #tpu.memory_space<vmem>>, vector<48x128xbf16>
    %cst = arith.constant dense<0.000000e+00> : vector<512x128xf32>
    %2 = tpu.matmul %0, %1, %cst {dimension_numbers = #tpu.dot_dimension_numbers<[1], [0], [0], [1], [0, 0, 1, 1], [], []>} : vector<512x48xbf16>, vector<48x128xbf16>, vector<512x128xf32> -> vector<512x128xf32>
    %c0_3 = arith.constant 0 : index
    %c0_4 = arith.constant 0 : index
    %3 = vector.load %arg3[%c0_3, %c0_4] : memref<1x128xf32, #tpu.memory_space<vmem>>, vector<1x128xf32>
    %4 = vector.broadcast %3 : vector<1x128xf32> to vector<512x128xf32>
    %5 = arith.addf %2, %4 : vector<512x128xf32>
    %cst_5 = arith.constant 0.000000e+00 : f32
    %6 = vector.broadcast %cst_5 : f32 to vector<512x128xf32>
    %7 = arith.cmpf ogt, %5, %6 : vector<512x128xf32>
    %cst_6 = arith.constant 2.000000e-01 : f32
    %8 = vector.broadcast %cst_6 : f32 to vector<512x128xf32>
    %9 = arith.mulf %8, %5 : vector<512x128xf32>
    %10 = arith.select %7, %5, %9 : vector<512x128xi1>, vector<512x128xf32>
    %c0_7 = arith.constant 0 : index
    %c0_8 = arith.constant 0 : index
    %11 = vector.load %arg4[%c0_7, %c0_8] : memref<512x128xf32, #tpu.memory_space<vmem>>, vector<512x128xf32>
    tpu.vector_store %arg4[%c0_7, %c0_8], %10 {strides = array<i32>} : memref<512x128xf32, #tpu.memory_space<vmem>>, vector<512x128xf32>,
    return
  }
  func.func @transform_0(%arg0: i32) -> (i32, i32) {
    %c0_i32 = arith.constant 0 : i32
    %c0_i32_0 = arith.constant 0 : i32
    return %arg0, %c0_i32 : i32, i32
  }
  func.func @transform_1(%arg0: i32) -> (i32, i32) {
    %c0_i32 = arith.constant 0 : i32
    %c0_i32_0 = arith.constant 0 : i32
    %c0_i32_1 = arith.constant 0 : i32
    return %c0_i32, %c0_i32_0 : i32, i32
  }
  func.func @transform_2(%arg0: i32) -> (i32, i32) {
    %c0_i32 = arith.constant 0 : i32
    %c0_i32_0 = arith.constant 0 : i32
    %c0_i32_1 = arith.constant 0 : i32
    return %c0_i32, %c0_i32_0 : i32, i32
  }
  func.func @transform_3(%arg0: i32) -> (i32, i32) {
    %c0_i32 = arith.constant 0 : i32
    %c0_i32_0 = arith.constant 0 : i32
    return %arg0, %c0_i32 : i32, i32
  }
}

module attributes {stable_mosaic.version = 11 : i64} {
  func.func @_conv_bn_lrelu_kernel(%arg0: i32, %arg1: memref<512x64xbf16, #tpu.memory_space<vmem>>, %arg2: memref<64x128xbf16, #tpu.memory_space<vmem>>, %arg3: memref<1x128xf32, #tpu.memory_space<vmem>>, %arg4: memref<1x128xf32, #tpu.memory_space<vmem>>, %arg5: memref<1x128xf32, #tpu.memory_space<vmem>>, %arg6: memref<512x128xf32, #tpu.memory_space<vmem>>, %arg7: memref<512x128xf32, #tpu.memory_space<vmem>>) attributes {dimension_semantics = [#tpu.dimension_semantics<arbitrary>], iteration_bounds = array<i64: 1>, scalar_prefetch = 0 : i64, scratch_operands = 1 : i64, tpu.core_type = #tpu.core_type<tc>, window_params = [{transform_indices = @transform_0, window_bounds = array<i64: 512, 64>}, {transform_indices = @transform_1, window_bounds = array<i64: 64, 128>}, {pipeline_mode = #tpu.pipeline_mode<synchronous>, transform_indices = @transform_2, window_bounds = array<i64: 1, 128>}, {pipeline_mode = #tpu.pipeline_mode<synchronous>, transform_indices = @transform_3, window_bounds = array<i64: 1, 128>}, {pipeline_mode = #tpu.pipeline_mode<synchronous>, transform_indices = @transform_4, window_bounds = array<i64: 1, 128>}, {pipeline_mode = #tpu.pipeline_mode<synchronous>, transform_indices = @transform_5, window_bounds = array<i64: 512, 128>}]} {
    %c0_i32 = arith.constant 0 : i32
    %0 = arith.cmpi eq, %arg0, %c0_i32 : i32
    %1 = arith.extui %0 : i1 to i32
    %c0_i32_0 = arith.constant 0 : i32
    %2 = arith.cmpi ne, %1, %c0_i32_0 : i32
    scf.if %2 {
      %cst_10 = arith.constant 0.000000e+00 : f32
      %12 = vector.broadcast %cst_10 : f32 to vector<512x128xf32>
      %c0_11 = arith.constant 0 : index
      %c0_12 = arith.constant 0 : index
      %13 = vector.load %arg7[%c0_11, %c0_12] : memref<512x128xf32, #tpu.memory_space<vmem>>, vector<512x128xf32>
      tpu.vector_store %arg7[%c0_11, %c0_12], %12 {strides = array<i32>} : memref<512x128xf32, #tpu.memory_space<vmem>>, vector<512x128xf32>,
    } else {
    }
    %c0 = arith.constant 0 : index
    %c0_1 = arith.constant 0 : index
    %3 = vector.load %arg7[%c0, %c0_1] : memref<512x128xf32, #tpu.memory_space<vmem>>, vector<512x128xf32>
    %c0_2 = arith.constant 0 : index
    %c0_3 = arith.constant 0 : index
    %4 = vector.load %arg1[%c0_2, %c0_3] : memref<512x64xbf16, #tpu.memory_space<vmem>>, vector<512x64xbf16>
    %c0_4 = arith.constant 0 : index
    %c0_5 = arith.constant 0 : index
    %5 = vector.load %arg2[%c0_4, %c0_5] : memref<64x128xbf16, #tpu.memory_space<vmem>>, vector<64x128xbf16>
    %cst = arith.constant dense<0.000000e+00> : vector<512x128xf32>
    %6 = tpu.matmul %4, %5, %cst {dimension_numbers = #tpu.dot_dimension_numbers<[1], [0], [0], [1], [0, 0, 1, 1], [], []>} : vector<512x64xbf16>, vector<64x128xbf16>, vector<512x128xf32> -> vector<512x128xf32>
    %7 = arith.addf %3, %6 : vector<512x128xf32>
    %c0_6 = arith.constant 0 : index
    %c0_7 = arith.constant 0 : index
    %8 = vector.load %arg7[%c0_6, %c0_7] : memref<512x128xf32, #tpu.memory_space<vmem>>, vector<512x128xf32>
    tpu.vector_store %arg7[%c0_6, %c0_7], %7 {strides = array<i32>} : memref<512x128xf32, #tpu.memory_space<vmem>>, vector<512x128xf32>,
    %c0_i32_8 = arith.constant 0 : i32
    %9 = arith.cmpi eq, %arg0, %c0_i32_8 : i32
    %10 = arith.extui %9 : i1 to i32
    %c0_i32_9 = arith.constant 0 : i32
    %11 = arith.cmpi ne, %10, %c0_i32_9 : i32
    scf.if %11 {
      %c0_10 = arith.constant 0 : index
      %c0_11 = arith.constant 0 : index
      %12 = vector.load %arg7[%c0_10, %c0_11] : memref<512x128xf32, #tpu.memory_space<vmem>>, vector<512x128xf32>
      %c0_12 = arith.constant 0 : index
      %c0_13 = arith.constant 0 : index
      %13 = vector.load %arg3[%c0_12, %c0_13] : memref<1x128xf32, #tpu.memory_space<vmem>>, vector<1x128xf32>
      %14 = vector.broadcast %13 : vector<1x128xf32> to vector<512x128xf32>
      %15 = arith.addf %12, %14 : vector<512x128xf32>
      %cst_14 = arith.constant dense<0.000000e+00> : vector<128xf32>
      %16 = vector.multi_reduction <add>, %15, %cst_14 [0] : vector<512x128xf32> to vector<128xf32>
      %17 = vector.shape_cast %16 : vector<128xf32> to vector<1x128xf32>
      %cst_15 = arith.constant 5.120000e+02 : f32
      %18 = vector.broadcast %cst_15 : f32 to vector<1x128xf32>
      %19 = arith.divf %17, %18 : vector<1x128xf32>
      %20 = vector.broadcast %19 : vector<1x128xf32> to vector<512x128xf32>
      %21 = arith.subf %15, %20 : vector<512x128xf32>
      %22 = arith.mulf %21, %21 : vector<512x128xf32>
      %cst_16 = arith.constant dense<0.000000e+00> : vector<128xf32>
      %23 = vector.multi_reduction <add>, %22, %cst_16 [0] : vector<512x128xf32> to vector<128xf32>
      %24 = vector.shape_cast %23 : vector<128xf32> to vector<1x128xf32>
      %cst_17 = arith.constant 5.120000e+02 : f32
      %25 = vector.broadcast %cst_17 : f32 to vector<1x128xf32>
      %26 = arith.divf %24, %25 : vector<1x128xf32>
      %27 = vector.broadcast %19 : vector<1x128xf32> to vector<512x128xf32>
      %28 = arith.subf %15, %27 : vector<512x128xf32>
      %cst_18 = arith.constant 9.99999974E-6 : f32
      %29 = vector.broadcast %cst_18 : f32 to vector<1x128xf32>
      %30 = arith.addf %26, %29 : vector<1x128xf32>
      %31 = math.rsqrt %30 : vector<1x128xf32>
      %32 = vector.broadcast %31 : vector<1x128xf32> to vector<512x128xf32>
      %33 = arith.mulf %28, %32 : vector<512x128xf32>
      %c0_19 = arith.constant 0 : index
      %c0_20 = arith.constant 0 : index
      %34 = vector.load %arg4[%c0_19, %c0_20] : memref<1x128xf32, #tpu.memory_space<vmem>>, vector<1x128xf32>
      %35 = vector.broadcast %34 : vector<1x128xf32> to vector<512x128xf32>
      %36 = arith.mulf %33, %35 : vector<512x128xf32>
      %c0_21 = arith.constant 0 : index
      %c0_22 = arith.constant 0 : index
      %37 = vector.load %arg5[%c0_21, %c0_22] : memref<1x128xf32, #tpu.memory_space<vmem>>, vector<1x128xf32>
      %38 = vector.broadcast %37 : vector<1x128xf32> to vector<512x128xf32>
      %39 = arith.addf %36, %38 : vector<512x128xf32>
      %cst_23 = arith.constant 0.000000e+00 : f32
      %40 = vector.broadcast %cst_23 : f32 to vector<512x128xf32>
      %41 = arith.cmpf ogt, %39, %40 : vector<512x128xf32>
      %cst_24 = arith.constant 2.000000e-01 : f32
      %42 = vector.broadcast %cst_24 : f32 to vector<512x128xf32>
      %43 = arith.mulf %42, %39 : vector<512x128xf32>
      %44 = arith.select %41, %39, %43 : vector<512x128xi1>, vector<512x128xf32>
      %c0_25 = arith.constant 0 : index
      %c0_26 = arith.constant 0 : index
      %45 = vector.load %arg6[%c0_25, %c0_26] : memref<512x128xf32, #tpu.memory_space<vmem>>, vector<512x128xf32>
      tpu.vector_store %arg6[%c0_25, %c0_26], %44 {strides = array<i32>} : memref<512x128xf32, #tpu.memory_space<vmem>>, vector<512x128xf32>,
    } else {
    }
    return
  }
  func.func @transform_0(%arg0: i32) -> (i32, i32) {
    %c0_i32 = arith.constant 0 : i32
    %c0_i32_0 = arith.constant 0 : i32
    return %c0_i32, %arg0 : i32, i32
  }
  func.func @transform_1(%arg0: i32) -> (i32, i32) {
    %c0_i32 = arith.constant 0 : i32
    %c0_i32_0 = arith.constant 0 : i32
    return %arg0, %c0_i32 : i32, i32
  }
  func.func @transform_2(%arg0: i32) -> (i32, i32) {
    %c0_i32 = arith.constant 0 : i32
    %c0_i32_0 = arith.constant 0 : i32
    %c0_i32_1 = arith.constant 0 : i32
    return %c0_i32, %c0_i32_0 : i32, i32
  }
  func.func @transform_3(%arg0: i32) -> (i32, i32) {
    %c0_i32 = arith.constant 0 : i32
    %c0_i32_0 = arith.constant 0 : i32
    %c0_i32_1 = arith.constant 0 : i32
    return %c0_i32, %c0_i32_0 : i32, i32
  }
  func.func @transform_4(%arg0: i32) -> (i32, i32) {
    %c0_i32 = arith.constant 0 : i32
    %c0_i32_0 = arith.constant 0 : i32
    %c0_i32_1 = arith.constant 0 : i32
    return %c0_i32, %c0_i32_0 : i32, i32
  }
  func.func @transform_5(%arg0: i32) -> (i32, i32) {
    %c0_i32 = arith.constant 0 : i32
    %c0_i32_0 = arith.constant 0 : i32
    %c0_i32_1 = arith.constant 0 : i32
    return %c0_i32, %c0_i32_0 : i32, i32
  }
}

module attributes {stable_mosaic.version = 11 : i64} {
  func.func @_conv_bn_lrelu_kernel(%arg0: i32, %arg1: memref<128x128xbf16, #tpu.memory_space<vmem>>, %arg2: memref<128x128xbf16, #tpu.memory_space<vmem>>, %arg3: memref<1x128xf32, #tpu.memory_space<vmem>>, %arg4: memref<1x128xf32, #tpu.memory_space<vmem>>, %arg5: memref<1x128xf32, #tpu.memory_space<vmem>>, %arg6: memref<128x128xf32, #tpu.memory_space<vmem>>, %arg7: memref<128x128xf32, #tpu.memory_space<vmem>>) attributes {dimension_semantics = [#tpu.dimension_semantics<arbitrary>], iteration_bounds = array<i64: 1>, scalar_prefetch = 0 : i64, scratch_operands = 1 : i64, tpu.core_type = #tpu.core_type<tc>, window_params = [{transform_indices = @transform_0, window_bounds = array<i64: 128, 128>}, {transform_indices = @transform_1, window_bounds = array<i64: 128, 128>}, {pipeline_mode = #tpu.pipeline_mode<synchronous>, transform_indices = @transform_2, window_bounds = array<i64: 1, 128>}, {pipeline_mode = #tpu.pipeline_mode<synchronous>, transform_indices = @transform_3, window_bounds = array<i64: 1, 128>}, {pipeline_mode = #tpu.pipeline_mode<synchronous>, transform_indices = @transform_4, window_bounds = array<i64: 1, 128>}, {pipeline_mode = #tpu.pipeline_mode<synchronous>, transform_indices = @transform_5, window_bounds = array<i64: 128, 128>}]} {
    %c0_i32 = arith.constant 0 : i32
    %0 = arith.cmpi eq, %arg0, %c0_i32 : i32
    %1 = arith.extui %0 : i1 to i32
    %c0_i32_0 = arith.constant 0 : i32
    %2 = arith.cmpi ne, %1, %c0_i32_0 : i32
    scf.if %2 {
      %cst_10 = arith.constant 0.000000e+00 : f32
      %12 = vector.broadcast %cst_10 : f32 to vector<128x128xf32>
      %c0_11 = arith.constant 0 : index
      %c0_12 = arith.constant 0 : index
      %13 = vector.load %arg7[%c0_11, %c0_12] : memref<128x128xf32, #tpu.memory_space<vmem>>, vector<128x128xf32>
      tpu.vector_store %arg7[%c0_11, %c0_12], %12 {strides = array<i32>} : memref<128x128xf32, #tpu.memory_space<vmem>>, vector<128x128xf32>,
    } else {
    }
    %c0 = arith.constant 0 : index
    %c0_1 = arith.constant 0 : index
    %3 = vector.load %arg7[%c0, %c0_1] : memref<128x128xf32, #tpu.memory_space<vmem>>, vector<128x128xf32>
    %c0_2 = arith.constant 0 : index
    %c0_3 = arith.constant 0 : index
    %4 = vector.load %arg1[%c0_2, %c0_3] : memref<128x128xbf16, #tpu.memory_space<vmem>>, vector<128x128xbf16>
    %c0_4 = arith.constant 0 : index
    %c0_5 = arith.constant 0 : index
    %5 = vector.load %arg2[%c0_4, %c0_5] : memref<128x128xbf16, #tpu.memory_space<vmem>>, vector<128x128xbf16>
    %cst = arith.constant dense<0.000000e+00> : vector<128x128xf32>
    %6 = tpu.matmul %4, %5, %cst {dimension_numbers = #tpu.dot_dimension_numbers<[1], [0], [0], [1], [0, 0, 1, 1], [], []>} : vector<128x128xbf16>, vector<128x128xbf16>, vector<128x128xf32> -> vector<128x128xf32>
    %7 = arith.addf %3, %6 : vector<128x128xf32>
    %c0_6 = arith.constant 0 : index
    %c0_7 = arith.constant 0 : index
    %8 = vector.load %arg7[%c0_6, %c0_7] : memref<128x128xf32, #tpu.memory_space<vmem>>, vector<128x128xf32>
    tpu.vector_store %arg7[%c0_6, %c0_7], %7 {strides = array<i32>} : memref<128x128xf32, #tpu.memory_space<vmem>>, vector<128x128xf32>,
    %c0_i32_8 = arith.constant 0 : i32
    %9 = arith.cmpi eq, %arg0, %c0_i32_8 : i32
    %10 = arith.extui %9 : i1 to i32
    %c0_i32_9 = arith.constant 0 : i32
    %11 = arith.cmpi ne, %10, %c0_i32_9 : i32
    scf.if %11 {
      %c0_10 = arith.constant 0 : index
      %c0_11 = arith.constant 0 : index
      %12 = vector.load %arg7[%c0_10, %c0_11] : memref<128x128xf32, #tpu.memory_space<vmem>>, vector<128x128xf32>
      %c0_12 = arith.constant 0 : index
      %c0_13 = arith.constant 0 : index
      %13 = vector.load %arg3[%c0_12, %c0_13] : memref<1x128xf32, #tpu.memory_space<vmem>>, vector<1x128xf32>
      %14 = vector.broadcast %13 : vector<1x128xf32> to vector<128x128xf32>
      %15 = arith.addf %12, %14 : vector<128x128xf32>
      %cst_14 = arith.constant dense<0.000000e+00> : vector<128xf32>
      %16 = vector.multi_reduction <add>, %15, %cst_14 [0] : vector<128x128xf32> to vector<128xf32>
      %17 = vector.shape_cast %16 : vector<128xf32> to vector<1x128xf32>
      %cst_15 = arith.constant 1.280000e+02 : f32
      %18 = vector.broadcast %cst_15 : f32 to vector<1x128xf32>
      %19 = arith.divf %17, %18 : vector<1x128xf32>
      %20 = vector.broadcast %19 : vector<1x128xf32> to vector<128x128xf32>
      %21 = arith.subf %15, %20 : vector<128x128xf32>
      %22 = arith.mulf %21, %21 : vector<128x128xf32>
      %cst_16 = arith.constant dense<0.000000e+00> : vector<128xf32>
      %23 = vector.multi_reduction <add>, %22, %cst_16 [0] : vector<128x128xf32> to vector<128xf32>
      %24 = vector.shape_cast %23 : vector<128xf32> to vector<1x128xf32>
      %cst_17 = arith.constant 1.280000e+02 : f32
      %25 = vector.broadcast %cst_17 : f32 to vector<1x128xf32>
      %26 = arith.divf %24, %25 : vector<1x128xf32>
      %27 = vector.broadcast %19 : vector<1x128xf32> to vector<128x128xf32>
      %28 = arith.subf %15, %27 : vector<128x128xf32>
      %cst_18 = arith.constant 9.99999974E-6 : f32
      %29 = vector.broadcast %cst_18 : f32 to vector<1x128xf32>
      %30 = arith.addf %26, %29 : vector<1x128xf32>
      %31 = math.rsqrt %30 : vector<1x128xf32>
      %32 = vector.broadcast %31 : vector<1x128xf32> to vector<128x128xf32>
      %33 = arith.mulf %28, %32 : vector<128x128xf32>
      %c0_19 = arith.constant 0 : index
      %c0_20 = arith.constant 0 : index
      %34 = vector.load %arg4[%c0_19, %c0_20] : memref<1x128xf32, #tpu.memory_space<vmem>>, vector<1x128xf32>
      %35 = vector.broadcast %34 : vector<1x128xf32> to vector<128x128xf32>
      %36 = arith.mulf %33, %35 : vector<128x128xf32>
      %c0_21 = arith.constant 0 : index
      %c0_22 = arith.constant 0 : index
      %37 = vector.load %arg5[%c0_21, %c0_22] : memref<1x128xf32, #tpu.memory_space<vmem>>, vector<1x128xf32>
      %38 = vector.broadcast %37 : vector<1x128xf32> to vector<128x128xf32>
      %39 = arith.addf %36, %38 : vector<128x128xf32>
      %cst_23 = arith.constant 0.000000e+00 : f32
      %40 = vector.broadcast %cst_23 : f32 to vector<128x128xf32>
      %41 = arith.cmpf ogt, %39, %40 : vector<128x128xf32>
      %cst_24 = arith.constant 2.000000e-01 : f32
      %42 = vector.broadcast %cst_24 : f32 to vector<128x128xf32>
      %43 = arith.mulf %42, %39 : vector<128x128xf32>
      %44 = arith.select %41, %39, %43 : vector<128x128xi1>, vector<128x128xf32>
      %c0_25 = arith.constant 0 : index
      %c0_26 = arith.constant 0 : index
      %45 = vector.load %arg6[%c0_25, %c0_26] : memref<128x128xf32, #tpu.memory_space<vmem>>, vector<128x128xf32>
      tpu.vector_store %arg6[%c0_25, %c0_26], %44 {strides = array<i32>} : memref<128x128xf32, #tpu.memory_space<vmem>>, vector<128x128xf32>,
    } else {
    }
    return
  }
  func.func @transform_0(%arg0: i32) -> (i32, i32) {
    %c0_i32 = arith.constant 0 : i32
    %c0_i32_0 = arith.constant 0 : i32
    return %c0_i32, %arg0 : i32, i32
  }
  func.func @transform_1(%arg0: i32) -> (i32, i32) {
    %c0_i32 = arith.constant 0 : i32
    %c0_i32_0 = arith.constant 0 : i32
    return %arg0, %c0_i32 : i32, i32
  }
  func.func @transform_2(%arg0: i32) -> (i32, i32) {
    %c0_i32 = arith.constant 0 : i32
    %c0_i32_0 = arith.constant 0 : i32
    %c0_i32_1 = arith.constant 0 : i32
    return %c0_i32, %c0_i32_0 : i32, i32
  }
  func.func @transform_3(%arg0: i32) -> (i32, i32) {
    %c0_i32 = arith.constant 0 : i32
    %c0_i32_0 = arith.constant 0 : i32
    %c0_i32_1 = arith.constant 0 : i32
    return %c0_i32, %c0_i32_0 : i32, i32
  }
  func.func @transform_4(%arg0: i32) -> (i32, i32) {
    %c0_i32 = arith.constant 0 : i32
    %c0_i32_0 = arith.constant 0 : i32
    %c0_i32_1 = arith.constant 0 : i32
    return %c0_i32, %c0_i32_0 : i32, i32
  }
  func.func @transform_5(%arg0: i32) -> (i32, i32) {
    %c0_i32 = arith.constant 0 : i32
    %c0_i32_0 = arith.constant 0 : i32
    %c0_i32_1 = arith.constant 0 : i32
    return %c0_i32, %c0_i32_0 : i32, i32
  }
}

module attributes {stable_mosaic.version = 11 : i64} {
  func.func @_tail_kernel(%arg0: memref<32x128xf32, #tpu.memory_space<vmem>>, %arg1: memref<2x1024xf32, #tpu.memory_space<vmem>>, %arg2: memref<1024x128xbf16, #tpu.memory_space<vmem>>, %arg3: memref<1x128xf32, #tpu.memory_space<vmem>>, %arg4: memref<128x128xbf16, #tpu.memory_space<vmem>>, %arg5: memref<128x128xbf16, #tpu.memory_space<vmem>>, %arg6: memref<1x128xf32, #tpu.memory_space<vmem>>, %arg7: memref<1x128xf32, #tpu.memory_space<vmem>>, %arg8: memref<1x128xf32, #tpu.memory_space<vmem>>, %arg9: memref<16x128xf32, #tpu.memory_space<vmem>>, %arg10: memref<1xf32, #tpu.memory_space<smem>>, %arg11: memref<2x128xf32, #tpu.memory_space<vmem>>) attributes {dimension_semantics = [], scalar_prefetch = 0 : i64, scratch_operands = 0 : i64, tpu.core_type = #tpu.core_type<tc>} {
    %c0 = arith.constant 0 : index
    %c0_0 = arith.constant 0 : index
    %0 = vector.load %arg1[%c0, %c0_0] : memref<2x1024xf32, #tpu.memory_space<vmem>>, vector<2x1024xf32>
    %1 = arith.truncf %0 : vector<2x1024xf32> to vector<2x1024xbf16>
    %c0_1 = arith.constant 0 : index
    %c0_2 = arith.constant 0 : index
    %2 = vector.load %arg2[%c0_1, %c0_2] : memref<1024x128xbf16, #tpu.memory_space<vmem>>, vector<1024x128xbf16>
    %cst = arith.constant dense<0.000000e+00> : vector<2x128xf32>
    %3 = tpu.matmul %1, %2, %cst {dimension_numbers = #tpu.dot_dimension_numbers<[1], [0], [0], [1], [0, 0, 1, 1], [], []>} : vector<2x1024xbf16>, vector<1024x128xbf16>, vector<2x128xf32> -> vector<2x128xf32>
    %c0_3 = arith.constant 0 : index
    %c0_4 = arith.constant 0 : index
    %4 = vector.load %arg3[%c0_3, %c0_4] : memref<1x128xf32, #tpu.memory_space<vmem>>, vector<1x128xf32>
    %5 = vector.broadcast %4 : vector<1x128xf32> to vector<2x128xf32>
    %6 = arith.addf %3, %5 : vector<2x128xf32>
    %c0_5 = arith.constant 0 : index
    %c0_6 = arith.constant 0 : index
    %7 = vector.load %arg0[%c0_5, %c0_6] : memref<32x128xf32, #tpu.memory_space<vmem>>, vector<32x128xf32>
    %8 = arith.truncf %7 : vector<32x128xf32> to vector<32x128xbf16>
    %c0_7 = arith.constant 0 : index
    %c0_8 = arith.constant 0 : index
    %9 = vector.load %arg4[%c0_7, %c0_8] : memref<128x128xbf16, #tpu.memory_space<vmem>>, vector<128x128xbf16>
    %cst_9 = arith.constant dense<0.000000e+00> : vector<32x128xf32>
    %10 = tpu.matmul %8, %9, %cst_9 {dimension_numbers = #tpu.dot_dimension_numbers<[1], [0], [0], [1], [0, 0, 1, 1], [], []>} : vector<32x128xbf16>, vector<128x128xbf16>, vector<32x128xf32> -> vector<32x128xf32>
    %11 = arith.truncf %6 : vector<2x128xf32> to vector<2x128xbf16>
    %c0_10 = arith.constant 0 : index
    %c0_11 = arith.constant 0 : index
    %12 = vector.load %arg5[%c0_10, %c0_11] : memref<128x128xbf16, #tpu.memory_space<vmem>>, vector<128x128xbf16>
    %cst_12 = arith.constant dense<0.000000e+00> : vector<2x128xf32>
    %13 = tpu.matmul %11, %12, %cst_12 {dimension_numbers = #tpu.dot_dimension_numbers<[1], [0], [0], [1], [0, 0, 1, 1], [], []>} : vector<2x128xbf16>, vector<128x128xbf16>, vector<2x128xf32> -> vector<2x128xf32>
    %14 = vector.shape_cast %10 : vector<32x128xf32> to vector<2x16x128xf32>
    %15 = vector.shape_cast %13 : vector<2x128xf32> to vector<2x1x128xf32>
    %16 = vector.broadcast %15 : vector<2x1x128xf32> to vector<2x16x128xf32>
    %17 = arith.addf %14, %16 : vector<2x16x128xf32>
    %18 = vector.shape_cast %17 : vector<2x16x128xf32> to vector<32x128xf32>
    %c0_13 = arith.constant 0 : index
    %c0_14 = arith.constant 0 : index
    %19 = vector.load %arg6[%c0_13, %c0_14] : memref<1x128xf32, #tpu.memory_space<vmem>>, vector<1x128xf32>
    %20 = vector.broadcast %19 : vector<1x128xf32> to vector<32x128xf32>
    %21 = arith.addf %18, %20 : vector<32x128xf32>
    %cst_15 = arith.constant dense<0.000000e+00> : vector<128xf32>
    %22 = vector.multi_reduction <add>, %21, %cst_15 [0] : vector<32x128xf32> to vector<128xf32>
    %23 = vector.shape_cast %22 : vector<128xf32> to vector<1x128xf32>
    %cst_16 = arith.constant 3.200000e+01 : f32
    %24 = vector.broadcast %cst_16 : f32 to vector<1x128xf32>
    %25 = arith.divf %23, %24 : vector<1x128xf32>
    %26 = vector.broadcast %25 : vector<1x128xf32> to vector<32x128xf32>
    %27 = arith.subf %21, %26 : vector<32x128xf32>
    %28 = arith.mulf %27, %27 : vector<32x128xf32>
    %cst_17 = arith.constant dense<0.000000e+00> : vector<128xf32>
    %29 = vector.multi_reduction <add>, %28, %cst_17 [0] : vector<32x128xf32> to vector<128xf32>
    %30 = vector.shape_cast %29 : vector<128xf32> to vector<1x128xf32>
    %cst_18 = arith.constant 3.200000e+01 : f32
    %31 = vector.broadcast %cst_18 : f32 to vector<1x128xf32>
    %32 = arith.divf %30, %31 : vector<1x128xf32>
    %33 = vector.broadcast %25 : vector<1x128xf32> to vector<32x128xf32>
    %34 = arith.subf %21, %33 : vector<32x128xf32>
    %cst_19 = arith.constant 9.99999974E-6 : f32
    %35 = vector.broadcast %cst_19 : f32 to vector<1x128xf32>
    %36 = arith.addf %32, %35 : vector<1x128xf32>
    %37 = math.rsqrt %36 : vector<1x128xf32>
    %38 = vector.broadcast %37 : vector<1x128xf32> to vector<32x128xf32>
    %39 = arith.mulf %34, %38 : vector<32x128xf32>
    %c0_20 = arith.constant 0 : index
    %c0_21 = arith.constant 0 : index
    %40 = vector.load %arg7[%c0_20, %c0_21] : memref<1x128xf32, #tpu.memory_space<vmem>>, vector<1x128xf32>
    %41 = vector.broadcast %40 : vector<1x128xf32> to vector<32x128xf32>
    %42 = arith.mulf %39, %41 : vector<32x128xf32>
    %c0_22 = arith.constant 0 : index
    %c0_23 = arith.constant 0 : index
    %43 = vector.load %arg8[%c0_22, %c0_23] : memref<1x128xf32, #tpu.memory_space<vmem>>, vector<1x128xf32>
    %44 = vector.broadcast %43 : vector<1x128xf32> to vector<32x128xf32>
    %45 = arith.addf %42, %44 : vector<32x128xf32>
    %cst_24 = arith.constant 0.000000e+00 : f32
    %46 = vector.broadcast %cst_24 : f32 to vector<32x128xf32>
    %47 = arith.cmpf ogt, %45, %46 : vector<32x128xf32>
    %cst_25 = arith.constant 2.000000e-01 : f32
    %48 = vector.broadcast %cst_25 : f32 to vector<32x128xf32>
    %49 = arith.mulf %48, %45 : vector<32x128xf32>
    %50 = arith.select %47, %45, %49 : vector<32x128xi1>, vector<32x128xf32>
    %51 = vector.shape_cast %50 : vector<32x128xf32> to vector<2x16x128xf32>
    %c0_26 = arith.constant 0 : index
    %c0_27 = arith.constant 0 : index
    %52 = vector.load %arg9[%c0_26, %c0_27] : memref<16x128xf32, #tpu.memory_space<vmem>>, vector<16x128xf32>
    %53 = vector.shape_cast %52 : vector<16x128xf32> to vector<1x16x128xf32>
    %54 = vector.broadcast %53 : vector<1x16x128xf32> to vector<2x16x128xf32>
    %55 = arith.mulf %51, %54 : vector<2x16x128xf32>
    %cst_28 = arith.constant dense<0.000000e+00> : vector<2x128xf32>
    %56 = vector.multi_reduction <add>, %55, %cst_28 [1] : vector<2x16x128xf32> to vector<2x128xf32>
    %cst_29 = arith.constant dense<0.000000e+00> : vector<2xf32>
    %57 = vector.multi_reduction <add>, %56, %cst_29 [1] : vector<2x128xf32> to vector<2xf32>
    %58 = vector.shape_cast %57 : vector<2xf32> to vector<2x1xf32>
    %c0_30 = arith.constant 0 : index
    %59 = memref.load %arg10[%c0_30] : memref<1xf32, #tpu.memory_space<smem>>
    %60 = vector.broadcast %59 : f32 to vector<2x1xf32>
    %61 = arith.addf %58, %60 : vector<2x1xf32>
    %62 = arith.negf %61 : vector<2x1xf32>
    %63 = math.exp %62 : vector<2x1xf32>
    %cst_31 = arith.constant 1.000000e+00 : f32
    %64 = vector.broadcast %cst_31 : f32 to vector<2x1xf32>
    %65 = arith.addf %64, %63 : vector<2x1xf32>
    %66 = arith.divf %64, %65 : vector<2x1xf32>
    %67 = vector.shape_cast %66 : vector<2x1xf32> to vector<2x1xf32>
    %68 = vector.broadcast %67 : vector<2x1xf32> to vector<2x128xf32>
    %c0_32 = arith.constant 0 : index
    %c0_33 = arith.constant 0 : index
    %69 = vector.load %arg11[%c0_32, %c0_33] : memref<2x128xf32, #tpu.memory_space<vmem>>, vector<2x128xf32>
    tpu.vector_store %arg11[%c0_32, %c0_33], %68 {strides = array<i32>} : memref<2x128xf32, #tpu.memory_space<vmem>>, vector<2x128xf32>,
    return
  }
}

module attributes {stable_mosaic.version = 11 : i64} {
  func.func @_conv_bn_lrelu_kernel(%arg0: i32, %arg1: memref<32x128xbf16, #tpu.memory_space<vmem>>, %arg2: memref<128x128xbf16, #tpu.memory_space<vmem>>, %arg3: memref<1x128xf32, #tpu.memory_space<vmem>>, %arg4: memref<1x128xf32, #tpu.memory_space<vmem>>, %arg5: memref<1x128xf32, #tpu.memory_space<vmem>>, %arg6: memref<32x128xf32, #tpu.memory_space<vmem>>, %arg7: memref<32x128xf32, #tpu.memory_space<vmem>>) attributes {dimension_semantics = [#tpu.dimension_semantics<arbitrary>], iteration_bounds = array<i64: 2>, scalar_prefetch = 0 : i64, scratch_operands = 1 : i64, tpu.core_type = #tpu.core_type<tc>, window_params = [{transform_indices = @transform_0, window_bounds = array<i64: 32, 128>}, {transform_indices = @transform_1, window_bounds = array<i64: 128, 128>}, {pipeline_mode = #tpu.pipeline_mode<synchronous>, transform_indices = @transform_2, window_bounds = array<i64: 1, 128>}, {pipeline_mode = #tpu.pipeline_mode<synchronous>, transform_indices = @transform_3, window_bounds = array<i64: 1, 128>}, {pipeline_mode = #tpu.pipeline_mode<synchronous>, transform_indices = @transform_4, window_bounds = array<i64: 1, 128>}, {pipeline_mode = #tpu.pipeline_mode<synchronous>, transform_indices = @transform_5, window_bounds = array<i64: 32, 128>}]} {
    %c0_i32 = arith.constant 0 : i32
    %0 = arith.cmpi eq, %arg0, %c0_i32 : i32
    %1 = arith.extui %0 : i1 to i32
    %c0_i32_0 = arith.constant 0 : i32
    %2 = arith.cmpi ne, %1, %c0_i32_0 : i32
    scf.if %2 {
      %cst_9 = arith.constant 0.000000e+00 : f32
      %12 = vector.broadcast %cst_9 : f32 to vector<32x128xf32>
      %c0_10 = arith.constant 0 : index
      %c0_11 = arith.constant 0 : index
      %13 = vector.load %arg7[%c0_10, %c0_11] : memref<32x128xf32, #tpu.memory_space<vmem>>, vector<32x128xf32>
      tpu.vector_store %arg7[%c0_10, %c0_11], %12 {strides = array<i32>} : memref<32x128xf32, #tpu.memory_space<vmem>>, vector<32x128xf32>,
    } else {
    }
    %c0 = arith.constant 0 : index
    %c0_1 = arith.constant 0 : index
    %3 = vector.load %arg7[%c0, %c0_1] : memref<32x128xf32, #tpu.memory_space<vmem>>, vector<32x128xf32>
    %c0_2 = arith.constant 0 : index
    %c0_3 = arith.constant 0 : index
    %4 = vector.load %arg1[%c0_2, %c0_3] : memref<32x128xbf16, #tpu.memory_space<vmem>>, vector<32x128xbf16>
    %c0_4 = arith.constant 0 : index
    %c0_5 = arith.constant 0 : index
    %5 = vector.load %arg2[%c0_4, %c0_5] : memref<128x128xbf16, #tpu.memory_space<vmem>>, vector<128x128xbf16>
    %cst = arith.constant dense<0.000000e+00> : vector<32x128xf32>
    %6 = tpu.matmul %4, %5, %cst {dimension_numbers = #tpu.dot_dimension_numbers<[1], [0], [0], [1], [0, 0, 1, 1], [], []>} : vector<32x128xbf16>, vector<128x128xbf16>, vector<32x128xf32> -> vector<32x128xf32>
    %7 = arith.addf %3, %6 : vector<32x128xf32>
    %c0_6 = arith.constant 0 : index
    %c0_7 = arith.constant 0 : index
    %8 = vector.load %arg7[%c0_6, %c0_7] : memref<32x128xf32, #tpu.memory_space<vmem>>, vector<32x128xf32>
    tpu.vector_store %arg7[%c0_6, %c0_7], %7 {strides = array<i32>} : memref<32x128xf32, #tpu.memory_space<vmem>>, vector<32x128xf32>,
    %c1_i32 = arith.constant 1 : i32
    %9 = arith.cmpi eq, %arg0, %c1_i32 : i32
    %10 = arith.extui %9 : i1 to i32
    %c0_i32_8 = arith.constant 0 : i32
    %11 = arith.cmpi ne, %10, %c0_i32_8 : i32
    scf.if %11 {
      %c0_9 = arith.constant 0 : index
      %c0_10 = arith.constant 0 : index
      %12 = vector.load %arg7[%c0_9, %c0_10] : memref<32x128xf32, #tpu.memory_space<vmem>>, vector<32x128xf32>
      %c0_11 = arith.constant 0 : index
      %c0_12 = arith.constant 0 : index
      %13 = vector.load %arg3[%c0_11, %c0_12] : memref<1x128xf32, #tpu.memory_space<vmem>>, vector<1x128xf32>
      %14 = vector.broadcast %13 : vector<1x128xf32> to vector<32x128xf32>
      %15 = arith.addf %12, %14 : vector<32x128xf32>
      %cst_13 = arith.constant dense<0.000000e+00> : vector<128xf32>
      %16 = vector.multi_reduction <add>, %15, %cst_13 [0] : vector<32x128xf32> to vector<128xf32>
      %17 = vector.shape_cast %16 : vector<128xf32> to vector<1x128xf32>
      %cst_14 = arith.constant 3.200000e+01 : f32
      %18 = vector.broadcast %cst_14 : f32 to vector<1x128xf32>
      %19 = arith.divf %17, %18 : vector<1x128xf32>
      %20 = vector.broadcast %19 : vector<1x128xf32> to vector<32x128xf32>
      %21 = arith.subf %15, %20 : vector<32x128xf32>
      %22 = arith.mulf %21, %21 : vector<32x128xf32>
      %cst_15 = arith.constant dense<0.000000e+00> : vector<128xf32>
      %23 = vector.multi_reduction <add>, %22, %cst_15 [0] : vector<32x128xf32> to vector<128xf32>
      %24 = vector.shape_cast %23 : vector<128xf32> to vector<1x128xf32>
      %cst_16 = arith.constant 3.200000e+01 : f32
      %25 = vector.broadcast %cst_16 : f32 to vector<1x128xf32>
      %26 = arith.divf %24, %25 : vector<1x128xf32>
      %27 = vector.broadcast %19 : vector<1x128xf32> to vector<32x128xf32>
      %28 = arith.subf %15, %27 : vector<32x128xf32>
      %cst_17 = arith.constant 9.99999974E-6 : f32
      %29 = vector.broadcast %cst_17 : f32 to vector<1x128xf32>
      %30 = arith.addf %26, %29 : vector<1x128xf32>
      %31 = math.rsqrt %30 : vector<1x128xf32>
      %32 = vector.broadcast %31 : vector<1x128xf32> to vector<32x128xf32>
      %33 = arith.mulf %28, %32 : vector<32x128xf32>
      %c0_18 = arith.constant 0 : index
      %c0_19 = arith.constant 0 : index
      %34 = vector.load %arg4[%c0_18, %c0_19] : memref<1x128xf32, #tpu.memory_space<vmem>>, vector<1x128xf32>
      %35 = vector.broadcast %34 : vector<1x128xf32> to vector<32x128xf32>
      %36 = arith.mulf %33, %35 : vector<32x128xf32>
      %c0_20 = arith.constant 0 : index
      %c0_21 = arith.constant 0 : index
      %37 = vector.load %arg5[%c0_20, %c0_21] : memref<1x128xf32, #tpu.memory_space<vmem>>, vector<1x128xf32>
      %38 = vector.broadcast %37 : vector<1x128xf32> to vector<32x128xf32>
      %39 = arith.addf %36, %38 : vector<32x128xf32>
      %cst_22 = arith.constant 0.000000e+00 : f32
      %40 = vector.broadcast %cst_22 : f32 to vector<32x128xf32>
      %41 = arith.cmpf ogt, %39, %40 : vector<32x128xf32>
      %cst_23 = arith.constant 2.000000e-01 : f32
      %42 = vector.broadcast %cst_23 : f32 to vector<32x128xf32>
      %43 = arith.mulf %42, %39 : vector<32x128xf32>
      %44 = arith.select %41, %39, %43 : vector<32x128xi1>, vector<32x128xf32>
      %c0_24 = arith.constant 0 : index
      %c0_25 = arith.constant 0 : index
      %45 = vector.load %arg6[%c0_24, %c0_25] : memref<32x128xf32, #tpu.memory_space<vmem>>, vector<32x128xf32>
      tpu.vector_store %arg6[%c0_24, %c0_25], %44 {strides = array<i32>} : memref<32x128xf32, #tpu.memory_space<vmem>>, vector<32x128xf32>,
    } else {
    }
    return
  }
  func.func @transform_0(%arg0: i32) -> (i32, i32) {
    %c0_i32 = arith.constant 0 : i32
    %c0_i32_0 = arith.constant 0 : i32
    return %c0_i32, %arg0 : i32, i32
  }
  func.func @transform_1(%arg0: i32) -> (i32, i32) {
    %c0_i32 = arith.constant 0 : i32
    %c0_i32_0 = arith.constant 0 : i32
    return %arg0, %c0_i32 : i32, i32
  }
  func.func @transform_2(%arg0: i32) -> (i32, i32) {
    %c0_i32 = arith.constant 0 : i32
    %c0_i32_0 = arith.constant 0 : i32
    %c0_i32_1 = arith.constant 0 : i32
    return %c0_i32, %c0_i32_0 : i32, i32
  }
  func.func @transform_3(%arg0: i32) -> (i32, i32) {
    %c0_i32 = arith.constant 0 : i32
    %c0_i32_0 = arith.constant 0 : i32
    %c0_i32_1 = arith.constant 0 : i32
    return %c0_i32, %c0_i32_0 : i32, i32
  }
  func.func @transform_4(%arg0: i32) -> (i32, i32) {
    %c0_i32 = arith.constant 0 : i32
    %c0_i32_0 = arith.constant 0 : i32
    %c0_i32_1 = arith.constant 0 : i32
    return %c0_i32, %c0_i32_0 : i32, i32
  }
  func.func @transform_5(%arg0: i32) -> (i32, i32) {
    %c0_i32 = arith.constant 0 : i32
    %c0_i32_0 = arith.constant 0 : i32
    %c0_i32_1 = arith.constant 0 : i32
    return %c0_i32, %c0_i32_0 : i32, i32
  }
}

</mosaic_0001>

<bundles_post_ra>
// kernel: d1_forward.5
= control target key start
LH: loop header
LB: loop body
LE: loop exit
PB: predicated region body
PF: predicated region fallthrough
CT: control target
= control target key end

     0   :  { %s1389_s12 = smov 0   ;;  %s1620_s0 = inlined_call_operand.vmem [shape: bf16[2048,48], index: 0, kind: input, shape index: {}]   ;;  %s1621_s1 = inlined_call_operand.vmem [shape: bf16[48,128], index: 1, kind: input, shape index: {}]   ;;  %s1622_s2 = inlined_call_operand.vmem [shape: f32[1,128], index: 2, kind: input, shape index: {}]   ;;  %s1623_s3 = inlined_call_operand.vmem [shape: f32[2048,128], index: 3, kind: output, shape index: {}]  }
   0x1 LB: > { %s1128_s13 = sadd.s32 4294967295, %s1367_s12   ;;  %p1132_p0 = scmp.ge.s32.totalorder %s1367_s12, 1  ;;  %s1367_s12 = sphi %s1389_s12, %s13_s12  }
   0x2   : > { %p138_p1 = scmp.lt.s32.totalorder %s1367_s12, 5 }
   0x4   : > { %p139_p2 = pnand %p1132_p0, %p138_p1 }
   0x5   : > { %v1326_v0 = vld [vmem:[%s1621_s1] sm:$0xff] (!%p139_p2)   ;;  %s1133_s16 = sshll.u32 (!%p139_p2), %s1128_s13, 6  ;;  %v1327_v1 = vld [vmem:[%s1621_s1 + $0x8] sm:$0xff] (!%p139_p2)   ;;  %v1328_v2 = vld [vmem:[%s1621_s1 + $0x10] sm:$0xff] (!%p139_p2)   ;;  %vm430_vm0 = vcmask (!%p139_p2), 392192  }
   0x6   : > { %142 = sbr.rel (%p139_p2) target bundleno = 300 (0x12c), region = 32  ;;  %p163_p3 = scmp.lt.s32.totalorder (!%p139_p2), %s1133_s16, 255  ;;  %1242 = vmatprep.subr.bf16.mxu0 (!%p139_p2), %v1326_v0  ;;  %1312 = vmatprep.subr.bf16.mxu1 (!%p139_p2), %v1326_v0  ;;  %v1481_v35 = vld [vmem:[%s1622_s2] ss:$0 sm:$0xff] (!%p139_p2) }
   0x7   : > { %1243 = vmatpush3.bf16.msra.mxu0 (!%p139_p2), %v1326_v0  ;;  %1315 = vmatpush3.bf16.msra.mxu1 (!%p139_p2), %v1326_v0 }
   0x8   : > { %1244 = vmatprep.subr.bf16.mxu0 (!%p139_p2), %v1327_v1  ;;  %1313 = vmatprep.subr.bf16.mxu1 (!%p139_p2), %v1327_v1 }
   0xb   : > { %1245 = vmatpush3.bf16.msra.mxu0 (!%p139_p2), %v1327_v1  ;;  %1316 = vmatpush3.bf16.msra.mxu1 (!%p139_p2), %v1327_v1 }
   0xc   : > { %1246 = vmatprep.subr.bf16.mxu0 (!%p139_p2), %v1328_v2  ;;  %1314 = vmatprep.subr.bf16.mxu1 (!%p139_p2), %v1328_v2 }
   0xd   : > { %s1625_s16 = smov (!%p163_p3, %s1133_s16), 255 }
   0xe   : > { %s1134_s21 = sshll.u32 %s1625_s16, 2  ;;  %s1136_s27 = sshll.u32 %s1625_s16, 3 }
   0xf   : > { %s1412_s24 = scalar_lea.vmem %s1620_s0, %s1134_s21  ;;  %1247 = vmatpush3.bf16.msra.mxu0 %v1328_v2  ;;  %1317 = vmatpush3.bf16.msra.mxu1 %v1328_v2  ;;  %s1491_s30 = scalar_lea.vmem %s1623_s3, %s1136_s27 }
  0x10   : > { %v1329_v3 = vld [vmem:[%s1412_s24] sm:$0xff]   ;;  %v1331_v5 = vld [vmem:[%s1412_s24 + $0x8] sm:$0xff]   ;;  %v1333_v7 = vld [vmem:[%s1412_s24 + $0x10] sm:$0xff]  }
  0x11   : > { %v1330_v4 = vld [vmem:[%s1412_s24 + $0x80] sm:$0xff]   ;;  %1248 = vmatprep.mubr.msk.bf16.mxu0 %vm430_vm0, %v1329_v3  ;;  %v1332_v6 = vld [vmem:[%s1412_s24 + $0x88] sm:$0xff]   ;;  %v1334_v8 = vld [vmem:[%s1412_s24 + $0x90] sm:$0xff]  }
  0x12   : > { %1280 = vmatprep.mubr.msk.bf16.mxu1 %vm430_vm0, %v1330_v4  ;;  %1249 = vmatmul.mubr.msk.bf16.vlgmr.msra.gmra.mrb[0].mxu0 %vm430_vm0, %v1331_v5  ;;  %v1335_v9 = vld [vmem:[%s1412_s24 + $0x18] sm:$0xff]   ;;  %v1337_v11 = vld [vmem:[%s1412_s24 + $0x20] sm:$0xff]   ;;  %v1339_v13 = vld [vmem:[%s1412_s24 + $0x28] sm:$0xff]  }
  0x13   : > { %1281 = vmatmul.mubr.msk.bf16.vlgmr.msra.gmra.mrb[0].mxu1 %vm430_vm0, %v1332_v6  ;;  %1252 = vmatprep.mubr.msk.bf16.mxu0 %vm430_vm0, %v1333_v7  ;;  %v1336_v10 = vld [vmem:[%s1412_s24 + $0x98] sm:$0xff]   ;;  %v1338_v12 = vld [vmem:[%s1412_s24 + $0xa0] sm:$0xff]   ;;  %v1340_v14 = vld [vmem:[%s1412_s24 + $0xa8] sm:$0xff]  }
  0x14   : > { %1284 = vmatprep.mubr.msk.bf16.mxu1 %vm430_vm0, %v1334_v8  ;;  %v1341_v15 = vld [vmem:[%s1412_s24 + $0x30] sm:$0xff]   ;;  %v1343_v17 = vld [vmem:[%s1412_s24 + $0x38] sm:$0xff]   ;;  %v1345_v19 = vld [vmem:[%s1412_s24 + $0x40] sm:$0xff]  }
  0x15   : > { %v1342_v16 = vld [vmem:[%s1412_s24 + $0xb0] sm:$0xff]   ;;  %v1344_v18 = vld [vmem:[%s1412_s24 + $0xb8] sm:$0xff]   ;;  %v1346_v20 = vld [vmem:[%s1412_s24 + $0xc0] sm:$0xff]  }
  0x16   : > { %v1347_v21 = vld [vmem:[%s1412_s24 + $0x48] sm:$0xff]   ;;  %v1349_v23 = vld [vmem:[%s1412_s24 + $0x50] sm:$0xff]   ;;  %v1351_v25 = vld [vmem:[%s1412_s24 + $0x58] sm:$0xff]  }
  0x17   : > { %v1348_v22 = vld [vmem:[%s1412_s24 + $0xc8] sm:$0xff]   ;;  %v1350_v24 = vld [vmem:[%s1412_s24 + $0xd0] sm:$0xff]   ;;  %v1352_v26 = vld [vmem:[%s1412_s24 + $0xd8] sm:$0xff]  }
  0x18   : > { %v1353_v27 = vld [vmem:[%s1412_s24 + $0x60] sm:$0xff]   ;;  %v1355_v29 = vld [vmem:[%s1412_s24 + $0x68] sm:$0xff]   ;;  %v1357_v31 = vld [vmem:[%s1412_s24 + $0x70] sm:$0xff]  }
  0x19   : > { %v1354_v28 = vld [vmem:[%s1412_s24 + $0xe0] sm:$0xff]   ;;  %v1356_v30 = vld [vmem:[%s1412_s24 + $0xe8] sm:$0xff]   ;;  %v1358_v32 = vld [vmem:[%s1412_s24 + $0xf0] sm:$0xff]  }
  0x1a   : > { %1253 = vmatmul.mubr.msk.bf16.gmra.mrb[4].mxu0 %vm430_vm0, %v1335_v9  ;;  %v1359_v33 = vld [vmem:[%s1412_s24 + $0x78] sm:$0xff]  }
  0x1b   : > { %1285 = vmatmul.mubr.msk.bf16.gmra.mrb[4].mxu1 %vm430_vm0, %v1336_v10  ;;  %1256 = vmatprep.mubr.msk.bf16.mxu0 %vm430_vm0, %v1337_v11  ;;  %v1360_v34 = vld [vmem:[%s1412_s24 + $0xf8] sm:$0xff]  }
  0x1c   : > { %1288 = vmatprep.mubr.msk.bf16.mxu1 %vm430_vm0, %v1338_v12 }
  0x22   : > { %1257 = vmatmul.mubr.msk.bf16.gmra.mrb[8].mxu0 %vm430_vm0, %v1339_v13 }
  0x23   : > { %1289 = vmatmul.mubr.msk.bf16.gmra.mrb[8].mxu1 %vm430_vm0, %v1340_v14  ;;  %1260 = vmatprep.mubr.msk.bf16.mxu0 %vm430_vm0, %v1341_v15 }
  0x24   : > { %1292 = vmatprep.mubr.msk.bf16.mxu1 %vm430_vm0, %v1342_v16 }
  0x2a   : > { %1261 = vmatmul.mubr.msk.bf16.gmra.mrb[12].mxu0 %vm430_vm0, %v1343_v17 }
  0x2b   : > { %1293 = vmatmul.mubr.msk.bf16.gmra.mrb[12].mxu1 %vm430_vm0, %v1344_v18  ;;  %1264 = vmatprep.mubr.msk.bf16.mxu0 %vm430_vm0, %v1345_v19 }
  0x2c   : > { %1296 = vmatprep.mubr.msk.bf16.mxu1 %vm430_vm0, %v1346_v20 }
  0x32   : > { %1265 = vmatmul.mubr.msk.bf16.gmra.mrb[16].mxu0 %vm430_vm0, %v1347_v21 }
  0x33   : > { %1297 = vmatmul.mubr.msk.bf16.gmra.mrb[16].mxu1 %vm430_vm0, %v1348_v22  ;;  %1268 = vmatprep.mubr.msk.bf16.mxu0 %vm430_vm0, %v1349_v23 }
  0x34   : > { %1300 = vmatprep.mubr.msk.bf16.mxu1 %vm430_vm0, %v1350_v24 }
  0x3a   : > { %1269 = vmatmul.mubr.msk.bf16.gmra.mrb[20].mxu0 %vm430_vm0, %v1351_v25 }
  0x3b   : > { %1301 = vmatmul.mubr.msk.bf16.gmra.mrb[20].mxu1 %vm430_vm0, %v1352_v26  ;;  %1272 = vmatprep.mubr.msk.bf16.mxu0 %vm430_vm0, %v1353_v27 }
  0x3c   : > { %1304 = vmatprep.mubr.msk.bf16.mxu1 %vm430_vm0, %v1354_v28 }
  0x42   : > { %1273 = vmatmul.mubr.msk.bf16.gmra.mrb[24].mxu0 %vm430_vm0, %v1355_v29 }
  0x43   : > { %1305 = vmatmul.mubr.msk.bf16.gmra.mrb[24].mxu1 %vm430_vm0, %v1356_v30  ;;  %1276 = vmatprep.mubr.msk.bf16.mxu0 %vm430_vm0, %v1357_v31 }
  0x44   : > { %1308 = vmatprep.mubr.msk.bf16.mxu1 %vm430_vm0, %v1358_v32 }
  0x4a   : > { %1277 = vmatmul.mubr.msk.bf16.gmra.mrb[28].mxu0 %vm430_vm0, %v1359_v33 }
  0x4b   : > { %1309 = vmatmul.mubr.msk.bf16.gmra.mrb[28].mxu1 %vm430_vm0, %v1360_v34 }
  0xe5   : > { %v1250_v36 = vpop.f32.mrb[0].mxu0 }
  0xe6   : > { %v1282_v37 = vpop.f32.mrb[0].mxu1  ;;  %v570_v38 = vadd.f32 %v1250_v36, %v1481_v35  ;;  %v561_v40 = vpop.f32.mrb[1].mxu0 }
  0xe7   : > { %v698_v39 = vadd.f32 %v1282_v37, %v1481_v35  ;;  %v689_v41 = vpop.f32.mrb[1].mxu1  ;;  %v562_v42 = vadd.f32 %v1481_v35, %v561_v40  ;;  %v1251_v44 = vpop.f32.mrb[2].mxu0 }
  0xe8   : > { %v690_v43 = vadd.f32 %v1481_v35, %v689_v41  ;;  %v1283_v45 = vpop.f32.mrb[2].mxu1  ;;  %vm818_vm1 = vcmp.gt.f32.partialorder %v570_v38, 0.0  ;;  %v882_v46 = vmul.f32 0.2, %v570_v38  ;;  %v573_v52 = vadd.f32 %v1251_v44, %v1481_v35  ;;  %v564_v54 = vpop.f32.mrb[3].mxu0 }
  0xe9   : > { %vm850_vm2 = vcmp.gt.f32.partialorder %v698_v39, 0.0  ;;  %v914_v47 = vmul.f32 0.2, %v698_v39  ;;  %vm816_vm3 = vcmp.gt.f32.partialorder %v562_v42, 0.0  ;;  %v880_v48 = vmul.f32 0.2, %v562_v42 }
  0xea   : > { %vm848_vm4 = vcmp.gt.f32.partialorder %v690_v43, 0.0  ;;  %v912_v49 = vmul.f32 0.2, %v690_v43  ;;  %v946_v50 = vsel %vm818_vm1, %v570_v38, %v882_v46  ;;  %v701_v53 = vadd.f32 %v1283_v45, %v1481_v35  ;;  %v692_v55 = vpop.f32.mrb[3].mxu1 }
  0xeb   : > { %v978_v51 = vsel %vm850_vm2, %v698_v39, %v914_v47  ;;  %1010 = vst [vmem:[%s1491_s30 + $0x10] sm:$0xff] %v946_v50  ;;  %v944_v56 = vsel %vm816_vm3, %v562_v42, %v880_v48  ;;  %v565_v58 = vadd.f32 %v1481_v35, %v564_v54  ;;  %v693_v59 = vadd.f32 %v1481_v35, %v692_v55 }
  0xec   : > { %1042 = vst [vmem:[%s1491_s30 + $0x110] sm:$0xff] %v978_v51  ;;  %v976_v57 = vsel %vm848_vm4, %v690_v43, %v912_v49  ;;  %1008 = vst [vmem:[%s1491_s30] sm:$0xff] %v944_v56  ;;  %vm819_vm5 = vcmp.gt.f32.partialorder %v573_v52, 0.0  ;;  %v883_v60 = vmul.f32 0.2, %v573_v52  ;;  %vm851_vm6 = vcmp.gt.f32.partialorder %v701_v53, 0.0 }
  0xed   : > { %1040 = vst [vmem:[%s1491_s30 + $0x100] sm:$0xff] %v976_v57  ;;  %v915_v61 = vmul.f32 0.2, %v701_v53  ;;  %vm817_vm7 = vcmp.gt.f32.partialorder %v565_v58, 0.0  ;;  %v881_v62 = vmul.f32 0.2, %v565_v58 }
  0xee   : > { %vm849_vm8 = vcmp.gt.f32.partialorder %v693_v59, 0.0  ;;  %v913_v63 = vmul.f32 0.2, %v693_v59  ;;  %v947_v0 = vsel %vm819_vm5, %v573_v52, %v883_v60  ;;  %v1254_v2 = vpop.f32.mrb[4].mxu0  ;;  %v1286_v3 = vpop.f32.mrb[4].mxu1 }
  0xef   : > { %v979_v1 = vsel %vm851_vm6, %v701_v53, %v915_v61  ;;  %1011 = vst [vmem:[%s1491_s30 + $0x18] sm:$0xff] %v947_v0  ;;  %v945_v4 = vsel %vm817_vm7, %v565_v58, %v881_v62  ;;  %v586_v6 = vadd.f32 %v1254_v2, %v1481_v35  ;;  %v714_v7 = vadd.f32 %v1286_v3, %v1481_v35  ;;  %v577_v8 = vpop.f32.mrb[5].mxu0  ;;  %v705_v9 = vpop.f32.mrb[5].mxu1 }
  0xf0   : > { %1043 = vst [vmem:[%s1491_s30 + $0x118] sm:$0xff] %v979_v1  ;;  %v977_v5 = vsel %vm849_vm8, %v693_v59, %v913_v63  ;;  %1009 = vst [vmem:[%s1491_s30 + $0x8] sm:$0xff] %v945_v4  ;;  %v578_v10 = vadd.f32 %v1481_v35, %v577_v8  ;;  %v706_v11 = vadd.f32 %v1481_v35, %v705_v9  ;;  %v1255_v12 = vpop.f32.mrb[6].mxu0  ;;  %v1287_v13 = vpop.f32.mrb[6].mxu1 }
  0xf1   : > { %1041 = vst [vmem:[%s1491_s30 + $0x108] sm:$0xff] %v977_v5  ;;  %vm822_vm9 = vcmp.gt.f32.partialorder %v586_v6, 0.0  ;;  %v886_v14 = vmul.f32 0.2, %v586_v6  ;;  %vm854_vm10 = vcmp.gt.f32.partialorder %v714_v7, 0.0  ;;  %v589_v20 = vadd.f32 %v1255_v12, %v1481_v35  ;;  %v580_v22 = vpop.f32.mrb[7].mxu0 }
  0xf2   : > { %v918_v15 = vmul.f32 0.2, %v714_v7  ;;  %vm820_vm11 = vcmp.gt.f32.partialorder %v578_v10, 0.0  ;;  %v884_v16 = vmul.f32 0.2, %v578_v10  ;;  %vm852_vm12 = vcmp.gt.f32.partialorder %v706_v11, 0.0 }
  0xf3   : > { %v916_v17 = vmul.f32 0.2, %v706_v11  ;;  %v950_v18 = vsel %vm822_vm9, %v586_v6, %v886_v14  ;;  %v717_v21 = vadd.f32 %v1287_v13, %v1481_v35  ;;  %v708_v23 = vpop.f32.mrb[7].mxu1  ;;  %v581_v26 = vadd.f32 %v1481_v35, %v580_v22 }
  0xf4   : > { %v982_v19 = vsel %vm854_vm10, %v714_v7, %v918_v15  ;;  %1014 = vst [vmem:[%s1491_s30 + $0x30] sm:$0xff] %v950_v18  ;;  %v948_v24 = vsel %vm820_vm11, %v578_v10, %v884_v16  ;;  %v709_v27 = vadd.f32 %v1481_v35, %v708_v23  ;;  %vm823_vm13 = vcmp.gt.f32.partialorder %v589_v20, 0.0 }
  0xf5   : > { %1046 = vst [vmem:[%s1491_s30 + $0x130] sm:$0xff] %v982_v19  ;;  %v980_v25 = vsel %vm852_vm12, %v706_v11, %v916_v17  ;;  %1012 = vst [vmem:[%s1491_s30 + $0x20] sm:$0xff] %v948_v24  ;;  %v887_v28 = vmul.f32 0.2, %v589_v20  ;;  %vm855_vm14 = vcmp.gt.f32.partialorder %v717_v21, 0.0  ;;  %vm821_vm15 = vcmp.gt.f32.partialorder %v581_v26, 0.0 }
  0xf6   : > { %1044 = vst [vmem:[%s1491_s30 + $0x120] sm:$0xff] %v980_v25  ;;  %v919_v29 = vmul.f32 0.2, %v717_v21  ;;  %v885_v30 = vmul.f32 0.2, %v581_v26  ;;  %vm853_vm0 = vcmp.gt.f32.partialorder %v709_v27, 0.0 }
  0xf7   : > { %v917_v31 = vmul.f32 0.2, %v709_v27  ;;  %v951_v32 = vsel %vm823_vm13, %v589_v20, %v887_v28  ;;  %v1258_v34 = vpop.f32.mrb[8].mxu0  ;;  %v1290_v36 = vpop.f32.mrb[8].mxu1 }
  0xf8   : > { %v983_v33 = vsel %vm855_vm14, %v717_v21, %v919_v29  ;;  %1015 = vst [vmem:[%s1491_s30 + $0x38] sm:$0xff] %v951_v32  ;;  %v949_v37 = vsel %vm821_vm15, %v581_v26, %v885_v30  ;;  %v602_v39 = vadd.f32 %v1258_v34, %v1481_v35  ;;  %v730_v40 = vadd.f32 %v1290_v36, %v1481_v35  ;;  %v593_v41 = vpop.f32.mrb[9].mxu0  ;;  %v721_v42 = vpop.f32.mrb[9].mxu1 }
  0xf9   : > { %1047 = vst [vmem:[%s1491_s30 + $0x138] sm:$0xff] %v983_v33  ;;  %v981_v38 = vsel %vm853_vm0, %v709_v27, %v917_v31  ;;  %1013 = vst [vmem:[%s1491_s30 + $0x28] sm:$0xff] %v949_v37  ;;  %v594_v43 = vadd.f32 %v1481_v35, %v593_v41  ;;  %v722_v44 = vadd.f32 %v1481_v35, %v721_v42  ;;  %v1259_v45 = vpop.f32.mrb[10].mxu0  ;;  %v1291_v46 = vpop.f32.mrb[10].mxu1 }
  0xfa   : > { %1045 = vst [vmem:[%s1491_s30 + $0x128] sm:$0xff] %v981_v38  ;;  %vm826_vm1 = vcmp.gt.f32.partialorder %v602_v39, 0.0  ;;  %v890_v47 = vmul.f32 0.2, %v602_v39  ;;  %vm858_vm2 = vcmp.gt.f32.partialorder %v730_v40, 0.0  ;;  %v605_v53 = vadd.f32 %v1259_v45, %v1481_v35  ;;  %v596_v55 = vpop.f32.mrb[11].mxu0 }
  0xfb   : > { %v922_v48 = vmul.f32 0.2, %v730_v40  ;;  %vm824_vm3 = vcmp.gt.f32.partialorder %v594_v43, 0.0  ;;  %v888_v49 = vmul.f32 0.2, %v594_v43  ;;  %vm856_vm4 = vcmp.gt.f32.partialorder %v722_v44, 0.0 }
  0xfc   : > { %v920_v50 = vmul.f32 0.2, %v722_v44  ;;  %v954_v51 = vsel %vm826_vm1, %v602_v39, %v890_v47  ;;  %v733_v54 = vadd.f32 %v1291_v46, %v1481_v35  ;;  %v724_v56 = vpop.f32.mrb[11].mxu1  ;;  %v597_v59 = vadd.f32 %v1481_v35, %v596_v55 }
  0xfd   : > { %v986_v52 = vsel %vm858_vm2, %v730_v40, %v922_v48  ;;  %1018 = vst [vmem:[%s1491_s30 + $0x50] sm:$0xff] %v954_v51  ;;  %v952_v57 = vsel %vm824_vm3, %v594_v43, %v888_v49  ;;  %v725_v60 = vadd.f32 %v1481_v35, %v724_v56  ;;  %v1262_v61 = vpop.f32.mrb[12].mxu0  ;;  %vm827_vm5 = vcmp.gt.f32.partialorder %v605_v53, 0.0 }
  0xfe   : > { %1050 = vst [vmem:[%s1491_s30 + $0x150] sm:$0xff] %v986_v52  ;;  %v984_v58 = vsel %vm856_vm4, %v722_v44, %v920_v50  ;;  %v1294_v62 = vpop.f32.mrb[12].mxu1  ;;  %1016 = vst [vmem:[%s1491_s30 + $0x40] sm:$0xff] %v952_v57  ;;  %v891_v63 = vmul.f32 0.2, %v605_v53  ;;  %vm859_vm6 = vcmp.gt.f32.partialorder %v733_v54, 0.0  ;;  %v618_v5 = vadd.f32 %v1262_v61, %v1481_v35 }
  0xff   : > { %1048 = vst [vmem:[%s1491_s30 + $0x140] sm:$0xff] %v984_v58  ;;  %v923_v0 = vmul.f32 0.2, %v733_v54  ;;  %vm825_vm7 = vcmp.gt.f32.partialorder %v597_v59, 0.0  ;;  %v889_v1 = vmul.f32 0.2, %v597_v59  ;;  %v746_v6 = vadd.f32 %v1294_v62, %v1481_v35 }
 0x100   : > { %vm857_vm8 = vcmp.gt.f32.partialorder %v725_v60, 0.0  ;;  %v921_v2 = vmul.f32 0.2, %v725_v60  ;;  %v955_v3 = vsel %vm827_vm5, %v605_v53, %v891_v63  ;;  %v609_v7 = vpop.f32.mrb[13].mxu0  ;;  %v737_v8 = vpop.f32.mrb[13].mxu1  ;;  %vm830_vm9 = vcmp.gt.f32.partialorder %v618_v5, 0.0 }
 0x101   : > { %v987_v4 = vsel %vm859_vm6, %v733_v54, %v923_v0  ;;  %1019 = vst [vmem:[%s1491_s30 + $0x58] sm:$0xff] %v955_v3  ;;  %v953_v9 = vsel %vm825_vm7, %v597_v59, %v889_v1  ;;  %v610_v11 = vadd.f32 %v1481_v35, %v609_v7  ;;  %v738_v12 = vadd.f32 %v1481_v35, %v737_v8  ;;  %v1263_v13 = vpop.f32.mrb[14].mxu0  ;;  %v1295_v14 = vpop.f32.mrb[14].mxu1 }
 0x102   : > { %1051 = vst [vmem:[%s1491_s30 + $0x158] sm:$0xff] %v987_v4  ;;  %v985_v10 = vsel %vm857_vm8, %v725_v60, %v921_v2  ;;  %1017 = vst [vmem:[%s1491_s30 + $0x48] sm:$0xff] %v953_v9  ;;  %v894_v15 = vmul.f32 0.2, %v618_v5  ;;  %vm862_vm10 = vcmp.gt.f32.partialorder %v746_v6, 0.0  ;;  %v621_v21 = vadd.f32 %v1263_v13, %v1481_v35  ;;  %v612_v23 = vpop.f32.mrb[15].mxu0 }
 0x103   : > { %1049 = vst [vmem:[%s1491_s30 + $0x148] sm:$0xff] %v985_v10  ;;  %v926_v16 = vmul.f32 0.2, %v746_v6  ;;  %vm828_vm11 = vcmp.gt.f32.partialorder %v610_v11, 0.0  ;;  %v892_v17 = vmul.f32 0.2, %v610_v11  ;;  %v749_v22 = vadd.f32 %v1295_v14, %v1481_v35 }
 0x104   : > { %vm860_vm12 = vcmp.gt.f32.partialorder %v738_v12, 0.0  ;;  %v924_v18 = vmul.f32 0.2, %v738_v12  ;;  %v958_v19 = vsel %vm830_vm9, %v618_v5, %v894_v15  ;;  %v740_v24 = vpop.f32.mrb[15].mxu1  ;;  %v613_v27 = vadd.f32 %v1481_v35, %v612_v23 }
 0x105   : > { %v990_v20 = vsel %vm862_vm10, %v746_v6, %v926_v16  ;;  %1022 = vst [vmem:[%s1491_s30 + $0x70] sm:$0xff] %v958_v19  ;;  %v956_v25 = vsel %vm828_vm11, %v610_v11, %v892_v17  ;;  %v741_v28 = vadd.f32 %v1481_v35, %v740_v24  ;;  %v1266_v29 = vpop.f32.mrb[16].mxu0  ;;  %vm831_vm13 = vcmp.gt.f32.partialorder %v621_v21, 0.0 }
 0x106   : > { %1054 = vst [vmem:[%s1491_s30 + $0x170] sm:$0xff] %v990_v20  ;;  %v988_v26 = vsel %vm860_vm12, %v738_v12, %v924_v18  ;;  %v1298_v30 = vpop.f32.mrb[16].mxu1  ;;  %1020 = vst [vmem:[%s1491_s30 + $0x60] sm:$0xff] %v956_v25  ;;  %v895_v31 = vmul.f32 0.2, %v621_v21  ;;  %vm863_vm14 = vcmp.gt.f32.partialorder %v749_v22, 0.0  ;;  %v634_v38 = vadd.f32 %v1266_v29, %v1481_v35 }
 0x107   : > { %1052 = vst [vmem:[%s1491_s30 + $0x160] sm:$0xff] %v988_v26  ;;  %v927_v32 = vmul.f32 0.2, %v749_v22  ;;  %vm829_vm15 = vcmp.gt.f32.partialorder %v613_v27, 0.0  ;;  %v893_v33 = vmul.f32 0.2, %v613_v27  ;;  %v762_v39 = vadd.f32 %v1298_v30, %v1481_v35 }
 0x108   : > { %vm861_vm0 = vcmp.gt.f32.partialorder %v741_v28, 0.0  ;;  %v925_v34 = vmul.f32 0.2, %v741_v28  ;;  %v959_v36 = vsel %vm831_vm13, %v621_v21, %v895_v31  ;;  %v625_v40 = vpop.f32.mrb[17].mxu0  ;;  %v753_v41 = vpop.f32.mrb[17].mxu1  ;;  %vm834_vm1 = vcmp.gt.f32.partialorder %v634_v38, 0.0 }
 0x109   : > { %v991_v37 = vsel %vm863_vm14, %v749_v22, %v927_v32  ;;  %1023 = vst [vmem:[%s1491_s30 + $0x78] sm:$0xff] %v959_v36  ;;  %v957_v42 = vsel %vm829_vm15, %v613_v27, %v893_v33  ;;  %v626_v44 = vadd.f32 %v1481_v35, %v625_v40  ;;  %v754_v45 = vadd.f32 %v1481_v35, %v753_v41  ;;  %v1267_v46 = vpop.f32.mrb[18].mxu0  ;;  %v1299_v47 = vpop.f32.mrb[18].mxu1 }
 0x10a   : > { %1055 = vst [vmem:[%s1491_s30 + $0x178] sm:$0xff] %v991_v37  ;;  %v989_v43 = vsel %vm861_vm0, %v741_v28, %v925_v34  ;;  %1021 = vst [vmem:[%s1491_s30 + $0x68] sm:$0xff] %v957_v42  ;;  %v898_v48 = vmul.f32 0.2, %v634_v38  ;;  %vm866_vm2 = vcmp.gt.f32.partialorder %v762_v39, 0.0  ;;  %v637_v54 = vadd.f32 %v1267_v46, %v1481_v35  ;;  %v628_v56 = vpop.f32.mrb[19].mxu0 }
 0x10b   : > { %1053 = vst [vmem:[%s1491_s30 + $0x168] sm:$0xff] %v989_v43  ;;  %v930_v49 = vmul.f32 0.2, %v762_v39  ;;  %vm832_vm3 = vcmp.gt.f32.partialorder %v626_v44, 0.0  ;;  %v896_v50 = vmul.f32 0.2, %v626_v44  ;;  %v765_v55 = vadd.f32 %v1299_v47, %v1481_v35 }
 0x10c   : > { %vm864_vm4 = vcmp.gt.f32.partialorder %v754_v45, 0.0  ;;  %v928_v51 = vmul.f32 0.2, %v754_v45  ;;  %v962_v52 = vsel %vm834_vm1, %v634_v38, %v898_v48  ;;  %v756_v57 = vpop.f32.mrb[19].mxu1  ;;  %v629_v60 = vadd.f32 %v1481_v35, %v628_v56 }
 0x10d   : > { %v994_v53 = vsel %vm866_vm2, %v762_v39, %v930_v49  ;;  %1026 = vst [vmem:[%s1491_s30 + $0x90] sm:$0xff] %v962_v52  ;;  %v960_v58 = vsel %vm832_vm3, %v626_v44, %v896_v50  ;;  %v757_v61 = vadd.f32 %v1481_v35, %v756_v57  ;;  %v1270_v62 = vpop.f32.mrb[20].mxu0  ;;  %vm835_vm5 = vcmp.gt.f32.partialorder %v637_v54, 0.0 }
 0x10e   : > { %1058 = vst [vmem:[%s1491_s30 + $0x190] sm:$0xff] %v994_v53  ;;  %v992_v59 = vsel %vm864_vm4, %v754_v45, %v928_v51  ;;  %v1302_v63 = vpop.f32.mrb[20].mxu1  ;;  %1024 = vst [vmem:[%s1491_s30 + $0x80] sm:$0xff] %v960_v58  ;;  %v899_v0 = vmul.f32 0.2, %v637_v54  ;;  %vm867_vm6 = vcmp.gt.f32.partialorder %v765_v55, 0.0  ;;  %v650_v6 = vadd.f32 %v1270_v62, %v1481_v35 }
 0x10f   : > { %1056 = vst [vmem:[%s1491_s30 + $0x180] sm:$0xff] %v992_v59  ;;  %v931_v1 = vmul.f32 0.2, %v765_v55  ;;  %vm833_vm7 = vcmp.gt.f32.partialorder %v629_v60, 0.0  ;;  %v897_v2 = vmul.f32 0.2, %v629_v60  ;;  %v778_v7 = vadd.f32 %v1302_v63, %v1481_v35 }
 0x110   : > { %vm865_vm8 = vcmp.gt.f32.partialorder %v757_v61, 0.0  ;;  %v929_v3 = vmul.f32 0.2, %v757_v61  ;;  %v963_v4 = vsel %vm835_vm5, %v637_v54, %v899_v0  ;;  %v641_v8 = vpop.f32.mrb[21].mxu0  ;;  %v769_v9 = vpop.f32.mrb[21].mxu1  ;;  %vm838_vm9 = vcmp.gt.f32.partialorder %v650_v6, 0.0 }
 0x111   : > { %v995_v5 = vsel %vm867_vm6, %v765_v55, %v931_v1  ;;  %1027 = vst [vmem:[%s1491_s30 + $0x98] sm:$0xff] %v963_v4  ;;  %v961_v10 = vsel %vm833_vm7, %v629_v60, %v897_v2  ;;  %v642_v12 = vadd.f32 %v1481_v35, %v641_v8  ;;  %v770_v13 = vadd.f32 %v1481_v35, %v769_v9  ;;  %v1271_v14 = vpop.f32.mrb[22].mxu0  ;;  %v1303_v15 = vpop.f32.mrb[22].mxu1 }
 0x112   : > { %1059 = vst [vmem:[%s1491_s30 + $0x198] sm:$0xff] %v995_v5  ;;  %v993_v11 = vsel %vm865_vm8, %v757_v61, %v929_v3  ;;  %1025 = vst [vmem:[%s1491_s30 + $0x88] sm:$0xff] %v961_v10  ;;  %v902_v16 = vmul.f32 0.2, %v650_v6  ;;  %vm870_vm10 = vcmp.gt.f32.partialorder %v778_v7, 0.0  ;;  %v653_v22 = vadd.f32 %v1271_v14, %v1481_v35  ;;  %v644_v24 = vpop.f32.mrb[23].mxu0 }
 0x113   : > { %1057 = vst [vmem:[%s1491_s30 + $0x188] sm:$0xff] %v993_v11  ;;  %v934_v17 = vmul.f32 0.2, %v778_v7  ;;  %vm836_vm11 = vcmp.gt.f32.partialorder %v642_v12, 0.0  ;;  %v900_v18 = vmul.f32 0.2, %v642_v12  ;;  %v781_v23 = vadd.f32 %v1303_v15, %v1481_v35 }
 0x114   : > { %vm868_vm12 = vcmp.gt.f32.partialorder %v770_v13, 0.0  ;;  %v932_v19 = vmul.f32 0.2, %v770_v13  ;;  %v966_v20 = vsel %vm838_vm9, %v650_v6, %v902_v16  ;;  %v772_v25 = vpop.f32.mrb[23].mxu1  ;;  %v645_v28 = vadd.f32 %v1481_v35, %v644_v24 }
 0x115   : > { %v998_v21 = vsel %vm870_vm10, %v778_v7, %v934_v17  ;;  %1030 = vst [vmem:[%s1491_s30 + $0xb0] sm:$0xff] %v966_v20  ;;  %v964_v26 = vsel %vm836_vm11, %v642_v12, %v900_v18  ;;  %v773_v29 = vadd.f32 %v1481_v35, %v772_v25  ;;  %v1274_v30 = vpop.f32.mrb[24].mxu0  ;;  %vm839_vm13 = vcmp.gt.f32.partialorder %v653_v22, 0.0 }
 0x116   : > { %1062 = vst [vmem:[%s1491_s30 + $0x1b0] sm:$0xff] %v998_v21  ;;  %v996_v27 = vsel %vm868_vm12, %v770_v13, %v932_v19  ;;  %v1306_v31 = vpop.f32.mrb[24].mxu1  ;;  %1028 = vst [vmem:[%s1491_s30 + $0xa0] sm:$0xff] %v964_v26  ;;  %v903_v32 = vmul.f32 0.2, %v653_v22  ;;  %vm871_vm14 = vcmp.gt.f32.partialorder %v781_v23, 0.0  ;;  %v666_v39 = vadd.f32 %v1274_v30, %v1481_v35 }
 0x117   : > { %1060 = vst [vmem:[%s1491_s30 + $0x1a0] sm:$0xff] %v996_v27  ;;  %v935_v33 = vmul.f32 0.2, %v781_v23  ;;  %vm837_vm15 = vcmp.gt.f32.partialorder %v645_v28, 0.0  ;;  %v901_v34 = vmul.f32 0.2, %v645_v28  ;;  %v794_v40 = vadd.f32 %v1306_v31, %v1481_v35 }
 0x118   : > { %vm869_vm0 = vcmp.gt.f32.partialorder %v773_v29, 0.0  ;;  %v933_v36 = vmul.f32 0.2, %v773_v29  ;;  %v967_v37 = vsel %vm839_vm13, %v653_v22, %v903_v32  ;;  %v657_v41 = vpop.f32.mrb[25].mxu0  ;;  %v785_v42 = vpop.f32.mrb[25].mxu1  ;;  %vm842_vm1 = vcmp.gt.f32.partialorder %v666_v39, 0.0 }
 0x119   : > { %v999_v38 = vsel %vm871_vm14, %v781_v23, %v935_v33  ;;  %1031 = vst [vmem:[%s1491_s30 + $0xb8] sm:$0xff] %v967_v37  ;;  %v965_v43 = vsel %vm837_vm15, %v645_v28, %v901_v34  ;;  %v658_v45 = vadd.f32 %v1481_v35, %v657_v41  ;;  %v786_v46 = vadd.f32 %v1481_v35, %v785_v42  ;;  %v1275_v47 = vpop.f32.mrb[26].mxu0  ;;  %v1307_v48 = vpop.f32.mrb[26].mxu1 }
 0x11a   : > { %1063 = vst [vmem:[%s1491_s30 + $0x1b8] sm:$0xff] %v999_v38  ;;  %v997_v44 = vsel %vm869_vm0, %v773_v29, %v933_v36  ;;  %1029 = vst [vmem:[%s1491_s30 + $0xa8] sm:$0xff] %v965_v43  ;;  %v906_v49 = vmul.f32 0.2, %v666_v39  ;;  %vm874_vm2 = vcmp.gt.f32.partialorder %v794_v40, 0.0  ;;  %v669_v55 = vadd.f32 %v1275_v47, %v1481_v35  ;;  %v660_v57 = vpop.f32.mrb[27].mxu0 }
 0x11b   : > { %1061 = vst [vmem:[%s1491_s30 + $0x1a8] sm:$0xff] %v997_v44  ;;  %v938_v50 = vmul.f32 0.2, %v794_v40  ;;  %vm840_vm3 = vcmp.gt.f32.partialorder %v658_v45, 0.0  ;;  %v904_v51 = vmul.f32 0.2, %v658_v45  ;;  %v797_v56 = vadd.f32 %v1307_v48, %v1481_v35 }
 0x11c   : > { %vm872_vm4 = vcmp.gt.f32.partialorder %v786_v46, 0.0  ;;  %v936_v52 = vmul.f32 0.2, %v786_v46  ;;  %v970_v53 = vsel %vm842_vm1, %v666_v39, %v906_v49  ;;  %v788_v58 = vpop.f32.mrb[27].mxu1  ;;  %v661_v61 = vadd.f32 %v1481_v35, %v660_v57 }
 0x11d   : > { %v1002_v54 = vsel %vm874_vm2, %v794_v40, %v938_v50  ;;  %1034 = vst [vmem:[%s1491_s30 + $0xd0] sm:$0xff] %v970_v53  ;;  %v968_v59 = vsel %vm840_vm3, %v658_v45, %v904_v51  ;;  %v789_v62 = vadd.f32 %v1481_v35, %v788_v58  ;;  %v1278_v63 = vpop.f32.mrb[28].mxu0  ;;  %vm843_vm5 = vcmp.gt.f32.partialorder %v669_v55, 0.0 }
 0x11e   : > { %1066 = vst [vmem:[%s1491_s30 + $0x1d0] sm:$0xff] %v1002_v54  ;;  %v1000_v60 = vsel %vm872_vm4, %v786_v46, %v936_v52  ;;  %v1310_v0 = vpop.f32.mrb[28].mxu1  ;;  %1032 = vst [vmem:[%s1491_s30 + $0xc0] sm:$0xff] %v968_v59  ;;  %v907_v1 = vmul.f32 0.2, %v669_v55  ;;  %vm875_vm6 = vcmp.gt.f32.partialorder %v797_v56, 0.0  ;;  %v682_v7 = vadd.f32 %v1278_v63, %v1481_v35 }
 0x11f   : > { %1064 = vst [vmem:[%s1491_s30 + $0x1c0] sm:$0xff] %v1000_v60  ;;  %v939_v2 = vmul.f32 0.2, %v797_v56  ;;  %vm841_vm7 = vcmp.gt.f32.partialorder %v661_v61, 0.0  ;;  %v905_v3 = vmul.f32 0.2, %v661_v61  ;;  %v810_v8 = vadd.f32 %v1310_v0, %v1481_v35 }
 0x120   : > { %vm873_vm8 = vcmp.gt.f32.partialorder %v789_v62, 0.0  ;;  %v937_v4 = vmul.f32 0.2, %v789_v62  ;;  %v971_v5 = vsel %vm843_vm5, %v669_v55, %v907_v1  ;;  %v673_v9 = vpop.f32.mrb[29].mxu0  ;;  %v801_v10 = vpop.f32.mrb[29].mxu1  ;;  %vm846_vm9 = vcmp.gt.f32.partialorder %v682_v7, 0.0 }
 0x121   : > { %v1003_v6 = vsel %vm875_vm6, %v797_v56, %v939_v2  ;;  %1035 = vst [vmem:[%s1491_s30 + $0xd8] sm:$0xff] %v971_v5  ;;  %v969_v11 = vsel %vm841_vm7, %v661_v61, %v905_v3  ;;  %v674_v13 = vadd.f32 %v1481_v35, %v673_v9  ;;  %v802_v14 = vadd.f32 %v1481_v35, %v801_v10  ;;  %v1279_v15 = vpop.f32.mrb[30].mxu0  ;;  %v1311_v16 = vpop.f32.mrb[30].mxu1 }
 0x122   : > { %1067 = vst [vmem:[%s1491_s30 + $0x1d8] sm:$0xff] %v1003_v6  ;;  %v1001_v12 = vsel %vm873_vm8, %v789_v62, %v937_v4  ;;  %1033 = vst [vmem:[%s1491_s30 + $0xc8] sm:$0xff] %v969_v11  ;;  %v910_v17 = vmul.f32 0.2, %v682_v7  ;;  %vm878_vm10 = vcmp.gt.f32.partialorder %v810_v8, 0.0  ;;  %v685_v23 = vadd.f32 %v1279_v15, %v1481_v35  ;;  %v676_v25 = vpop.f32.mrb[31].mxu0 }
 0x123   : > { %1065 = vst [vmem:[%s1491_s30 + $0x1c8] sm:$0xff] %v1001_v12  ;;  %v942_v18 = vmul.f32 0.2, %v810_v8  ;;  %vm844_vm11 = vcmp.gt.f32.partialorder %v674_v13, 0.0  ;;  %v908_v19 = vmul.f32 0.2, %v674_v13  ;;  %v813_v24 = vadd.f32 %v1311_v16, %v1481_v35 }
 0x124   : > { %vm876_vm12 = vcmp.gt.f32.partialorder %v802_v14, 0.0  ;;  %v940_v20 = vmul.f32 0.2, %v802_v14  ;;  %v974_v21 = vsel %vm846_vm9, %v682_v7, %v910_v17  ;;  %v804_v26 = vpop.f32.mrb[31].mxu1  ;;  %v677_v29 = vadd.f32 %v1481_v35, %v676_v25 }
 0x125   : > { %v1006_v22 = vsel %vm878_vm10, %v810_v8, %v942_v18  ;;  %1038 = vst [vmem:[%s1491_s30 + $0xf0] sm:$0xff] %v974_v21  ;;  %v972_v27 = vsel %vm844_vm11, %v674_v13, %v908_v19  ;;  %v805_v30 = vadd.f32 %v1481_v35, %v804_v26  ;;  %vm847_vm13 = vcmp.gt.f32.partialorder %v685_v23, 0.0 }
 0x126   : > { %1070 = vst [vmem:[%s1491_s30 + $0x1f0] sm:$0xff] %v1006_v22  ;;  %v1004_v28 = vsel %vm876_vm12, %v802_v14, %v940_v20  ;;  %1036 = vst [vmem:[%s1491_s30 + $0xe0] sm:$0xff] %v972_v27  ;;  %v911_v31 = vmul.f32 0.2, %v685_v23  ;;  %vm879_vm14 = vcmp.gt.f32.partialorder %v813_v24, 0.0  ;;  %vm845_vm15 = vcmp.gt.f32.partialorder %v677_v29, 0.0 }
 0x127   : > { %1068 = vst [vmem:[%s1491_s30 + $0x1e0] sm:$0xff] %v1004_v28  ;;  %v943_v32 = vmul.f32 0.2, %v813_v24  ;;  %v909_v33 = vmul.f32 0.2, %v677_v29  ;;  %vm877_vm0 = vcmp.gt.f32.partialorder %v805_v30, 0.0 }
 0x128   : > { %v941_v34 = vmul.f32 0.2, %v805_v30  ;;  %v975_v36 = vsel %vm847_vm13, %v685_v23, %v911_v31 }
 0x129   : > { %v1007_v37 = vsel %vm879_vm14, %v813_v24, %v943_v32  ;;  %1039 = vst [vmem:[%s1491_s30 + $0xf8] sm:$0xff] %v975_v36  ;;  %v973_v38 = vsel %vm845_vm15, %v677_v29, %v909_v33 }
 0x12a   : > { %1071 = vst [vmem:[%s1491_s30 + $0x1f8] sm:$0xff] %v1007_v37  ;;  %v1005_v39 = vsel %vm877_vm0, %v805_v30, %v941_v34  ;;  %1037 = vst [vmem:[%s1491_s30 + $0xe8] sm:$0xff] %v973_v38 }
 0x12b   : > { %1069 = vst [vmem:[%s1491_s30 + $0x1e8] sm:$0xff] %v1005_v39 }
 0x12c PF: > { %s13_s12 = sadd.s32 1, %s1367_s12  }
 0x12d   : > { %p10_p4 = scmp.ge.s32.totalorder %s13_s12, 6  }
 0x12f   :  { %12 = sbr.rel (!%p10_p4) target bundleno = 1 (0x1), region = 62 }

// kernel: d1_forward.6
= control target key start
LH: loop header
LB: loop body
LE: loop exit
PB: predicated region body
PF: predicated region fallthrough
CT: control target
= control target key end

     0   :  { %vm409_vm0 = vcmask 523264   ;;  %s4271_s1 = inlined_call_operand.vmem [shape: bf16[64,128], index: 1, kind: input, shape index: {}]   ;;  %s4272_s0 = inlined_call_operand.vmem [shape: bf16[512,64], index: 0, kind: input, shape index: {}]   ;;  %s4273_s2 = inlined_call_operand.vmem [shape: f32[1,128], index: 2, kind: input, shape index: {}]   ;;  %s4274_s3 = inlined_call_operand.vmem [shape: f32[1,128], index: 3, kind: input, shape index: {}]   ;;  %s4275_s4 = inlined_call_operand.vmem [shape: f32[1,128], index: 4, kind: input, shape index: {}]   ;;  %s4276_s5 = inlined_call_operand.vmem [shape: f32[512,128], index: 5, kind: output, shape index: {}]  }
   0x1   :  { %v1985_v0 = vld [vmem:[%s4271_s1] sm:$0xff]   ;;  %v1986_v1 = vld [vmem:[%s4271_s1 + $0x8] sm:$0xff]   ;;  %v1987_v2 = vld [vmem:[%s4271_s1 + $0x10] sm:$0xff]  }
   0x2   :  { %1905 = vmatprep.subr.bf16.mxu0 %v1985_v0  ;;  %1977 = vmatprep.subr.bf16.mxu1 %v1985_v0  ;;  %v1989_v3 = vld [vmem:[%s4272_s0] sm:$0xff]   ;;  %v1988_v4 = vld [vmem:[%s4271_s1 + $0x18] sm:$0xff]   ;;  %v1990_v5 = vld [vmem:[%s4272_s0 + $0x8] sm:$0xff]  }
   0x3   :  { %1906 = vmatpush3.bf16.msra.mxu0 %v1985_v0  ;;  %1981 = vmatpush3.bf16.msra.mxu1 %v1985_v0  ;;  %v1991_v6 = vld [vmem:[%s4272_s0 + $0x10] sm:$0xff]   ;;  %v1992_v7 = vld [vmem:[%s4272_s0 + $0x18] sm:$0xff]   ;;  %v2005_v8 = vld [vmem:[%s4272_s0 + $0x80] sm:$0xff]  }
   0x4   :  { %1907 = vmatprep.subr.bf16.mxu0 %v1986_v1  ;;  %1978 = vmatprep.subr.bf16.mxu1 %v1986_v1  ;;  %v2006_v9 = vld [vmem:[%s4272_s0 + $0x88] sm:$0xff]   ;;  %v2007_v10 = vld [vmem:[%s4272_s0 + $0x90] sm:$0xff]   ;;  %v1993_v11 = vld [vmem:[%s4272_s0 + $0x20] sm:$0xff]  }
   0x5   :  { %1913 = vmatprep.mubr.msk.bf16.mxu0 %vm409_vm0, %v1989_v3  ;;  %1945 = vmatprep.mubr.msk.bf16.mxu1 %vm409_vm0, %v2005_v8  ;;  %v2008_v12 = vld [vmem:[%s4272_s0 + $0x98] sm:$0xff]   ;;  %v2009_v13 = vld [vmem:[%s4272_s0 + $0xa0] sm:$0xff]   ;;  %v1994_v14 = vld [vmem:[%s4272_s0 + $0x28] sm:$0xff]  }
   0x6   :  { %v1995_v15 = vld [vmem:[%s4272_s0 + $0x30] sm:$0xff]   ;;  %v2010_v16 = vld [vmem:[%s4272_s0 + $0xa8] sm:$0xff]   ;;  %v1996_v18 = vld [vmem:[%s4272_s0 + $0x38] sm:$0xff]  }
   0x7   :  { %1908 = vmatpush3.bf16.msra.mxu0 %v1986_v1  ;;  %1982 = vmatpush3.bf16.msra.mxu1 %v1986_v1  ;;  %v2011_v17 = vld [vmem:[%s4272_s0 + $0xb0] sm:$0xff]   ;;  %v1997_v19 = vld [vmem:[%s4272_s0 + $0x40] sm:$0xff]   ;;  %v2012_v20 = vld [vmem:[%s4272_s0 + $0xb8] sm:$0xff]  }
   0x8   :  { %1909 = vmatprep.subr.bf16.mxu0 %v1987_v2  ;;  %1979 = vmatprep.subr.bf16.mxu1 %v1987_v2  ;;  %v2013_v21 = vld [vmem:[%s4272_s0 + $0xc0] sm:$0xff]   ;;  %v1998_v22 = vld [vmem:[%s4272_s0 + $0x48] sm:$0xff]   ;;  %v1999_v23 = vld [vmem:[%s4272_s0 + $0x50] sm:$0xff]  }
   0x9   :  { %v2014_v24 = vld [vmem:[%s4272_s0 + $0xc8] sm:$0xff]   ;;  %v2015_v25 = vld [vmem:[%s4272_s0 + $0xd0] sm:$0xff]   ;;  %v2000_v26 = vld [vmem:[%s4272_s0 + $0x58] sm:$0xff]  }
   0xa   :  { %v2001_v27 = vld [vmem:[%s4272_s0 + $0x60] sm:$0xff]   ;;  %v2016_v28 = vld [vmem:[%s4272_s0 + $0xd8] sm:$0xff]   ;;  %v2002_v30 = vld [vmem:[%s4272_s0 + $0x68] sm:$0xff]  }
   0xb   :  { %1910 = vmatpush3.bf16.msra.mxu0 %v1987_v2  ;;  %1983 = vmatpush3.bf16.msra.mxu1 %v1987_v2  ;;  %v2017_v29 = vld [vmem:[%s4272_s0 + $0xe0] sm:$0xff]   ;;  %v2003_v31 = vld [vmem:[%s4272_s0 + $0x70] sm:$0xff]   ;;  %v2018_v32 = vld [vmem:[%s4272_s0 + $0xe8] sm:$0xff]  }
   0xc   :  { %1911 = vmatprep.subr.bf16.mxu0 %v1988_v4  ;;  %1980 = vmatprep.subr.bf16.mxu1 %v1988_v4  ;;  %v2019_v33 = vld [vmem:[%s4272_s0 + $0xf0] sm:$0xff]   ;;  %v2004_v34 = vld [vmem:[%s4272_s0 + $0x78] sm:$0xff]   ;;  %v2196_v37 = vld [vmem:[%s4273_s2] ss:$0 sm:$0xff] }
   0xd   :  { %v2020_v35 = vld [vmem:[%s4272_s0 + $0xf8] sm:$0xff]  }
   0xf   :  { %1912 = vmatpush3.bf16.msra.mxu0 %v1988_v4  ;;  %1984 = vmatpush3.bf16.msra.mxu1 %v1988_v4 }
  0x12   :  { %1914 = vmatmul.mubr.msk.bf16.vlgmr.msra.gmra.mrb[0].mxu0 %vm409_vm0, %v1990_v5  ;;  %1946 = vmatmul.mubr.msk.bf16.vlgmr.msra.gmra.mrb[0].mxu1 %vm409_vm0, %v2006_v9 }
  0x13   :  { %1917 = vmatprep.mubr.msk.bf16.mxu0 %vm409_vm0, %v1991_v6  ;;  %1949 = vmatprep.mubr.msk.bf16.mxu1 %vm409_vm0, %v2007_v10 }
  0x1a   :  { %1918 = vmatmul.mubr.msk.bf16.gmra.mrb[4].mxu0 %vm409_vm0, %v1992_v7  ;;  %1950 = vmatmul.mubr.msk.bf16.gmra.mrb[4].mxu1 %vm409_vm0, %v2008_v12 }
  0x1b   :  { %1921 = vmatprep.mubr.msk.bf16.mxu0 %vm409_vm0, %v1993_v11  ;;  %1953 = vmatprep.mubr.msk.bf16.mxu1 %vm409_vm0, %v2009_v13 }
  0x22   :  { %1922 = vmatmul.mubr.msk.bf16.gmra.mrb[8].mxu0 %vm409_vm0, %v1994_v14  ;;  %1954 = vmatmul.mubr.msk.bf16.gmra.mrb[8].mxu1 %vm409_vm0, %v2010_v16 }
  0x23   :  { %1925 = vmatprep.mubr.msk.bf16.mxu0 %vm409_vm0, %v1995_v15  ;;  %1957 = vmatprep.mubr.msk.bf16.mxu1 %vm409_vm0, %v2011_v17 }
  0x2a   :  { %1926 = vmatmul.mubr.msk.bf16.gmra.mrb[12].mxu0 %vm409_vm0, %v1996_v18  ;;  %1958 = vmatmul.mubr.msk.bf16.gmra.mrb[12].mxu1 %vm409_vm0, %v2012_v20 }
  0x2b   :  { %1929 = vmatprep.mubr.msk.bf16.mxu0 %vm409_vm0, %v1997_v19  ;;  %1961 = vmatprep.mubr.msk.bf16.mxu1 %vm409_vm0, %v2013_v21 }
  0x32   :  { %1930 = vmatmul.mubr.msk.bf16.gmra.mrb[16].mxu0 %vm409_vm0, %v1998_v22  ;;  %1962 = vmatmul.mubr.msk.bf16.gmra.mrb[16].mxu1 %vm409_vm0, %v2014_v24 }
  0x33   :  { %1933 = vmatprep.mubr.msk.bf16.mxu0 %vm409_vm0, %v1999_v23  ;;  %1965 = vmatprep.mubr.msk.bf16.mxu1 %vm409_vm0, %v2015_v25 }
  0x3a   :  { %1934 = vmatmul.mubr.msk.bf16.gmra.mrb[20].mxu0 %vm409_vm0, %v2000_v26  ;;  %1966 = vmatmul.mubr.msk.bf16.gmra.mrb[20].mxu1 %vm409_vm0, %v2016_v28 }
  0x3b   :  { %1937 = vmatprep.mubr.msk.bf16.mxu0 %vm409_vm0, %v2001_v27  ;;  %1969 = vmatprep.mubr.msk.bf16.mxu1 %vm409_vm0, %v2017_v29 }
  0x42   :  { %1938 = vmatmul.mubr.msk.bf16.gmra.mrb[24].mxu0 %vm409_vm0, %v2002_v30  ;;  %1970 = vmatmul.mubr.msk.bf16.gmra.mrb[24].mxu1 %vm409_vm0, %v2018_v32 }
  0x43   :  { %1941 = vmatprep.mubr.msk.bf16.mxu0 %vm409_vm0, %v2003_v31  ;;  %1973 = vmatprep.mubr.msk.bf16.mxu1 %vm409_vm0, %v2019_v33 }
  0x4a   :  { %1942 = vmatmul.mubr.msk.bf16.gmra.mrb[28].mxu0 %vm409_vm0, %v2004_v34  ;;  %1974 = vmatmul.mubr.msk.bf16.gmra.mrb[28].mxu1 %vm409_vm0, %v2020_v35 }
  0xe5   :  { %v1915_v36 = vpop.f32.mrb[0].mxu0  ;;  %v1947_v43 = vpop.f32.mrb[0].mxu1 }
  0xe6   :  { %v540_v38 = vpop.f32.mrb[1].mxu0  ;;  %v2205_v44 = vadd.f32 %v1915_v36, %v2196_v37  ;;  %v2210_v46 = vadd.f32 %v1947_v43, %v2196_v37  ;;  %v2212_v47 = vpop.f32.mrb[1].mxu1 }
  0xe7   :  { %v1916_v39 = vpop.f32.mrb[2].mxu0  ;;  %v2199_v41 = vadd.f32 %v2196_v37, %v540_v38  ;;  %v1948_v48 = vpop.f32.mrb[2].mxu1 }
  0xe8   :  { %v543_v40 = vpop.f32.mrb[3].mxu0  ;;  %v2215_v49 = vadd.f32 %v1916_v39, %v2196_v37  ;;  %v2219_v52 = vadd.f32 %v1948_v48, %v2196_v37  ;;  %v671_v53 = vpop.f32.mrb[3].mxu1 }
  0xe9   :  { %v2202_v42 = vadd.f32 %v2196_v37, %v543_v40  ;;  %v2222_v55 = vadd.f32 %v2196_v37, %v671_v53 }
  0xeb   :  { %v1061_v45 = vadd.f32 %v2202_v42, %v2199_v41 }
  0xed   :  { %v1062_v50 = vadd.f32 %v1061_v45, %v2205_v44  ;;  %v1919_v51 = vpop.f32.mrb[4].mxu0  ;;  %v1951_v62 = vpop.f32.mrb[4].mxu1 }
  0xee   :  { %v556_v54 = vpop.f32.mrb[5].mxu0  ;;  %v2233_v63 = vadd.f32 %v1919_v51, %v2196_v37  ;;  %v2237_v1 = vadd.f32 %v1951_v62, %v2196_v37  ;;  %v684_v2 = vpop.f32.mrb[5].mxu1 }
  0xef   :  { %v2225_v56 = vadd.f32 %v2196_v37, %v556_v54  ;;  %v1063_v57 = vadd.f32 %v1062_v50, %v2215_v49  ;;  %v1920_v58 = vpop.f32.mrb[6].mxu0  ;;  %v2240_v3 = vadd.f32 %v2196_v37, %v684_v2  ;;  %v1952_v4 = vpop.f32.mrb[6].mxu1 }
  0xf0   :  { %v559_v59 = vpop.f32.mrb[7].mxu0  ;;  %v2243_v5 = vadd.f32 %v1920_v58, %v2196_v37  ;;  %v2247_v8 = vadd.f32 %v1952_v4, %v2196_v37  ;;  %v687_v9 = vpop.f32.mrb[7].mxu1 }
  0xf1   :  { %v1064_v60 = vadd.f32 %v1063_v57, %v2225_v56  ;;  %v2230_v61 = vadd.f32 %v2196_v37, %v559_v59  ;;  %v2250_v11 = vadd.f32 %v2196_v37, %v687_v9 }
  0xf3   :  { %v1065_v0 = vadd.f32 %v1064_v60, %v2230_v61 }
  0xf5   :  { %v1066_v6 = vadd.f32 %v1065_v0, %v2233_v63  ;;  %v1923_v7 = vpop.f32.mrb[8].mxu0  ;;  %v1955_v18 = vpop.f32.mrb[8].mxu1 }
  0xf6   :  { %v572_v10 = vpop.f32.mrb[9].mxu0  ;;  %v2261_v19 = vadd.f32 %v1923_v7, %v2196_v37  ;;  %v2265_v21 = vadd.f32 %v1955_v18, %v2196_v37  ;;  %v700_v22 = vpop.f32.mrb[9].mxu1 }
  0xf7   :  { %v2253_v12 = vadd.f32 %v2196_v37, %v572_v10  ;;  %v1067_v13 = vadd.f32 %v1066_v6, %v2243_v5  ;;  %v1924_v14 = vpop.f32.mrb[10].mxu0  ;;  %v2268_v23 = vadd.f32 %v2196_v37, %v700_v22  ;;  %v1956_v24 = vpop.f32.mrb[10].mxu1 }
  0xf8   :  { %v575_v15 = vpop.f32.mrb[11].mxu0  ;;  %4334 = vst [vmem:[#allocation3_spill] sm:$0xff] %v2265_v21  ;;  %v2271_v25 = vadd.f32 %v1924_v14, %v2196_v37  ;;  %v2275_v28 = vadd.f32 %v1956_v24, %v2196_v37  ;;  %v703_v29 = vpop.f32.mrb[11].mxu1 }
  0xf9   :  { %v1068_v16 = vadd.f32 %v1067_v13, %v2253_v12  ;;  %v2258_v17 = vadd.f32 %v2196_v37, %v575_v15  ;;  %v2278_v31 = vadd.f32 %v2196_v37, %v703_v29 }
  0xfa   :  { %4335 = vst [vmem:[#allocation4_spill] sm:$0xff] %v2275_v28 }
  0xfb   :  { %v1069_v20 = vadd.f32 %v1068_v16, %v2258_v17  ;;  %4336 = vst [vmem:[#allocation5_spill] sm:$0xff] %v2278_v31 }
  0xfd   :  { %v1070_v26 = vadd.f32 %v1069_v20, %v2261_v19  ;;  %v1927_v27 = vpop.f32.mrb[12].mxu0  ;;  %v1959_v39 = vpop.f32.mrb[12].mxu1 }
  0xfe   :  { %v588_v30 = vpop.f32.mrb[13].mxu0  ;;  %v2289_v40 = vadd.f32 %v1927_v27, %v2196_v37  ;;  %v2293_v45 = vadd.f32 %v1959_v39, %v2196_v37  ;;  %v716_v48 = vpop.f32.mrb[13].mxu1 }
  0xff   :  { %v2281_v32 = vadd.f32 %v2196_v37, %v588_v30  ;;  %v1071_v33 = vadd.f32 %v1070_v26, %v2271_v25  ;;  %v1928_v34 = vpop.f32.mrb[14].mxu0  ;;  %v2296_v50 = vadd.f32 %v2196_v37, %v716_v48  ;;  %v1960_v51 = vpop.f32.mrb[14].mxu1 }
 0x100   :  { %v591_v35 = vpop.f32.mrb[15].mxu0  ;;  %v2299_v53 = vadd.f32 %v1928_v34, %v2196_v37  ;;  %v2303_v58 = vadd.f32 %v1960_v51, %v2196_v37  ;;  %v719_v59 = vpop.f32.mrb[15].mxu1 }
 0x101   :  { %v1072_v36 = vadd.f32 %v1071_v33, %v2281_v32  ;;  %v2286_v38 = vadd.f32 %v2196_v37, %v591_v35  ;;  %4337 = vst [vmem:[#allocation6_spill] sm:$0xff] %v2296_v50  ;;  %v2306_v62 = vadd.f32 %v2196_v37, %v719_v59 }
 0x103   :  { %v1073_v43 = vadd.f32 %v1072_v36, %v2286_v38 }
 0x105   :  { %v1074_v54 = vadd.f32 %v1073_v43, %v2289_v40  ;;  %v1931_v57 = vpop.f32.mrb[16].mxu0  ;;  %v1963_v10 = vpop.f32.mrb[16].mxu1 }
 0x106   :  { %v604_v60 = vpop.f32.mrb[17].mxu0  ;;  %v2317_v13 = vadd.f32 %v1931_v57, %v2196_v37  ;;  %v2321_v15 = vadd.f32 %v1963_v10, %v2196_v37  ;;  %v732_v16 = vpop.f32.mrb[17].mxu1 }
 0x107   :  { %v2309_v0 = vadd.f32 %v2196_v37, %v604_v60  ;;  %v1075_v2 = vadd.f32 %v1074_v54, %v2299_v53  ;;  %v1932_v4 = vpop.f32.mrb[18].mxu0  ;;  %v2324_v18 = vadd.f32 %v2196_v37, %v732_v16  ;;  %v1964_v20 = vpop.f32.mrb[18].mxu1 }
 0x108   :  { %v607_v6 = vpop.f32.mrb[19].mxu0  ;;  %v2327_v22 = vadd.f32 %v1932_v4, %v2196_v37  ;;  %v2331_v27 = vadd.f32 %v1964_v20, %v2196_v37  ;;  %v735_v29 = vpop.f32.mrb[19].mxu1 }
 0x109   :  { %v1076_v7 = vadd.f32 %v1075_v2, %v2309_v0  ;;  %v2314_v9 = vadd.f32 %v2196_v37, %v607_v6  ;;  %v2334_v33 = vadd.f32 %v2196_v37, %v735_v29 }
 0x10a   :  { %4338 = vst [vmem:[#allocation7_spill] sm:$0xff] %v2327_v22 }
 0x10b   :  { %v1077_v14 = vadd.f32 %v1076_v7, %v2314_v9 }
 0x10d   :  { %v1078_v24 = vadd.f32 %v1077_v14, %v2317_v13  ;;  %v1935_v26 = vpop.f32.mrb[20].mxu0  ;;  %v1967_v51 = vpop.f32.mrb[20].mxu1 }
 0x10e   :  { %v620_v30 = vpop.f32.mrb[21].mxu0  ;;  %v2345_v54 = vadd.f32 %v1935_v26, %v2196_v37  ;;  %v2349_v59 = vadd.f32 %v1967_v51, %v2196_v37  ;;  %v748_v60 = vpop.f32.mrb[21].mxu1 }
 0x10f   :  { %v2337_v34 = vadd.f32 %v2196_v37, %v620_v30  ;;  %v1079_v35 = vadd.f32 %v1078_v24, %v2327_v22  ;;  %v1936_v36 = vpop.f32.mrb[22].mxu0  ;;  %v2352_v2 = vadd.f32 %v2196_v37, %v748_v60  ;;  %v1968_v4 = vpop.f32.mrb[22].mxu1 }
 0x110   :  { %v623_v39 = vpop.f32.mrb[23].mxu0  ;;  %4341 = vst [vmem:[#allocation10_spill] sm:$0xff] %v2345_v54  ;;  %v2355_v6 = vadd.f32 %v1936_v36, %v2196_v37  ;;  %v2359_v14 = vadd.f32 %v1968_v4, %v2196_v37  ;;  %v751_v16 = vpop.f32.mrb[23].mxu1 }
 0x111   :  { %4339 = vst [vmem:[#allocation8_spill] sm:$0xff] %v2337_v34  ;;  %v1080_v43 = vadd.f32 %v1079_v35, %v2337_v34  ;;  %v2342_v48 = vadd.f32 %v2196_v37, %v623_v39  ;;  %v2362_v24 = vadd.f32 %v2196_v37, %v751_v16 }
 0x112   :  { %4342 = vst [vmem:[#allocation11_spill] sm:$0xff] %v2355_v6 }
 0x113   :  { %4340 = vst [vmem:[#allocation9_spill] sm:$0xff] %v2342_v48  ;;  %v1081_v57 = vadd.f32 %v1080_v43, %v2342_v48 }
 0x115   :  { %v1082_v7 = vadd.f32 %v1081_v57, %v2345_v54  ;;  %v1939_v10 = vpop.f32.mrb[24].mxu0  ;;  %v1971_v43 = vpop.f32.mrb[24].mxu1 }
 0x116   :  { %v636_v20 = vpop.f32.mrb[25].mxu0  ;;  %v2373_v51 = vadd.f32 %v1939_v10, %v2196_v37  ;;  %v2377_v60 = vadd.f32 %v1971_v43, %v2196_v37  ;;  %v764_v4 = vpop.f32.mrb[25].mxu1 }
 0x117   :  { %v2365_v26 = vadd.f32 %v2196_v37, %v636_v20  ;;  %v1083_v29 = vadd.f32 %v1082_v7, %v2355_v6  ;;  %v1940_v30 = vpop.f32.mrb[26].mxu0  ;;  %v2380_v16 = vadd.f32 %v2196_v37, %v764_v4  ;;  %v1972_v7 = vpop.f32.mrb[26].mxu1 }
 0x118   :  { %v639_v35 = vpop.f32.mrb[27].mxu0  ;;  %4345 = vst [vmem:[#allocation14_spill] sm:$0xff] %v2373_v51  ;;  %v2383_v20 = vadd.f32 %v1940_v30, %v2196_v37  ;;  %v767_v10 = vpop.f32.mrb[27].mxu1 }
 0x119   :  { %4343 = vst [vmem:[#allocation12_spill] sm:$0xff] %v2365_v26  ;;  %v1084_v36 = vadd.f32 %v1083_v29, %v2365_v26  ;;  %v2370_v39 = vadd.f32 %v2196_v37, %v639_v35  ;;  %v2387_v26 = vadd.f32 %v1972_v7, %v2196_v37 }
 0x11a   :  { %4346 = vst [vmem:[#allocation15_spill] sm:$0xff] %v2383_v20 }
 0x11b   :  { %4344 = vst [vmem:[#allocation13_spill] sm:$0xff] %v2370_v39  ;;  %v1085_v57 = vadd.f32 %v1084_v36, %v2370_v39  ;;  %v2390_v36 = vadd.f32 %v2196_v37, %v767_v10 }
 0x11d   :  { %v1086_v29 = vadd.f32 %v1085_v57, %v2373_v51  ;;  %v1943_v35 = vpop.f32.mrb[28].mxu0  ;;  %v1975_v51 = vpop.f32.mrb[28].mxu1 }
 0x11e   :  { %v652_v6 = vpop.f32.mrb[29].mxu0  ;;  %v2401_v7 = vadd.f32 %v1943_v35, %v2196_v37  ;;  %v2405_v10 = vadd.f32 %v1975_v51, %v2196_v37 }
 0x11f   :  { %v2393_v43 = vadd.f32 %v2196_v37, %v652_v6  ;;  %v1087_v4 = vadd.f32 %v1086_v29, %v2383_v20  ;;  %v1944_v39 = vpop.f32.mrb[30].mxu0  ;;  %v780_v6 = vpop.f32.mrb[29].mxu1 }
 0x120   :  { %v655_v54 = vpop.f32.mrb[31].mxu0  ;;  %4349 = vst [vmem:[#allocation18_spill] sm:$0xff] %v2401_v7  ;;  %v2408_v34 = vadd.f32 %v2196_v37, %v780_v6  ;;  %v1976_v29 = vpop.f32.mrb[30].mxu1  ;;  %v2411_v20 = vadd.f32 %v1944_v39, %v2196_v37 }
 0x121   :  { %4347 = vst [vmem:[#allocation16_spill] sm:$0xff] %v2393_v43  ;;  %v1088_v30 = vadd.f32 %v1087_v4, %v2393_v43  ;;  %v2398_v57 = vadd.f32 %v2196_v37, %v655_v54  ;;  %v2416_v4 = vadd.f32 %v2196_v37, %v2212_v47  ;;  %v1060_v35 = vadd.f32 %v1976_v29, %v2196_v37 }
 0x123   :  { %4348 = vst [vmem:[#allocation17_spill] sm:$0xff] %v2398_v57  ;;  %v1089_v48 = vadd.f32 %v1088_v30, %v2398_v57  ;;  %v783_v30 = vpop.f32.mrb[31].mxu1 }
 0x124   :  { %v1058_v51 = vadd.f32 %v2196_v37, %v783_v30 }
 0x125   :  { %v1090_v54 = vadd.f32 %v1089_v48, %v2401_v7 }
 0x127   :  { %v1091_v57 = vadd.f32 %v1090_v54, %v2411_v20 }
 0x129   :  { %v1092_v6 = vadd.f32 %v1091_v57, %v2416_v4 }
 0x12b   :  { %v1093_v43 = vadd.f32 %v1092_v6, %v2222_v55 }
 0x12d   :  { %v1094_v39 = vadd.f32 %v1093_v43, %v2210_v46 }
 0x12f   :  { %v1095_v22 = vadd.f32 %v1094_v39, %v2219_v52 }
 0x131   :  { %v1096_v48 = vadd.f32 %v1095_v22, %v2240_v3 }
 0x133   :  { %v1097_v47 = vadd.f32 %v1096_v48, %v2250_v11 }
 0x135   :  { %v1098_v7 = vadd.f32 %v1097_v47, %v2237_v1 }
 0x137   :  { %v1099_v29 = vadd.f32 %v1098_v7, %v2247_v8 }
 0x139   :  { %v1100_v37 = vadd.f32 %v1099_v29, %v2268_v23 }
 0x13b   :  { %v1101_v54 = vadd.f32 %v1100_v37, %v2278_v31 }
 0x13d   :  { %v1102_v57 = vadd.f32 %v1101_v54, %v2265_v21 }
 0x13f   :  { %v1103_v30 = vadd.f32 %v1102_v57, %v2275_v28 }
 0x141   :  { %v1104_v43 = vadd.f32 %v1103_v30, %v2296_v50 }
 0x143   :  { %v1105_v6 = vadd.f32 %v1104_v43, %v2306_v62 }
 0x145   :  { %v1106_v22 = vadd.f32 %v1105_v6, %v2293_v45 }
 0x147   :  { %v1107_v39 = vadd.f32 %v1106_v22, %v2303_v58 }
 0x149   :  { %v1108_v48 = vadd.f32 %v1107_v39, %v2324_v18 }
 0x14b   :  { %v1109_v7 = vadd.f32 %v1108_v48, %v2334_v33 }
 0x14d   :  { %v1110_v47 = vadd.f32 %v1109_v7, %v2321_v15 }
 0x14f   :  { %v1111_v29 = vadd.f32 %v1110_v47, %v2331_v27 }
 0x151   :  { %v1112_v37 = vadd.f32 %v1111_v29, %v2352_v2 }
 0x153   :  { %v1113_v54 = vadd.f32 %v1112_v37, %v2362_v24 }
 0x155   :  { %v1114_v57 = vadd.f32 %v1113_v54, %v2349_v59 }
 0x157   :  { %v1115_v30 = vadd.f32 %v1114_v57, %v2359_v14 }
 0x159   :  { %v1116_v43 = vadd.f32 %v1115_v30, %v2380_v16 }
 0x15b   :  { %v1117_v6 = vadd.f32 %v1116_v43, %v2390_v36 }
 0x15d   :  { %v1118_v22 = vadd.f32 %v1117_v6, %v2377_v60 }
 0x15f   :  { %v1119_v39 = vadd.f32 %v1118_v22, %v2387_v26 }
 0x161   :  { %v1120_v48 = vadd.f32 %v1119_v39, %v2408_v34 }
 0x163   :  { %v1121_v7 = vadd.f32 %v1120_v48, %v1058_v51 }
 0x165   :  { %v1122_v47 = vadd.f32 %v1121_v7, %v2405_v10 }
 0x167   :  { %v1123_v29 = vadd.f32 %v1122_v47, %v1060_v35 }
 0x169   :  { %v1124_v50 = vrot.slane %v1123_v29, 4 }
 0x16b   :  { %v1125_v37 = vadd.f32 %v1124_v50, %v1123_v29 }
 0x16d   :  { %v1126_v28 = vrot.slane %v1125_v37, 2 }
 0x16f   :  { %v1127_v54 = vadd.f32 %v1126_v28, %v1125_v37 }
 0x171   :  { %v1128_v21 = vrot.slane %v1127_v54, 1 }
 0x173   :  { %v1129_v57 = vadd.f32 %v1128_v21, %v1127_v54 }
 0x175   :  { %v2451_v31 = vmul.f32 0.001953125, %v1129_v57 }
 0x177   :  { %v2455_v30 = vsub.f32 %v2306_v62, %v2451_v31  ;;  %v2459_v43 = vsub.f32 %v2293_v45, %v2451_v31  ;;  %v2463_v6 = vsub.f32 %v2303_v58, %v2451_v31  ;;  %v2467_v50 = vsub.f32 %v2324_v18, %v2451_v31 }
 0x178   :  { %v2471_v21 = vsub.f32 %v2334_v33, %v2451_v31  ;;  %v2475_v28 = vsub.f32 %v2321_v15, %v2451_v31  ;;  %v2479_v45 = vsub.f32 %v2331_v27, %v2451_v31  ;;  %v2483_v58 = vsub.f32 %v2352_v2, %v2451_v31 }
 0x179   :  { %v2487_v62 = vsub.f32 %v2362_v24, %v2451_v31  ;;  %v2491_v18 = vsub.f32 %v2349_v59, %v2451_v31  ;;  %v2495_v15 = vsub.f32 %v2359_v14, %v2451_v31  ;;  %v2499_v27 = vsub.f32 %v2380_v16, %v2451_v31 }
 0x17a   :  { %v2503_v33 = vsub.f32 %v2390_v36, %v2451_v31  ;;  %v2507_v2 = vsub.f32 %v2377_v60, %v2451_v31  ;;  %v2511_v59 = vsub.f32 %v2387_v26, %v2451_v31  ;;  %v2515_v14 = vsub.f32 %v2408_v34, %v2451_v31 }
 0x17b   :  { %4350 = vst [vmem:[#allocation19_spill] sm:$0xff] %v2499_v27  ;;  %v2518_v24 = vsub.f32 %v1058_v51, %v2451_v31  ;;  %v2522_v16 = vsub.f32 %v2405_v10, %v2451_v31  ;;  %v2525_v36 = vsub.f32 %v1060_v35, %v2451_v31  ;;  %v2529_v60 = vsub.f32 %v2199_v41, %v2451_v31 }
 0x17c   :  { %4351 = vst [vmem:[#allocation20_spill] sm:$0xff] %v2503_v33  ;;  %4352 = vst [vmem:[#allocation21_spill] sm:$0xff] %v2507_v2  ;;  %v2533_v26 = vsub.f32 %v2202_v42, %v2451_v31  ;;  %v2537_v34 = vsub.f32 %v2205_v44, %v2451_v31  ;;  %v2545_v35 = vsub.f32 %v2215_v49, %v2451_v31 }
 0x17d   :  { %4353 = vst [vmem:[#allocation22_spill] sm:$0xff] %v2511_v59  ;;  %4354 = vst [vmem:[#allocation23_spill] sm:$0xff] %v2515_v14  ;;  %v1196_v51 = vmul.f32 %v2529_v60, %v2529_v60  ;;  %v2549_v41 = vsub.f32 %v2225_v56, %v2451_v31  ;;  %v2555_v44 = vsub.f32 %v2230_v61, %v2451_v31 }
 0x17e   :  { %v1197_v10 = vmul.f32 %v2533_v26, %v2533_v26  ;;  %v1198_v42 = vmul.f32 %v2537_v34, %v2537_v34  ;;  %v1199_v39 = vmul.f32 %v2545_v35, %v2545_v35  ;;  %v2561_v49 = vsub.f32 %v2233_v63, %v2451_v31 }
 0x17f   :  { %v1200_v56 = vmul.f32 %v2549_v41, %v2549_v41  ;;  %v2567_v47 = vsub.f32 %v2243_v5, %v2451_v31  ;;  %v1201_v61 = vmul.f32 %v2555_v44, %v2555_v44  ;;  %v2573_v37 = vsub.f32 %v2253_v12, %v2451_v31 }
 0x180   :  { %v1260_v22 = vadd.f32 %v1197_v10, %v1196_v51  ;;  %v1202_v63 = vmul.f32 %v2561_v49, %v2561_v49  ;;  %v2579_v57 = vsub.f32 %v2258_v17, %v2451_v31  ;;  %v2585_v10 = vsub.f32 %v2261_v19, %v2451_v31 }
 0x181   :  { %v1203_v5 = vmul.f32 %v2567_v47, %v2567_v47  ;;  %v1204_v12 = vmul.f32 %v2573_v37, %v2573_v37 }
 0x182   :  { %v1261_v48 = vadd.f32 %v1260_v22, %v1198_v42  ;;  %v2591_v22 = vsub.f32 %v2271_v25, %v2451_v31  ;;  %v1205_v17 = vmul.f32 %v2579_v57, %v2579_v57  ;;  %v1206_v19 = vmul.f32 %v2585_v10, %v2585_v10 }
 0x184   :  { %v1262_v7 = vadd.f32 %v1261_v48, %v1199_v39  ;;  %v2597_v48 = vsub.f32 %v2281_v32, %v2451_v31  ;;  %v1207_v25 = vmul.f32 %v2591_v22, %v2591_v22 }
 0x186   :  { %v1263_v29 = vadd.f32 %v1262_v7, %v1200_v56  ;;  %v2603_v7 = vsub.f32 %v2286_v38, %v2451_v31  ;;  %v1208_v32 = vmul.f32 %v2597_v48, %v2597_v48 }
 0x188   :  { %v1264_v54 = vadd.f32 %v1263_v29, %v1201_v61  ;;  %v2609_v29 = vsub.f32 %v2289_v40, %v2451_v31  ;;  %v1209_v38 = vmul.f32 %v2603_v7, %v2603_v7 }
 0x18a   :  { %v1265_v51 = vadd.f32 %v1264_v54, %v1202_v63  ;;  %v2615_v54 = vsub.f32 %v2299_v53, %v2451_v31  ;;  %v1210_v40 = vmul.f32 %v2609_v29, %v2609_v29 }
 0x18c   :  { %v1266_v42 = vadd.f32 %v1265_v51, %v1203_v5  ;;  %v2621_v51 = vsub.f32 %v2309_v0, %v2451_v31  ;;  %v1211_v53 = vmul.f32 %v2615_v54, %v2615_v54 }
 0x18e   :  { %v1267_v39 = vadd.f32 %v1266_v42, %v1204_v12  ;;  %v2627_v42 = vsub.f32 %v2314_v9, %v2451_v31  ;;  %v1212_v0 = vmul.f32 %v2621_v51, %v2621_v51 }
 0x190   :  { %v1268_v56 = vadd.f32 %v1267_v39, %v1205_v17  ;;  %v2633_v39 = vsub.f32 %v2317_v13, %v2451_v31  ;;  %v1213_v9 = vmul.f32 %v2627_v42, %v2627_v42 }
 0x192   :  { %v1269_v61 = vadd.f32 %v1268_v56, %v1206_v19  ;;  %4355 = vst [vmem:[#allocation24_spill] sm:$0xff] %v2633_v39  ;;  %v4356_v56 = vld [vmem:[#allocation7_spill] sm:$0xff]  ;;  %v1214_v13 = vmul.f32 %v2633_v39, %v2633_v39 }
 0x194   :  { %v1270_v63 = vadd.f32 %v1269_v61, %v1207_v25  ;;  %v2639_v25 = vsub.f32 %v4356_v56, %v2451_v31 }
 0x196   :  { %v1271_v5 = vadd.f32 %v1270_v63, %v1208_v32  ;;  %4357 = vst [vmem:[#allocation7_spill] sm:$0xff] %v2639_v25  ;;  %v4358_v32 = vld [vmem:[#allocation8_spill] sm:$0xff] }
 0x197   :  { %v2645_v63 = vsub.f32 %v4358_v32, %v2451_v31  ;;  %v4364_v32 = vld [vmem:[#allocation11_spill] sm:$0xff] }
 0x198   :  { %v1272_v12 = vadd.f32 %v1271_v5, %v1209_v38  ;;  %v4360_v5 = vld [vmem:[#allocation9_spill] sm:$0xff]  ;;  %v2663_v39 = vsub.f32 %v4364_v32, %v2451_v31  ;;  %v4370_v32 = vld [vmem:[#allocation14_spill] sm:$0xff] }
 0x199   :  { %4359 = vst [vmem:[#allocation8_spill] sm:$0xff] %v2645_v63 }
 0x19a   :  { %v1273_v17 = vadd.f32 %v1272_v12, %v1210_v40  ;;  %v2651_v40 = vsub.f32 %v4360_v5, %v2451_v31  ;;  %v1215_v12 = vmul.f32 %v2639_v25, %v2639_v25  ;;  %4365 = vst [vmem:[#allocation11_spill] sm:$0xff] %v2663_v39  ;;  %v4366_v5 = vld [vmem:[#allocation12_spill] sm:$0xff] }
 0x19b   :  { %v2669_v25 = vsub.f32 %v4366_v5, %v2451_v31  ;;  %v4371_v5 = vld [vmem:[#allocation15_spill] sm:$0xff] }
 0x19c   :  { %v1274_v19 = vadd.f32 %v1273_v17, %v1211_v53  ;;  %4361 = vst [vmem:[#allocation9_spill] sm:$0xff] %v2651_v40  ;;  %v4362_v17 = vld [vmem:[#allocation10_spill] sm:$0xff] }
 0x19d   :  { %v2657_v56 = vsub.f32 %v4362_v17, %v2451_v31  ;;  %4367 = vst [vmem:[#allocation12_spill] sm:$0xff] %v2669_v25  ;;  %v4368_v17 = vld [vmem:[#allocation13_spill] sm:$0xff] }
 0x19e   :  { %v1275_v61 = vadd.f32 %v1274_v19, %v1212_v0  ;;  %v1216_v0 = vmul.f32 %v2645_v63, %v2645_v63  ;;  %v2675_v63 = vsub.f32 %v4368_v17, %v2451_v31  ;;  %v4372_v17 = vld [vmem:[#allocation16_spill] sm:$0xff] }
 0x19f   :  { %4363 = vst [vmem:[#allocation10_spill] sm:$0xff] %v2657_v56 }
 0x1a0   :  { %v1276_v38 = vadd.f32 %v1275_v61, %v1213_v9  ;;  %v1217_v9 = vmul.f32 %v2651_v40, %v2651_v40  ;;  %4369 = vst [vmem:[#allocation13_spill] sm:$0xff] %v2675_v63  ;;  %v2681_v40 = vsub.f32 %v4370_v32, %v2451_v31  ;;  %v4373_v32 = vld [vmem:[#allocation17_spill] sm:$0xff] }
 0x1a2   :  { %v1277_v53 = vadd.f32 %v1276_v38, %v1214_v13  ;;  %v1218_v13 = vmul.f32 %v2657_v56, %v2657_v56  ;;  %v2687_v56 = vsub.f32 %v4371_v5, %v2451_v31  ;;  %v4374_v5 = vld [vmem:[#allocation18_spill] sm:$0xff] }
 0x1a4   :  { %v1278_v19 = vadd.f32 %v1277_v53, %v1215_v12  ;;  %v1219_v12 = vmul.f32 %v2663_v39, %v2663_v39  ;;  %v2693_v39 = vsub.f32 %v4372_v17, %v2451_v31  ;;  %v2711_v17 = vsub.f32 %v2411_v20, %v2451_v31 }
 0x1a6   :  { %v1279_v61 = vadd.f32 %v1278_v19, %v1216_v0  ;;  %v1220_v0 = vmul.f32 %v2669_v25, %v2669_v25  ;;  %v2699_v25 = vsub.f32 %v4373_v32, %v2451_v31  ;;  %v2717_v32 = vsub.f32 %v2416_v4, %v2451_v31 }
 0x1a7   :  { %v1227_v20 = vmul.f32 %v2711_v17, %v2711_v17 }
 0x1a8   :  { %v1280_v38 = vadd.f32 %v1279_v61, %v1217_v9  ;;  %v1221_v9 = vmul.f32 %v2675_v63, %v2675_v63  ;;  %v2705_v63 = vsub.f32 %v4374_v5, %v2451_v31  ;;  %v2723_v5 = vsub.f32 %v2222_v55, %v2451_v31 }
 0x1a9   :  { %v1228_v4 = vmul.f32 %v2717_v32, %v2717_v32 }
 0x1aa   :  { %v1281_v53 = vadd.f32 %v1280_v38, %v1218_v13  ;;  %v1222_v13 = vmul.f32 %v2681_v40, %v2681_v40  ;;  %v1229_v55 = vmul.f32 %v2723_v5, %v2723_v5 }
 0x1ac   :  { %v1282_v19 = vadd.f32 %v1281_v53, %v1219_v12  ;;  %v1223_v12 = vmul.f32 %v2687_v56, %v2687_v56 }
 0x1ae   :  { %v1283_v61 = vadd.f32 %v1282_v19, %v1220_v0  ;;  %v1224_v0 = vmul.f32 %v2693_v39, %v2693_v39 }
 0x1b0   :  { %v1284_v38 = vadd.f32 %v1283_v61, %v1221_v9  ;;  %v1225_v9 = vmul.f32 %v2699_v25, %v2699_v25 }
 0x1b2   :  { %v1285_v53 = vadd.f32 %v1284_v38, %v1222_v13  ;;  %v1226_v13 = vmul.f32 %v2705_v63, %v2705_v63 }
 0x1b4   :  { %v1286_v19 = vadd.f32 %v1285_v53, %v1223_v12  ;;  %v2729_v53 = vsub.f32 %v2210_v46, %v2451_v31 }
 0x1b6   :  { %v1287_v61 = vadd.f32 %v1286_v19, %v1224_v0  ;;  %v2735_v19 = vsub.f32 %v2219_v52, %v2451_v31  ;;  %v1230_v46 = vmul.f32 %v2729_v53, %v2729_v53 }
 0x1b8   :  { %v1288_v38 = vadd.f32 %v1287_v61, %v1225_v9  ;;  %v2741_v61 = vsub.f32 %v2240_v3, %v2451_v31  ;;  %v1231_v52 = vmul.f32 %v2735_v19, %v2735_v19 }
 0x1ba   :  { %v1289_v12 = vadd.f32 %v1288_v38, %v1226_v13  ;;  %4375 = vst [vmem:[#allocation14_spill] sm:$0xff] %v2741_v61  ;;  %v2747_v38 = vsub.f32 %v2250_v11, %v2451_v31  ;;  %v1232_v3 = vmul.f32 %v2741_v61, %v2741_v61 }
 0x1bc   :  { %v1290_v0 = vadd.f32 %v1289_v12, %v1227_v20  ;;  %4376 = vst [vmem:[#allocation15_spill] sm:$0xff] %v2747_v38  ;;  %v2753_v12 = vsub.f32 %v2237_v1, %v2451_v31  ;;  %v1233_v11 = vmul.f32 %v2747_v38, %v2747_v38 }
 0x1be   :  { %v1291_v9 = vadd.f32 %v1290_v0, %v1228_v4  ;;  %4377 = vst [vmem:[#allocation16_spill] sm:$0xff] %v2753_v12  ;;  %v2759_v0 = vsub.f32 %v2247_v8, %v2451_v31  ;;  %v1234_v1 = vmul.f32 %v2753_v12, %v2753_v12 }
 0x1c0   :  { %v1292_v13 = vadd.f32 %v1291_v9, %v1229_v55  ;;  %4378 = vst [vmem:[#allocation17_spill] sm:$0xff] %v2759_v0  ;;  %v2765_v9 = vsub.f32 %v2268_v23, %v2451_v31  ;;  %v1235_v8 = vmul.f32 %v2759_v0, %v2759_v0 }
 0x1c2   :  { %v1293_v20 = vadd.f32 %v1292_v13, %v1230_v46  ;;  %v4379_v13 = vld [vmem:[#allocation5_spill] sm:$0xff]  ;;  %v1236_v23 = vmul.f32 %v2765_v9, %v2765_v9 }
 0x1c3   :  { %v2771_v61 = vsub.f32 %v4379_v13, %v2451_v31  ;;  %v4383_v13 = vld [vmem:[#allocation6_spill] sm:$0xff] }
 0x1c4   :  { %v1294_v4 = vadd.f32 %v1293_v20, %v1231_v52  ;;  %v4381_v20 = vld [vmem:[#allocation3_spill] sm:$0xff]  ;;  %v2789_v0 = vsub.f32 %v4383_v13, %v2451_v31  ;;  %v1243_v13 = vmul.f32 %v2463_v6, %v2463_v6 }
 0x1c5   :  { %4380 = vst [vmem:[#allocation18_spill] sm:$0xff] %v2771_v61  ;;  %v2777_v38 = vsub.f32 %v4381_v20, %v2451_v31 }
 0x1c6   :  { %v1295_v55 = vadd.f32 %v1294_v4, %v1232_v3  ;;  %v4382_v4 = vld [vmem:[#allocation4_spill] sm:$0xff] }
 0x1c7   :  { %v2783_v12 = vsub.f32 %v4382_v4, %v2451_v31  ;;  %v1242_v31 = vmul.f32 %v2459_v43, %v2459_v43 }
 0x1c8   :  { %v1296_v46 = vadd.f32 %v1295_v55, %v1233_v11  ;;  %v1237_v11 = vmul.f32 %v2771_v61, %v2771_v61  ;;  %v1241_v61 = vmul.f32 %v2455_v30, %v2455_v30 }
 0x1c9   :  { %v1239_v20 = vmul.f32 %v2783_v12, %v2783_v12 }
 0x1ca   :  { %v1297_v52 = vadd.f32 %v1296_v46, %v1234_v1  ;;  %v1238_v1 = vmul.f32 %v2777_v38, %v2777_v38 }
 0x1cc   :  { %v1298_v3 = vadd.f32 %v1297_v52, %v1235_v8  ;;  %v1240_v52 = vmul.f32 %v2789_v0, %v2789_v0 }
 0x1ce   :  { %v1299_v55 = vadd.f32 %v1298_v3, %v1236_v23 }
 0x1d0   :  { %v1300_v46 = vadd.f32 %v1299_v55, %v1237_v11  ;;  %v1244_v55 = vmul.f32 %v2467_v50, %v2467_v50 }
 0x1d2   :  { %v1301_v8 = vadd.f32 %v1300_v46, %v1238_v1  ;;  %v1245_v46 = vmul.f32 %v2471_v21, %v2471_v21 }
 0x1d4   :  { %v1302_v4 = vadd.f32 %v1301_v8, %v1239_v20  ;;  %v1246_v8 = vmul.f32 %v2475_v28, %v2475_v28 }
 0x1d6   :  { %v1303_v23 = vadd.f32 %v1302_v4, %v1240_v52  ;;  %v1247_v4 = vmul.f32 %v2479_v45, %v2479_v45 }
 0x1d8   :  { %v1304_v3 = vadd.f32 %v1303_v23, %v1241_v61  ;;  %v1248_v23 = vmul.f32 %v2483_v58, %v2483_v58 }
 0x1da   :  { %v1305_v11 = vadd.f32 %v1304_v3, %v1242_v31  ;;  %v1249_v3 = vmul.f32 %v2487_v62, %v2487_v62 }
 0x1dc   :  { %v1306_v1 = vadd.f32 %v1305_v11, %v1243_v13  ;;  %v1250_v11 = vmul.f32 %v2491_v18, %v2491_v18 }
 0x1de   :  { %v1307_v20 = vadd.f32 %v1306_v1, %v1244_v55  ;;  %v1251_v1 = vmul.f32 %v2495_v15, %v2495_v15 }
 0x1e0   :  { %v1308_v52 = vadd.f32 %v1307_v20, %v1245_v46  ;;  %v1252_v20 = vmul.f32 %v2499_v27, %v2499_v27 }
 0x1e2   :  { %v1309_v61 = vadd.f32 %v1308_v52, %v1246_v8  ;;  %v1253_v52 = vmul.f32 %v2503_v33, %v2503_v33 }
 0x1e4   :  { %v1310_v31 = vadd.f32 %v1309_v61, %v1247_v4  ;;  %v1254_v61 = vmul.f32 %v2507_v2, %v2507_v2 }
 0x1e6   :  { %v1311_v13 = vadd.f32 %v1310_v31, %v1248_v23  ;;  %v1255_v31 = vmul.f32 %v2511_v59, %v2511_v59 }
 0x1e8   :  { %v1312_v55 = vadd.f32 %v1311_v13, %v1249_v3  ;;  %v1256_v13 = vmul.f32 %v2515_v14, %v2515_v14 }
 0x1ea   :  { %v1313_v46 = vadd.f32 %v1312_v55, %v1250_v11  ;;  %v1257_v55 = vmul.f32 %v2518_v24, %v2518_v24 }
 0x1ec   :  { %v1314_v8 = vadd.f32 %v1313_v46, %v1251_v1  ;;  %v1258_v46 = vmul.f32 %v2522_v16, %v2522_v16 }
 0x1ee   :  { %v1315_v4 = vadd.f32 %v1314_v8, %v1252_v20  ;;  %v1259_v8 = vmul.f32 %v2525_v36, %v2525_v36 }
 0x1f0   :  { %v1316_v23 = vadd.f32 %v1315_v4, %v1253_v52 }
 0x1f2   :  { %v1317_v3 = vadd.f32 %v1316_v23, %v1254_v61 }
 0x1f4   :  { %v1318_v11 = vadd.f32 %v1317_v3, %v1255_v31 }
 0x1f6   :  { %v1319_v1 = vadd.f32 %v1318_v11, %v1256_v13 }
 0x1f8   :  { %v1320_v20 = vadd.f32 %v1319_v1, %v1257_v55  ;;  %v4388_v55 = vld [vmem:[#allocation7_spill] sm:$0xff]  ;;  %v4389_v1 = vld [vmem:[#allocation8_spill] sm:$0xff] }
 0x1fa   :  { %v1321_v52 = vadd.f32 %v1320_v20, %v1258_v46  ;;  %v4390_v46 = vld [vmem:[#allocation9_spill] sm:$0xff]  ;;  %v4391_v20 = vld [vmem:[#allocation10_spill] sm:$0xff] }
 0x1fc   :  { %v1322_v4 = vadd.f32 %v1321_v52, %v1259_v8  ;;  %v4392_v8 = vld [vmem:[#allocation11_spill] sm:$0xff] }
 0x1fe   :  { %v1323_v2 = vrot.slane %v1322_v4, 4 }
 0x200   :  { %v1324_v59 = vadd.f32 %v1323_v2, %v1322_v4  ;;  %v4393_v4 = vld [vmem:[#allocation12_spill] sm:$0xff] }
 0x202   :  { %v1325_v61 = vrot.slane %v1324_v59, 2 }
 0x204   :  { %v1326_v23 = vadd.f32 %v1325_v61, %v1324_v59 }
 0x206   :  { %v1327_v33 = vrot.slane %v1326_v23, 1 }
 0x208   :  { %v1328_v14 = vadd.f32 %v1327_v33, %v1326_v23  ;;  %v4394_v23 = vld [vmem:[#allocation13_spill] sm:$0xff] }
 0x20a   :  { %v1329_v31 = vmul.f32 0.001953125, %v1328_v14 }
 0x20c   :  { %v1330_v3 = vadd.f32 1e-05, %v1329_v31 }
 0x20e   :  { %2021 = vrsqrt.f32 %v1330_v3 }
 0x218   :  { %v2835_v27 = vpop.eup %2021 }
 0x219   :  { %v2839_v13 = vmul.f32 %v2835_v27, %v2529_v60  ;;  %v2843_v11 = vmul.f32 %v2835_v27, %v2533_v26  ;;  %v2847_v2 = vmul.f32 %v2835_v27, %v2537_v34  ;;  %v2851_v33 = vmul.f32 %v2835_v27, %v2545_v35 }
 0x21a   :  { %v2855_v59 = vmul.f32 %v2835_v27, %v2518_v24  ;;  %v2859_v14 = vmul.f32 %v2835_v27, %v2522_v16  ;;  %v2863_v60 = vmul.f32 %v2835_v27, %v2525_v36  ;;  %v2867_v26 = vmul.f32 %v2835_v27, %v2549_v41 }
 0x21b   :  { %v2871_v34 = vmul.f32 %v2835_v27, %v2555_v44  ;;  %v2875_v24 = vmul.f32 %v2835_v27, %v2561_v49  ;;  %v2879_v16 = vmul.f32 %v2835_v27, %v2567_v47  ;;  %v2883_v36 = vmul.f32 %v2835_v27, %v2573_v37 }
 0x21c   :  { %4384 = vst [vmem:[#allocation5_spill] sm:$0xff] %v2855_v59  ;;  %4385 = vst [vmem:[#allocation3_spill] sm:$0xff] %v2859_v14  ;;  %v2887_v35 = vmul.f32 %v2835_v27, %v2579_v57  ;;  %v2891_v41 = vmul.f32 %v2835_v27, %v2585_v10  ;;  %v2895_v44 = vmul.f32 %v2835_v27, %v2591_v22  ;;  %v4399_v14 = vld [vmem:[#allocation18_spill] sm:$0xff] }
 0x21d   :  { %4386 = vst [vmem:[#allocation4_spill] sm:$0xff] %v2863_v60  ;;  %v2899_v49 = vmul.f32 %v2835_v27, %v2597_v48  ;;  %v2903_v47 = vmul.f32 %v2835_v27, %v2603_v7  ;;  %v2907_v37 = vmul.f32 %v2835_v27, %v2609_v29  ;;  %v2911_v57 = vmul.f32 %v2835_v27, %v2615_v54  ;;  %v4387_v48 = vld [vmem:[#allocation24_spill] sm:$0xff]  ;;  %v4398_v60 = vld [vmem:[#allocation17_spill] sm:$0xff] }
 0x21e   :  { %v2915_v10 = vmul.f32 %v2835_v27, %v2621_v51  ;;  %v2919_v22 = vmul.f32 %v2835_v27, %v2627_v42  ;;  %v2923_v7 = vmul.f32 %v2835_v27, %v4387_v48  ;;  %v2927_v29 = vmul.f32 %v2835_v27, %v4388_v55 }
 0x21f   :  { %v2931_v54 = vmul.f32 %v2835_v27, %v4389_v1  ;;  %v2935_v51 = vmul.f32 %v2835_v27, %v4390_v46  ;;  %v2939_v42 = vmul.f32 %v2835_v27, %v4391_v20  ;;  %v2943_v52 = vmul.f32 %v2835_v27, %v4392_v8  ;;  %v4395_v20 = vld [vmem:[#allocation14_spill] sm:$0xff]  ;;  %v4396_v8 = vld [vmem:[#allocation15_spill] sm:$0xff] }
 0x220   :  { %v2947_v61 = vmul.f32 %v2835_v27, %v4393_v4  ;;  %v2951_v31 = vmul.f32 %v2835_v27, %v4394_v23  ;;  %v2955_v3 = vmul.f32 %v2835_v27, %v2681_v40  ;;  %v2959_v48 = vmul.f32 %v2835_v27, %v2687_v56 }
 0x221   :  { %v2963_v55 = vmul.f32 %v2835_v27, %v2693_v39  ;;  %v2967_v1 = vmul.f32 %v2835_v27, %v2699_v25  ;;  %v2971_v46 = vmul.f32 %v2835_v27, %v2705_v63  ;;  %v2975_v40 = vmul.f32 %v2835_v27, %v2711_v17 }
 0x222   :  { %v2979_v56 = vmul.f32 %v2835_v27, %v2717_v32  ;;  %v2983_v39 = vmul.f32 %v2835_v27, %v2723_v5  ;;  %v2987_v25 = vmul.f32 %v2835_v27, %v2729_v53  ;;  %v2991_v63 = vmul.f32 %v2835_v27, %v2735_v19  ;;  %v4397_v32 = vld [vmem:[#allocation16_spill] sm:$0xff] }
 0x223   :  { %v1368_v17 = vmul.f32 %v2835_v27, %v4395_v20  ;;  %v1369_v4 = vmul.f32 %v2835_v27, %v4396_v8  ;;  %v1370_v23 = vmul.f32 %v2835_v27, %v4397_v32  ;;  %v3001_v5 = vmul.f32 %v2835_v27, %v4398_v60 }
 0x224   :  { %v3005_v53 = vmul.f32 %v2835_v27, %v2765_v9  ;;  %v3009_v19 = vmul.f32 %v2835_v27, %v4399_v14  ;;  %v3013_v20 = vmul.f32 %v2835_v27, %v2777_v38  ;;  %v3017_v8 = vmul.f32 %v2835_v27, %v2783_v12 }
 0x225   :  { %v3021_v60 = vmul.f32 %v2835_v27, %v2789_v0  ;;  %v3025_v9 = vmul.f32 %v2835_v27, %v2455_v30  ;;  %v3029_v14 = vmul.f32 %v2835_v27, %v2459_v43  ;;  %v3033_v38 = vmul.f32 %v2835_v27, %v2463_v6  ;;  %v3054_v6 = vld [vmem:[%s4274_s3] ss:$0 sm:$0xff] }
 0x226   :  { %v3037_v12 = vmul.f32 %v2835_v27, %v2467_v50  ;;  %v3041_v0 = vmul.f32 %v2835_v27, %v2471_v21  ;;  %v3045_v30 = vmul.f32 %v2835_v27, %v2475_v28  ;;  %v3049_v43 = vmul.f32 %v2835_v27, %v2479_v45  ;;  %v4404_v45 = vld [vmem:[#allocation19_spill] sm:$0xff] }
 0x227   :  { %v1384_v50 = vmul.f32 %v2835_v27, %v2483_v58  ;;  %v1385_v21 = vmul.f32 %v2835_v27, %v2487_v62  ;;  %v1386_v32 = vmul.f32 %v2835_v27, %v2491_v18  ;;  %v3064_v28 = vmul.f32 %v2835_v27, %v2495_v15  ;;  %v4407_v62 = vld [vmem:[#allocation22_spill] sm:$0xff]  ;;  %v4408_v18 = vld [vmem:[#allocation23_spill] sm:$0xff] }
 0x228   :  { %4400 = vst [vmem:[#allocation6_spill] sm:$0xff] %v3037_v12  ;;  %4401 = vst [vmem:[#allocation24_spill] sm:$0xff] %v3041_v0  ;;  %v3068_v59 = vmul.f32 %v2835_v27, %v4404_v45  ;;  %v4406_v0 = vld [vmem:[#allocation21_spill] sm:$0xff]  ;;  %v3080_v12 = vmul.f32 %v2835_v27, %v4407_v62  ;;  %v3084_v15 = vmul.f32 %v2835_v27, %v4408_v18 }
 0x229   :  { %4402 = vst [vmem:[#allocation7_spill] sm:$0xff] %v3045_v30  ;;  %4403 = vst [vmem:[#allocation8_spill] sm:$0xff] %v3049_v43  ;;  %v4405_v43 = vld [vmem:[#allocation20_spill] sm:$0xff]  ;;  %v3076_v58 = vmul.f32 %v2835_v27, %v4406_v0  ;;  %v3088_v45 = vmul.f32 %v3054_v6, %v2839_v13  ;;  %v3096_v0 = vmul.f32 %v3054_v6, %v2847_v2 }
 0x22a   :  { %v3072_v30 = vmul.f32 %v2835_v27, %v4405_v43  ;;  %v3092_v43 = vmul.f32 %v3054_v6, %v2843_v11  ;;  %v3100_v62 = vmul.f32 %v3054_v6, %v2851_v33  ;;  %v3104_v27 = vmul.f32 %v3054_v6, %v2867_v26 }
 0x22b   :  { %v3108_v13 = vmul.f32 %v3054_v6, %v2871_v34  ;;  %v3112_v11 = vmul.f32 %v3054_v6, %v2875_v24  ;;  %v3116_v2 = vmul.f32 %v3054_v6, %v2879_v16  ;;  %v3120_v33 = vmul.f32 %v3054_v6, %v2883_v36 }
 0x22c   :  { %v3124_v26 = vmul.f32 %v3054_v6, %v2887_v35  ;;  %v3128_v34 = vmul.f32 %v3054_v6, %v2891_v41  ;;  %v3132_v24 = vmul.f32 %v3054_v6, %v2895_v44  ;;  %v3136_v16 = vmul.f32 %v3054_v6, %v2899_v49 }
 0x22d   :  { %v3140_v36 = vmul.f32 %v3054_v6, %v2903_v47  ;;  %v3144_v35 = vmul.f32 %v3054_v6, %v2907_v37  ;;  %v3148_v41 = vmul.f32 %v3054_v6, %v2911_v57  ;;  %v3152_v44 = vmul.f32 %v3054_v6, %v2915_v10 }
 0x22e   :  { %v3156_v49 = vmul.f32 %v3054_v6, %v2919_v22  ;;  %v3160_v47 = vmul.f32 %v3054_v6, %v2923_v7  ;;  %v3164_v37 = vmul.f32 %v3054_v6, %v2927_v29  ;;  %v3168_v57 = vmul.f32 %v3054_v6, %v2931_v54 }
 0x22f   :  { %v3172_v10 = vmul.f32 %v3054_v6, %v2935_v51  ;;  %v3176_v22 = vmul.f32 %v3054_v6, %v2939_v42  ;;  %v3180_v7 = vmul.f32 %v3054_v6, %v2943_v52  ;;  %v3184_v29 = vmul.f32 %v3054_v6, %v2947_v61 }
 0x230   :  { %v3188_v54 = vmul.f32 %v3054_v6, %v2951_v31  ;;  %v3192_v51 = vmul.f32 %v3054_v6, %v2955_v3  ;;  %v3196_v42 = vmul.f32 %v3054_v6, %v2959_v48  ;;  %v3200_v52 = vmul.f32 %v3054_v6, %v2963_v55 }
 0x231   :  { %v3204_v61 = vmul.f32 %v3054_v6, %v2967_v1  ;;  %v3208_v31 = vmul.f32 %v3054_v6, %v2971_v46  ;;  %v3212_v3 = vmul.f32 %v3054_v6, %v2975_v40  ;;  %v3216_v48 = vmul.f32 %v3054_v6, %v2979_v56 }
 0x232   :  { %v3220_v55 = vmul.f32 %v3054_v6, %v2983_v39  ;;  %v3224_v1 = vmul.f32 %v3054_v6, %v2987_v25  ;;  %v3228_v46 = vmul.f32 %v3054_v6, %v2991_v63  ;;  %v3231_v18 = vmul.f32 %v3054_v6, %v1368_v17 }
 0x233   :  { %v3234_v40 = vmul.f32 %v3054_v6, %v1369_v4  ;;  %v3237_v56 = vmul.f32 %v3054_v6, %v1370_v23  ;;  %v3241_v39 = vmul.f32 %v3054_v6, %v3001_v5  ;;  %v3245_v25 = vmul.f32 %v3054_v6, %v3005_v53 }
 0x234   :  { %v3249_v63 = vmul.f32 %v3054_v6, %v3009_v19  ;;  %v3253_v17 = vmul.f32 %v3054_v6, %v3013_v20  ;;  %v3257_v4 = vmul.f32 %v3054_v6, %v3017_v8  ;;  %v3261_v23 = vmul.f32 %v3054_v6, %v3021_v60  ;;  %v4413_v20 = vld [vmem:[#allocation6_spill] sm:$0xff] }
 0x235   :  { %v3265_v5 = vmul.f32 %v3054_v6, %v3025_v9  ;;  %v3269_v53 = vmul.f32 %v3054_v6, %v3029_v14  ;;  %v3273_v19 = vmul.f32 %v3054_v6, %v3033_v38  ;;  %v3277_v8 = vmul.f32 %v3054_v6, %v4413_v20 }
 0x236   :  { %4409 = vst [vmem:[#allocation9_spill] sm:$0xff] %v3257_v4  ;;  %4410 = vst [vmem:[#allocation10_spill] sm:$0xff] %v3261_v23  ;;  %v4414_v4 = vld [vmem:[#allocation24_spill] sm:$0xff]  ;;  %v4415_v23 = vld [vmem:[#allocation7_spill] sm:$0xff]  ;;  %v3295_v38 = vmul.f32 %v3054_v6, %v1385_v21  ;;  %v3298_v20 = vmul.f32 %v3054_v6, %v1386_v32  ;;  %v3319_v21 = vmul.f32 %v3054_v6, %v3076_v58 }
 0x237   :  { %4411 = vst [vmem:[#allocation11_spill] sm:$0xff] %v3265_v5  ;;  %4412 = vst [vmem:[#allocation12_spill] sm:$0xff] %v3269_v53  ;;  %v3281_v60 = vmul.f32 %v3054_v6, %v4414_v4  ;;  %v3285_v9 = vmul.f32 %v3054_v6, %v4415_v23  ;;  %v4416_v5 = vld [vmem:[#allocation8_spill] sm:$0xff]  ;;  %v3292_v53 = vmul.f32 %v3054_v6, %v1384_v50  ;;  %v3303_v4 = vld [vmem:[%s4275_s4] ss:$0 sm:$0xff] }
 0x238   :  { %v3289_v14 = vmul.f32 %v3054_v6, %v4416_v5  ;;  %v3307_v23 = vmul.f32 %v3054_v6, %v3064_v28  ;;  %v3311_v5 = vmul.f32 %v3054_v6, %v3068_v59  ;;  %v3315_v50 = vmul.f32 %v3054_v6, %v3072_v30 }
 0x239   :  { %v3323_v32 = vmul.f32 %v3054_v6, %v3080_v12  ;;  %v3327_v28 = vmul.f32 %v3054_v6, %v3084_v15  ;;  %v3343_v12 = vadd.f32 %v3303_v4, %v3088_v45  ;;  %v3347_v15 = vadd.f32 %v3303_v4, %v3092_v43 }
 0x23a   :  { %4417 = vst [vmem:[#allocation13_spill] sm:$0xff] %v3307_v23  ;;  %4418 = vst [vmem:[#allocation14_spill] sm:$0xff] %v3311_v5  ;;  %v4420_v23 = vld [vmem:[#allocation5_spill] sm:$0xff]  ;;  %v4421_v5 = vld [vmem:[#allocation3_spill] sm:$0xff]  ;;  %v3363_v45 = vadd.f32 %v3303_v4, %v3108_v13  ;;  %v3367_v43 = vadd.f32 %v3303_v4, %v3112_v11  ;;  %v3383_v13 = vadd.f32 %v3303_v4, %v3128_v34 }
 0x23b   :  { %4419 = vst [vmem:[#allocation15_spill] sm:$0xff] %v3315_v50  ;;  %v3331_v59 = vmul.f32 %v3054_v6, %v4420_v23  ;;  %v3335_v30 = vmul.f32 %v3054_v6, %v4421_v5  ;;  %v4422_v50 = vld [vmem:[#allocation4_spill] sm:$0xff]  ;;  %v3351_v23 = vadd.f32 %v3303_v4, %v3096_v0  ;;  %v3355_v5 = vadd.f32 %v3303_v4, %v3100_v62 }
 0x23c   :  { %v3339_v58 = vmul.f32 %v3054_v6, %v4422_v50  ;;  %v3359_v6 = vadd.f32 %v3303_v4, %v3104_v27  ;;  %v3371_v0 = vadd.f32 %v3303_v4, %v3116_v2  ;;  %v3375_v62 = vadd.f32 %v3303_v4, %v3120_v33 }
 0x23d   :  { %v3379_v27 = vadd.f32 %v3303_v4, %v3124_v26  ;;  %v3387_v11 = vadd.f32 %v3303_v4, %v3132_v24  ;;  %v3391_v2 = vadd.f32 %v3303_v4, %v3136_v16  ;;  %v3395_v33 = vadd.f32 %v3303_v4, %v3140_v36  ;;  %v4426_v50 = vld [vmem:[#allocation9_spill] sm:$0xff] }
 0x23e   :  { %v3399_v26 = vadd.f32 %v3303_v4, %v3144_v35  ;;  %v3403_v34 = vadd.f32 %v3303_v4, %v3148_v41  ;;  %v3407_v24 = vadd.f32 %v3303_v4, %v3152_v44  ;;  %v3411_v16 = vadd.f32 %v3303_v4, %v3156_v49 }
 0x23f   :  { %v3415_v36 = vadd.f32 %v3303_v4, %v3160_v47  ;;  %v3419_v35 = vadd.f32 %v3303_v4, %v3164_v37  ;;  %v3423_v41 = vadd.f32 %v3303_v4, %v3168_v57  ;;  %v3427_v44 = vadd.f32 %v3303_v4, %v3172_v10 }
 0x240   :  { %v3431_v49 = vadd.f32 %v3303_v4, %v3176_v22  ;;  %v3435_v47 = vadd.f32 %v3303_v4, %v3180_v7  ;;  %v3439_v37 = vadd.f32 %v3303_v4, %v3184_v29  ;;  %v3443_v57 = vadd.f32 %v3303_v4, %v3188_v54 }
 0x241   :  { %v3447_v10 = vadd.f32 %v3303_v4, %v3192_v51  ;;  %v3451_v22 = vadd.f32 %v3303_v4, %v3196_v42  ;;  %v3455_v7 = vadd.f32 %v3303_v4, %v3200_v52  ;;  %v3459_v29 = vadd.f32 %v3303_v4, %v3204_v61 }
 0x242   :  { %v3463_v54 = vadd.f32 %v3303_v4, %v3208_v31  ;;  %v3467_v51 = vadd.f32 %v3303_v4, %v3212_v3  ;;  %v3471_v42 = vadd.f32 %v3303_v4, %v3216_v48  ;;  %v3475_v52 = vadd.f32 %v3303_v4, %v3220_v55 }
 0x243   :  { %v3479_v61 = vadd.f32 %v3303_v4, %v3224_v1  ;;  %v3483_v31 = vadd.f32 %v3303_v4, %v3228_v46  ;;  %v3487_v3 = vadd.f32 %v3303_v4, %v3231_v18  ;;  %v3491_v48 = vadd.f32 %v3303_v4, %v3234_v40 }
 0x244   :  { %v3495_v55 = vadd.f32 %v3303_v4, %v3237_v56  ;;  %v3499_v1 = vadd.f32 %v3303_v4, %v3241_v39  ;;  %v3503_v46 = vadd.f32 %v3303_v4, %v3245_v25  ;;  %v3507_v18 = vadd.f32 %v3303_v4, %v3249_v63 }
 0x245   :  { %v3511_v40 = vadd.f32 %v3303_v4, %v3253_v17  ;;  %v3515_v56 = vadd.f32 %v3303_v4, %v4426_v50  ;;  %v3531_v17 = vadd.f32 %v3303_v4, %v3273_v19  ;;  %v3535_v50 = vadd.f32 %v3303_v4, %v3277_v8 }
 0x246   :  { %4423 = vst [vmem:[#allocation16_spill] sm:$0xff] %v3495_v55  ;;  %4424 = vst [vmem:[#allocation17_spill] sm:$0xff] %v3499_v1  ;;  %v4427_v55 = vld [vmem:[#allocation10_spill] sm:$0xff]  ;;  %v4428_v1 = vld [vmem:[#allocation11_spill] sm:$0xff]  ;;  %v3551_v19 = vadd.f32 %v3303_v4, %v3292_v53  ;;  %v3555_v8 = vadd.f32 %v3303_v4, %v3295_v38  ;;  %v3575_v38 = vadd.f32 %v3303_v4, %v3319_v21  ;;  %vm1538_vm1 = vcmp.gt.f32.partialorder %v3343_v12, 0.0 }
 0x247   :  { %4425 = vst [vmem:[#allocation18_spill] sm:$0xff] %v3503_v46  ;;  %v3519_v39 = vadd.f32 %v3303_v4, %v4427_v55  ;;  %v3523_v25 = vadd.f32 %v3303_v4, %v4428_v1  ;;  %v4429_v46 = vld [vmem:[#allocation12_spill] sm:$0xff]  ;;  %v3539_v55 = vadd.f32 %v3303_v4, %v3281_v60  ;;  %v3543_v1 = vadd.f32 %v3303_v4, %v3285_v9 }
 0x248   :  { %v3527_v63 = vadd.f32 %v3303_v4, %v4429_v46  ;;  %v3547_v46 = vadd.f32 %v3303_v4, %v3289_v14  ;;  %4433 = vst [vmem:[#allocation22_spill] sm:$0xff] %v3555_v8  ;;  %v3559_v60 = vadd.f32 %v3303_v4, %v3298_v20  ;;  %4441 = vst [vmem:[#allocation8_spill] sm:$0xff] %v3575_v38  ;;  %vm1539_vm2 = vcmp.gt.f32.partialorder %v3347_v15, 0.0 }
 0x249   :  { %4430 = vst [vmem:[#allocation19_spill] sm:$0xff] %v3539_v55  ;;  %4431 = vst [vmem:[#allocation20_spill] sm:$0xff] %v3543_v1  ;;  %v4435_v55 = vld [vmem:[#allocation13_spill] sm:$0xff]  ;;  %v4437_v1 = vld [vmem:[#allocation14_spill] sm:$0xff]  ;;  %v3579_v20 = vadd.f32 %v3303_v4, %v3323_v32  ;;  %vm1540_vm3 = vcmp.gt.f32.partialorder %v3351_v23, 0.0  ;;  %vm1541_vm4 = vcmp.gt.f32.partialorder %v3355_v5, 0.0  ;;  %v3600_v21 = vadd.f32 %v3303_v4, %v3335_v30 }
 0x24a   :  { %4432 = vst [vmem:[#allocation21_spill] sm:$0xff] %v3547_v46  ;;  %4434 = vst [vmem:[#allocation23_spill] sm:$0xff] %v3559_v60  ;;  %v3563_v9 = vadd.f32 %v3303_v4, %v4435_v55  ;;  %v3567_v14 = vadd.f32 %v3303_v4, %v4437_v1  ;;  %v4439_v46 = vld [vmem:[#allocation15_spill] sm:$0xff]  ;;  %v3583_v55 = vadd.f32 %v3303_v4, %v3327_v28  ;;  %vm1542_vm5 = vcmp.gt.f32.partialorder %v3359_v6, 0.0 }
 0x24b   :  { %v3571_v53 = vadd.f32 %v3303_v4, %v4439_v46  ;;  %4442 = vst [vmem:[#allocation5_spill] sm:$0xff] %v3579_v20  ;;  %v3587_v1 = vadd.f32 %v3303_v4, %v3331_v59  ;;  %vm1543_vm6 = vcmp.gt.f32.partialorder %v3363_v45, 0.0  ;;  %vm1544_vm7 = vcmp.gt.f32.partialorder %v3367_v43, 0.0  ;;  %4445 = vst [vmem:[#allocation9_spill] sm:$0xff] %v3600_v21 }
 0x24c   :  { %4436 = vst [vmem:[#allocation6_spill] sm:$0xff] %v3563_v9  ;;  %4438 = vst [vmem:[#allocation24_spill] sm:$0xff] %v3567_v14  ;;  %vm1545_vm8 = vcmp.gt.f32.partialorder %v3371_v0, 0.0  ;;  %vm1546_vm9 = vcmp.gt.f32.partialorder %v3375_v62, 0.0  ;;  %vm1547_vm10 = vcmp.gt.f32.partialorder %v3379_v27, 0.0  ;;  %v3608_v46 = vadd.f32 %v3303_v4, %v3339_v58 }
 0x24d   :  { %4440 = vst [vmem:[#allocation7_spill] sm:$0xff] %v3571_v53  ;;  %4443 = vst [vmem:[#allocation3_spill] sm:$0xff] %v3583_v55  ;;  %v1602_v32 = vmul.f32 0.2, %v3343_v12  ;;  %v1603_v28 = vmul.f32 0.2, %v3347_v15 }
 0x24e   :  { %4444 = vst [vmem:[#allocation4_spill] sm:$0xff] %v3587_v1  ;;  %v1604_v59 = vmul.f32 0.2, %v3351_v23  ;;  %4446 = vst [vmem:[#allocation10_spill] sm:$0xff] %v3608_v46  ;;  %vm1548_vm11 = vcmp.gt.f32.partialorder %v3383_v13, 0.0  ;;  %vm1549_vm12 = vcmp.gt.f32.partialorder %v3387_v11, 0.0 }
 0x24f   :  { %v1605_v1 = vmul.f32 0.2, %v3355_v5  ;;  %v1606_v55 = vmul.f32 0.2, %v3359_v6  ;;  %v1607_v30 = vmul.f32 0.2, %v3363_v45  ;;  %v1666_v4 = vsel %vm1538_vm1, %v3343_v12, %v1602_v32 }
 0x250   :  { %v1608_v21 = vmul.f32 0.2, %v3367_v43  ;;  %v1609_v20 = vmul.f32 0.2, %v3371_v0  ;;  %v1610_v38 = vmul.f32 0.2, %v3375_v62  ;;  %v1667_v14 = vsel %vm1539_vm2, %v3347_v15, %v1603_v28  ;;  %1730 = vst [vmem:[%s4276_s5] sm:$0xff] %v1666_v4 }
 0x251   :  { %vm1550_vm13 = vcmp.gt.f32.partialorder %v3391_v2, 0.0  ;;  %v1611_v58 = vmul.f32 0.2, %v3379_v27  ;;  %v3624_v46 = vmul.f32 0.2, %v3383_v13  ;;  %vm1551_vm14 = vcmp.gt.f32.partialorder %v3395_v33, 0.0 }
 0x252   :  { %v3627_v53 = vmul.f32 0.2, %v3387_v11  ;;  %v3637_v12 = vmul.f32 0.2, %v3391_v2  ;;  %v3640_v32 = vmul.f32 0.2, %v3395_v33  ;;  %v1668_v60 = vsel %vm1540_vm3, %v3351_v23, %v1604_v59 }
 0x253   :  { %v3643_v9 = vmul.f32 0.2, %v3399_v26  ;;  %1731 = vst [vmem:[%s4276_s5 + $0x8] sm:$0xff] %v1667_v14  ;;  %vm1552_vm15 = vcmp.gt.f32.partialorder %v3399_v26, 0.0  ;;  %v3653_v15 = vmul.f32 0.2, %v3403_v34  ;;  %v1669_v8 = vsel %vm1541_vm4, %v3355_v5, %v1605_v1 }
 0x254   :  { %v3656_v28 = vmul.f32 0.2, %v3407_v24  ;;  %v3659_v4 = vmul.f32 0.2, %v3411_v16  ;;  %1732 = vst [vmem:[%s4276_s5 + $0x10] sm:$0xff] %v1668_v60  ;;  %vm1553_vm0 = vcmp.gt.f32.partialorder %v3403_v34, 0.0 }
 0x255   :  { %v3669_v23 = vmul.f32 0.2, %v3415_v36  ;;  %v3672_v14 = vmul.f32 0.2, %v3419_v35  ;;  %v3675_v59 = vmul.f32 0.2, %v3423_v41 }
 0x256   :  { %4447 = vst [vmem:[#allocation11_spill] sm:$0xff] %v3659_v4  ;;  %v1670_v4 = vsel %vm1542_vm5, %v3359_v6, %v1606_v55  ;;  %1733 = vst [vmem:[%s4276_s5 + $0x18] sm:$0xff] %v1669_v8  ;;  %vm1554_vm1 = vcmp.gt.f32.partialorder %v3407_v24, 0.0  ;;  %v3685_v5 = vmul.f32 0.2, %v3427_v44  ;;  %vm1555_vm2 = vcmp.gt.f32.partialorder %v3411_v16, 0.0 }
 0x257   :  { %4448 = vst [vmem:[#allocation12_spill] sm:$0xff] %v3675_v59  ;;  %v3688_v60 = vmul.f32 0.2, %v3431_v49  ;;  %v3691_v1 = vmul.f32 0.2, %v3435_v47  ;;  %v1671_v59 = vsel %vm1543_vm6, %v3363_v45, %v1607_v30  ;;  %1734 = vst [vmem:[%s4276_s5 + $0x20] sm:$0xff] %v1670_v4 }
 0x258   :  { %v3701_v6 = vmul.f32 0.2, %v3439_v37  ;;  %v3704_v8 = vmul.f32 0.2, %v3443_v57  ;;  %v3707_v55 = vmul.f32 0.2, %v3447_v10 }
 0x259   :  { %4449 = vst [vmem:[#allocation13_spill] sm:$0xff] %v3691_v1  ;;  %v1672_v1 = vsel %vm1544_vm7, %v3367_v43, %v1608_v21  ;;  %1735 = vst [vmem:[%s4276_s5 + $0x28] sm:$0xff] %v1671_v59  ;;  %vm1556_vm3 = vcmp.gt.f32.partialorder %v3415_v36, 0.0  ;;  %v3717_v45 = vmul.f32 0.2, %v3451_v22  ;;  %vm1557_vm4 = vcmp.gt.f32.partialorder %v3419_v35, 0.0 }
 0x25a   :  { %4450 = vst [vmem:[#allocation14_spill] sm:$0xff] %v3707_v55  ;;  %v3720_v30 = vmul.f32 0.2, %v3455_v7  ;;  %v3723_v4 = vmul.f32 0.2, %v3459_v29  ;;  %v1673_v55 = vsel %vm1545_vm8, %v3371_v0, %v1609_v20  ;;  %1736 = vst [vmem:[%s4276_s5 + $0x30] sm:$0xff] %v1672_v1  ;;  %v1674_v0 = vsel %vm1546_vm9, %v3375_v62, %v1610_v38 }
 0x25b   :  { %v3735_v43 = vmul.f32 0.2, %v3463_v54  ;;  %v3738_v21 = vmul.f32 0.2, %v3467_v51  ;;  %v3741_v59 = vmul.f32 0.2, %v3471_v42  ;;  %v1675_v38 = vsel %vm1547_vm10, %v3379_v27, %v1611_v58 }
 0x25c   :  { %1737 = vst [vmem:[%s4276_s5 + $0x38] sm:$0xff] %v1673_v55  ;;  %vm1560_vm7 = vcmp.gt.f32.partialorder %v3431_v49, 0.0  ;;  %v3754_v20 = vmul.f32 0.2, %v3475_v52  ;;  %v3757_v1 = vmul.f32 0.2, %v3479_v61  ;;  %v1676_v58 = vsel %vm1548_vm11, %v3383_v13, %v3624_v46 }
 0x25d   :  { %v3760_v62 = vmul.f32 0.2, %v3483_v31  ;;  %1738 = vst [vmem:[%s4276_s5 + $0x40] sm:$0xff] %v1674_v0  ;;  %vm1564_vm9 = vcmp.gt.f32.partialorder %v3447_v10, 0.0  ;;  %v3773_v55 = vmul.f32 0.2, %v3487_v3  ;;  %v1677_v46 = vsel %vm1549_vm12, %v3387_v11, %v3627_v53 }
 0x25e   :  { %4451 = vst [vmem:[#allocation15_spill] sm:$0xff] %v3757_v1  ;;  %v4455_v1 = vld [vmem:[#allocation16_spill] sm:$0xff]  ;;  %1739 = vst [vmem:[%s4276_s5 + $0x48] sm:$0xff] %v1675_v38  ;;  %vm1568_vm10 = vcmp.gt.f32.partialorder %v3463_v54, 0.0  ;;  %v4457_v0 = vld [vmem:[#allocation17_spill] sm:$0xff]  ;;  %vm1572_vm11 = vcmp.gt.f32.partialorder %v3479_v61, 0.0  ;;  %v1678_v53 = vsel %vm1550_vm13, %v3391_v2, %v3637_v12  ;;  %v1679_v12 = vsel %vm1551_vm14, %v3395_v33, %v3640_v32 }
 0x25f   :  { %4452 = vst [vmem:[#allocation25_spill] sm:$0xff] %v3760_v62  ;;  %4453 = vst [vmem:[#allocation26_spill] sm:$0xff] %v3773_v55  ;;  %v3776_v62 = vmul.f32 0.2, %v3491_v48  ;;  %v3779_v27 = vmul.f32 0.2, %v4455_v1  ;;  %v1680_v32 = vsel %vm1552_vm15, %v3399_v26, %v3643_v9  ;;  %v1681_v9 = vsel %vm1553_vm0, %v3403_v34, %v3653_v15 }
 0x260   :  { %v3799_v13 = vmul.f32 0.2, %v3507_v18  ;;  %1740 = vst [vmem:[%s4276_s5 + $0x50] sm:$0xff] %v1676_v58  ;;  %v3813_v38 = vmul.f32 0.2, %v3511_v40  ;;  %1741 = vst [vmem:[%s4276_s5 + $0x58] sm:$0xff] %v1677_v46  ;;  %v1682_v15 = vsel %vm1554_vm1, %v3407_v24, %v3656_v28 }
 0x261   :  { %4454 = vst [vmem:[#allocation27_spill] sm:$0xff] %v3776_v62  ;;  %4456 = vst [vmem:[#allocation16_spill] sm:$0xff] %v3779_v27  ;;  %v3793_v62 = vmul.f32 0.2, %v4457_v0  ;;  %v4458_v27 = vld [vmem:[#allocation18_spill] sm:$0xff]  ;;  %vm1576_vm12 = vcmp.gt.f32.partialorder %v4455_v1, 0.0 }
 0x262   :  { %v3796_v55 = vmul.f32 0.2, %v4458_v27  ;;  %4459 = vst [vmem:[#allocation17_spill] sm:$0xff] %v3799_v13  ;;  %v3816_v13 = vmul.f32 0.2, %v3515_v56  ;;  %1742 = vst [vmem:[%s4276_s5 + $0x60] sm:$0xff] %v1678_v53 }
 0x263   :  { %v3819_v11 = vmul.f32 0.2, %v3519_v39  ;;  %v3833_v58 = vmul.f32 0.2, %v3523_v25  ;;  %v3839_v2 = vmul.f32 0.2, %v3531_v17 }
 0x264   :  { %vm1580_vm13 = vcmp.gt.f32.partialorder %v3511_v40, 0.0  ;;  %v3853_v46 = vmul.f32 0.2, %v3535_v50  ;;  %1743 = vst [vmem:[%s4276_s5 + $0x68] sm:$0xff] %v1679_v12  ;;  %vm1584_vm14 = vcmp.gt.f32.partialorder %v3527_v63, 0.0  ;;  %v4469_v53 = vld [vmem:[#allocation21_spill] sm:$0xff] }
 0x265   :  { %4460 = vst [vmem:[#allocation18_spill] sm:$0xff] %v3819_v11  ;;  %4461 = vst [vmem:[#allocation28_spill] sm:$0xff] %v3833_v58  ;;  %v3836_v11 = vmul.f32 0.2, %v3527_v63  ;;  %v4467_v58 = vld [vmem:[#allocation20_spill] sm:$0xff]  ;;  %v4474_v12 = vld [vmem:[#allocation23_spill] sm:$0xff] }
 0x266   :  { %4463 = vst [vmem:[#allocation30_spill] sm:$0xff] %v3839_v2  ;;  %4464 = vst [vmem:[#allocation31_spill] sm:$0xff] %v3853_v46  ;;  %v4465_v2 = vld [vmem:[#allocation19_spill] sm:$0xff]  ;;  %v3859_v33 = vmul.f32 0.2, %v4467_v58  ;;  %v4472_v46 = vld [vmem:[#allocation22_spill] sm:$0xff] }
 0x267   :  { %4462 = vst [vmem:[#allocation29_spill] sm:$0xff] %v3836_v11  ;;  %v3856_v11 = vmul.f32 0.2, %v4465_v2  ;;  %v3879_v26 = vmul.f32 0.2, %v4472_v46  ;;  %1744 = vst [vmem:[%s4276_s5 + $0x70] sm:$0xff] %v1680_v32 }
 0x268   :  { %4468 = vst [vmem:[#allocation20_spill] sm:$0xff] %v3859_v33  ;;  %v3876_v33 = vmul.f32 0.2, %v3551_v19  ;;  %vm1588_vm15 = vcmp.gt.f32.partialorder %v4467_v58, 0.0  ;;  %v4478_v2 = vld [vmem:[#allocation24_spill] sm:$0xff]  ;;  %1745 = vst [vmem:[%s4276_s5 + $0x78] sm:$0xff] %v1681_v9 }
 0x269   :  { %4466 = vst [vmem:[#allocation32_spill] sm:$0xff] %v3856_v11  ;;  %v3873_v11 = vmul.f32 0.2, %v4469_v53  ;;  %4473 = vst [vmem:[#allocation34_spill] sm:$0xff] %v3879_v26  ;;  %v4476_v26 = vld [vmem:[#allocation6_spill] sm:$0xff]  ;;  %vm1592_vm0 = vcmp.gt.f32.partialorder %v4474_v12, 0.0 }
 0x26a   :  { %4471 = vst [vmem:[#allocation33_spill] sm:$0xff] %v3876_v33  ;;  %v3893_v33 = vmul.f32 0.2, %v4474_v12  ;;  %v3899_v34 = vmul.f32 0.2, %v4478_v2  ;;  %v4480_v32 = vld [vmem:[#allocation7_spill] sm:$0xff] }
 0x26b   :  { %4470 = vst [vmem:[#allocation21_spill] sm:$0xff] %v3873_v11  ;;  %v3896_v11 = vmul.f32 0.2, %v4476_v26  ;;  %v4484_v46 = vld [vmem:[#allocation5_spill] sm:$0xff]  ;;  %v4486_v28 = vld [vmem:[#allocation11_spill] sm:$0xff]  ;;  %1746 = vst [vmem:[%s4276_s5 + $0x80] sm:$0xff] %v1682_v15  ;;  %v1684_v15 = vsel %vm1556_vm3, %v3415_v36, %v3669_v23 }
 0x26c   :  { %4475 = vst [vmem:[#allocation23_spill] sm:$0xff] %v3893_v33  ;;  %4479 = vst [vmem:[#allocation35_spill] sm:$0xff] %v3899_v34  ;;  %v4482_v34 = vld [vmem:[#allocation8_spill] sm:$0xff]  ;;  %v3919_v24 = vmul.f32 0.2, %v4484_v46  ;;  %v1683_v9 = vsel %vm1555_vm2, %v3411_v16, %v4486_v28  ;;  %vm1597_vm5 = vcmp.gt.f32.partialorder %v4484_v46, 0.0 }
 0x26d   :  { %4477 = vst [vmem:[#allocation6_spill] sm:$0xff] %v3896_v11  ;;  %v3913_v11 = vmul.f32 0.2, %v4480_v32  ;;  %v3916_v33 = vmul.f32 0.2, %v4482_v34  ;;  %vm1596_vm1 = vcmp.gt.f32.partialorder %v4482_v34, 0.0 }
 0x26e   :  { %4485 = vst [vmem:[#allocation5_spill] sm:$0xff] %v3919_v24  ;;  %v4487_v32 = vld [vmem:[#allocation3_spill] sm:$0xff]  ;;  %v4489_v2 = vld [vmem:[#allocation9_spill] sm:$0xff]  ;;  %1747 = vst [vmem:[%s4276_s5 + $0x88] sm:$0xff] %v1683_v9  ;;  %vm4493_vm3 = vcmp.gt.f32.partialorder %v3423_v41, 0.0  ;;  %vm4494_vm6 = vcmp.gt.f32.partialorder %v3427_v44, 0.0  ;;  %v1688_v9 = vsel %vm1560_vm7, %v3431_v49, %v3688_v60 }
 0x26f   :  { %4481 = vst [vmem:[#allocation36_spill] sm:$0xff] %v3913_v11  ;;  %4483 = vst [vmem:[#allocation8_spill] sm:$0xff] %v3916_v33  ;;  %v4488_v11 = vld [vmem:[#allocation4_spill] sm:$0xff]  ;;  %v3933_v33 = vmul.f32 0.2, %v4487_v32  ;;  %vm1600_vm2 = vcmp.gt.f32.partialorder %v4489_v2, 0.0  ;;  %v1687_v23 = vsel %vm4494_vm6, %v3427_v44, %v3685_v5 }
 0x270   :  { %v3936_v24 = vmul.f32 0.2, %v4488_v11  ;;  %v3939_v16 = vmul.f32 0.2, %v4489_v2  ;;  %v4491_v28 = vld [vmem:[#allocation10_spill] sm:$0xff]  ;;  %v4492_v11 = vld [vmem:[#allocation12_spill] sm:$0xff] }
 0x271   :  { %vm1601_vm8 = vcmp.gt.f32.partialorder %v4491_v28, 0.0  ;;  %v3951_v32 = vmul.f32 0.2, %v4491_v28  ;;  %v1686_v36 = vsel %vm4493_vm3, %v3423_v41, %v4492_v11  ;;  %1748 = vst [vmem:[%s4276_s5 + $0x90] sm:$0xff] %v1684_v15  ;;  %vm4497_vm3 = vcmp.gt.f32.partialorder %v3439_v37, 0.0  ;;  %1751 = vst [vmem:[%s4276_s5 + $0xa8] sm:$0xff] %v1687_v23 }
 0x272   :  { %4490 = vst [vmem:[#allocation11_spill] sm:$0xff] %v3939_v16  ;;  %v1685_v16 = vsel %vm1557_vm4, %v3419_v35, %v3672_v14  ;;  %v4495_v35 = vld [vmem:[#allocation13_spill] sm:$0xff]  ;;  %vm4496_vm4 = vcmp.gt.f32.partialorder %v3435_v47, 0.0  ;;  %v1690_v41 = vsel %vm4497_vm3, %v3439_v37, %v3701_v6  ;;  %vm4498_vm6 = vcmp.gt.f32.partialorder %v3443_v57, 0.0  ;;  %1750 = vst [vmem:[%s4276_s5 + $0xa0] sm:$0xff] %v1686_v36  ;;  %v4499_v49 = vld [vmem:[#allocation14_spill] sm:$0xff] }
 0x273   :  { %v1689_v14 = vsel %vm4496_vm4, %v3435_v47, %v4495_v35  ;;  %v1691_v44 = vsel %vm4498_vm6, %v3443_v57, %v3704_v8  ;;  %1749 = vst [vmem:[%s4276_s5 + $0x98] sm:$0xff] %v1685_v16  ;;  %v1692_v47 = vsel %vm1564_vm9, %v3447_v10, %v4499_v49  ;;  %vm4500_vm7 = vcmp.gt.f32.partialorder %v3451_v22, 0.0  ;;  %1752 = vst [vmem:[%s4276_s5 + $0xb0] sm:$0xff] %v1688_v9  ;;  %v4509_v60 = vld [vmem:[#allocation26_spill] sm:$0xff]  ;;  %v4511_v8 = vld [vmem:[#allocation27_spill] sm:$0xff] }
 0x274   :  { %v1693_v37 = vsel %vm4500_vm7, %v3451_v22, %v3717_v45  ;;  %vm4501_vm4 = vcmp.gt.f32.partialorder %v3455_v7, 0.0  ;;  %vm4502_vm3 = vcmp.gt.f32.partialorder %v3459_v29, 0.0  ;;  %1753 = vst [vmem:[%s4276_s5 + $0xb8] sm:$0xff] %v1689_v14  ;;  %1754 = vst [vmem:[%s4276_s5 + $0xc0] sm:$0xff] %v1690_v41  ;;  %v1696_v10 = vsel %vm1568_vm10, %v3463_v54, %v3735_v43  ;;  %v4506_v54 = vld [vmem:[#allocation15_spill] sm:$0xff]  ;;  %v4534_v11 = vld [vmem:[#allocation33_spill] sm:$0xff] }
 0x275   :  { %v1694_v57 = vsel %vm4501_vm4, %v3455_v7, %v3720_v30  ;;  %v1695_v5 = vsel %vm4502_vm3, %v3459_v29, %v3723_v4  ;;  %1755 = vst [vmem:[%s4276_s5 + $0xc8] sm:$0xff] %v1691_v44  ;;  %vm4503_vm9 = vcmp.gt.f32.partialorder %v3467_v51, 0.0  ;;  %vm4504_vm6 = vcmp.gt.f32.partialorder %v3471_v42, 0.0  ;;  %1756 = vst [vmem:[%s4276_s5 + $0xd0] sm:$0xff] %v1692_v47  ;;  %v4516_v30 = vld [vmem:[#allocation17_spill] sm:$0xff]  ;;  %v4536_v15 = vld [vmem:[#allocation34_spill] sm:$0xff] }
 0x276   :  { %v1697_v22 = vsel %vm4503_vm9, %v3467_v51, %v3738_v21  ;;  %v1698_v7 = vsel %vm4504_vm6, %v3471_v42, %v3741_v59  ;;  %vm4505_vm7 = vcmp.gt.f32.partialorder %v3475_v52, 0.0  ;;  %1757 = vst [vmem:[%s4276_s5 + $0xd8] sm:$0xff] %v1693_v37  ;;  %1758 = vst [vmem:[%s4276_s5 + $0xe0] sm:$0xff] %v1694_v57  ;;  %v1700_v51 = vsel %vm1572_vm11, %v3479_v61, %v4506_v54  ;;  %v4507_v42 = vld [vmem:[#allocation25_spill] sm:$0xff]  ;;  %v4513_v61 = vld [vmem:[#allocation16_spill] sm:$0xff] }
 0x277   :  { %v1699_v29 = vsel %vm4505_vm7, %v3475_v52, %v3754_v20  ;;  %1759 = vst [vmem:[%s4276_s5 + $0xe8] sm:$0xff] %v1695_v5  ;;  %vm4508_vm10 = vcmp.gt.f32.partialorder %v3483_v31, 0.0  ;;  %vm4510_vm4 = vcmp.gt.f32.partialorder %v3487_v3, 0.0  ;;  %vm4512_vm3 = vcmp.gt.f32.partialorder %v3491_v48, 0.0  ;;  %1760 = vst [vmem:[%s4276_s5 + $0xf0] sm:$0xff] %v1696_v10  ;;  %v4519_v21 = vld [vmem:[#allocation18_spill] sm:$0xff] }
 0x278   :  { %v1701_v52 = vsel %vm4508_vm10, %v3483_v31, %v4507_v42  ;;  %v1702_v6 = vsel %vm4510_vm4, %v3487_v3, %v4509_v60  ;;  %v1703_v45 = vsel %vm4512_vm3, %v3491_v48, %v4511_v8  ;;  %1761 = vst [vmem:[%s4276_s5 + $0xf8] sm:$0xff] %v1697_v22  ;;  %1762 = vst [vmem:[%s4276_s5 + $0x100] sm:$0xff] %v1698_v7  ;;  %vm4514_vm11 = vcmp.gt.f32.partialorder %v4457_v0, 0.0  ;;  %v4521_v20 = vld [vmem:[#allocation28_spill] sm:$0xff]  ;;  %v4537_v36 = vld [vmem:[#allocation22_spill] sm:$0xff] }
 0x279   :  { %1763 = vst [vmem:[%s4276_s5 + $0x108] sm:$0xff] %v1699_v29  ;;  %v1704_v31 = vsel %vm1576_vm12, %v4455_v1, %v4513_v61  ;;  %v1705_v3 = vsel %vm4514_vm11, %v4457_v0, %v3793_v62  ;;  %vm4515_vm9 = vcmp.gt.f32.partialorder %v4458_v27, 0.0  ;;  %vm4517_vm6 = vcmp.gt.f32.partialorder %v3507_v18, 0.0  ;;  %1764 = vst [vmem:[%s4276_s5 + $0x110] sm:$0xff] %v1700_v51  ;;  %v4526_v62 = vld [vmem:[#allocation31_spill] sm:$0xff]  ;;  %v4543_v14 = vld [vmem:[#allocation24_spill] sm:$0xff] }
 0x27a   :  { %v1706_v48 = vsel %vm4515_vm9, %v4458_v27, %v3796_v55  ;;  %v1707_v4 = vsel %vm4517_vm6, %v3507_v18, %v4516_v30  ;;  %1765 = vst [vmem:[%s4276_s5 + $0x118] sm:$0xff] %v1701_v52  ;;  %1766 = vst [vmem:[%s4276_s5 + $0x120] sm:$0xff] %v1702_v6  ;;  %v1708_v18 = vsel %vm1580_vm13, %v3511_v40, %v3813_v38  ;;  %vm4518_vm12 = vcmp.gt.f32.partialorder %v3515_v56, 0.0  ;;  %v4523_v40 = vld [vmem:[#allocation29_spill] sm:$0xff]  ;;  %v4528_v27 = vld [vmem:[#allocation32_spill] sm:$0xff] }
 0x27b   :  { %1767 = vst [vmem:[%s4276_s5 + $0x128] sm:$0xff] %v1703_v45  ;;  %v1709_v43 = vsel %vm4518_vm12, %v3515_v56, %v3816_v13  ;;  %vm4520_vm7 = vcmp.gt.f32.partialorder %v3519_v39, 0.0  ;;  %vm4522_vm10 = vcmp.gt.f32.partialorder %v3523_v25, 0.0  ;;  %1768 = vst [vmem:[%s4276_s5 + $0x130] sm:$0xff] %v1704_v31  ;;  %v1712_v56 = vsel %vm1584_vm14, %v3527_v63, %v4523_v40  ;;  %v4529_v0 = vld [vmem:[#allocation19_spill] sm:$0xff]  ;;  %v4531_v63 = vld [vmem:[#allocation20_spill] sm:$0xff] }
 0x27c   :  { %v1710_v59 = vsel %vm4520_vm7, %v3519_v39, %v4519_v21  ;;  %v1711_v1 = vsel %vm4522_vm10, %v3523_v25, %v4521_v20  ;;  %1769 = vst [vmem:[%s4276_s5 + $0x138] sm:$0xff] %v1705_v3  ;;  %1770 = vst [vmem:[%s4276_s5 + $0x140] sm:$0xff] %v1706_v48  ;;  %v4524_v39 = vld [vmem:[#allocation30_spill] sm:$0xff]  ;;  %vm4525_vm13 = vcmp.gt.f32.partialorder %v3531_v17, 0.0  ;;  %vm4527_vm4 = vcmp.gt.f32.partialorder %v3535_v50, 0.0  ;;  %v4542_v35 = vld [vmem:[#allocation35_spill] sm:$0xff] }
 0x27d   :  { %1771 = vst [vmem:[%s4276_s5 + $0x148] sm:$0xff] %v1707_v4  ;;  %v1713_v25 = vsel %vm4525_vm13, %v3531_v17, %v4524_v39  ;;  %v1714_v55 = vsel %vm4527_vm4, %v3535_v50, %v4526_v62  ;;  %vm4530_vm3 = vcmp.gt.f32.partialorder %v4529_v0, 0.0  ;;  %1772 = vst [vmem:[%s4276_s5 + $0x150] sm:$0xff] %v1708_v18  ;;  %v1716_v17 = vsel %vm1588_vm15, %v4467_v58, %v4531_v63  ;;  %v4532_v50 = vld [vmem:[#allocation21_spill] sm:$0xff]  ;;  %v4545_v44 = vld [vmem:[#allocation36_spill] sm:$0xff] }
 0x27e   :  { %v1715_v13 = vsel %vm4530_vm3, %v4529_v0, %v4528_v27  ;;  %1773 = vst [vmem:[%s4276_s5 + $0x158] sm:$0xff] %v1709_v43  ;;  %1774 = vst [vmem:[%s4276_s5 + $0x160] sm:$0xff] %v1710_v59  ;;  %vm4533_vm14 = vcmp.gt.f32.partialorder %v4469_v53, 0.0  ;;  %vm4535_vm11 = vcmp.gt.f32.partialorder %v3551_v19, 0.0  ;;  %vm4538_vm9 = vcmp.gt.f32.partialorder %v4537_v36, 0.0  ;;  %v4546_v49 = vld [vmem:[#allocation7_spill] sm:$0xff] }
 0x27f   :  { %1775 = vst [vmem:[%s4276_s5 + $0x168] sm:$0xff] %v1711_v1  ;;  %v1717_v38 = vsel %vm4533_vm14, %v4469_v53, %v4532_v50  ;;  %v1718_v16 = vsel %vm4535_vm11, %v3551_v19, %v4534_v11  ;;  %v1719_v23 = vsel %vm4538_vm9, %v4537_v36, %v4536_v15  ;;  %1776 = vst [vmem:[%s4276_s5 + $0x170] sm:$0xff] %v1712_v56  ;;  %v4539_v19 = vld [vmem:[#allocation23_spill] sm:$0xff]  ;;  %v4540_v53 = vld [vmem:[#allocation6_spill] sm:$0xff]  ;;  %vm4541_vm15 = vcmp.gt.f32.partialorder %v4476_v26, 0.0 }
 0x280   :  { %1777 = vst [vmem:[%s4276_s5 + $0x178] sm:$0xff] %v1713_v25  ;;  %1778 = vst [vmem:[%s4276_s5 + $0x180] sm:$0xff] %v1714_v55  ;;  %v1720_v58 = vsel %vm1592_vm0, %v4474_v12, %v4539_v19  ;;  %v1721_v9 = vsel %vm4541_vm15, %v4476_v26, %v4540_v53  ;;  %vm4544_vm6 = vcmp.gt.f32.partialorder %v4543_v14, 0.0  ;;  %vm4547_vm12 = vcmp.gt.f32.partialorder %v4546_v49, 0.0  ;;  %v4548_v26 = vld [vmem:[#allocation8_spill] sm:$0xff]  ;;  %v4549_v37 = vld [vmem:[#allocation5_spill] sm:$0xff] }
 0x281   :  { %1779 = vst [vmem:[%s4276_s5 + $0x188] sm:$0xff] %v1715_v13  ;;  %v1722_v41 = vsel %vm4544_vm6, %v4543_v14, %v4542_v35  ;;  %v1723_v47 = vsel %vm4547_vm12, %v4546_v49, %v4545_v44  ;;  %1780 = vst [vmem:[%s4276_s5 + $0x190] sm:$0xff] %v1716_v17  ;;  %v1724_v12 = vsel %vm1596_vm1, %v4482_v34, %v4548_v26  ;;  %v4550_v5 = vld [vmem:[#allocation3_spill] sm:$0xff]  ;;  %v4552_v22 = vld [vmem:[#allocation4_spill] sm:$0xff] }
 0x282   :  { %1781 = vst [vmem:[%s4276_s5 + $0x198] sm:$0xff] %v1717_v38  ;;  %1782 = vst [vmem:[%s4276_s5 + $0x1a0] sm:$0xff] %v1718_v16  ;;  %v1725_v57 = vsel %vm1597_vm5, %v4484_v46, %v4549_v37  ;;  %vm4551_vm0 = vcmp.gt.f32.partialorder %v4550_v5, 0.0  ;;  %vm4553_vm7 = vcmp.gt.f32.partialorder %v4552_v22, 0.0  ;;  %v4554_v46 = vld [vmem:[#allocation11_spill] sm:$0xff]  ;;  %v1729_v34 = vsel %vm1601_vm8, %v4491_v28, %v3951_v32 }
 0x283   :  { %1783 = vst [vmem:[%s4276_s5 + $0x1a8] sm:$0xff] %v1719_v23  ;;  %v1726_v10 = vsel %vm4551_vm0, %v4550_v5, %v3933_v33  ;;  %v1727_v7 = vsel %vm4553_vm7, %v4552_v22, %v3936_v24  ;;  %1784 = vst [vmem:[%s4276_s5 + $0x1b0] sm:$0xff] %v1720_v58  ;;  %v1728_v33 = vsel %vm1600_vm2, %v4489_v2, %v4554_v46 }
 0x284   :  { %1785 = vst [vmem:[%s4276_s5 + $0x1b8] sm:$0xff] %v1721_v9  ;;  %1786 = vst [vmem:[%s4276_s5 + $0x1c0] sm:$0xff] %v1722_v41 }
 0x285   :  { %1787 = vst [vmem:[%s4276_s5 + $0x1c8] sm:$0xff] %v1723_v47  ;;  %1788 = vst [vmem:[%s4276_s5 + $0x1d0] sm:$0xff] %v1724_v12 }
 0x286   :  { %1789 = vst [vmem:[%s4276_s5 + $0x1d8] sm:$0xff] %v1725_v57  ;;  %1790 = vst [vmem:[%s4276_s5 + $0x1e0] sm:$0xff] %v1726_v10 }
 0x287   :  { %1791 = vst [vmem:[%s4276_s5 + $0x1e8] sm:$0xff] %v1727_v7  ;;  %1792 = vst [vmem:[%s4276_s5 + $0x1f0] sm:$0xff] %v1728_v33 }
 0x288   :  { %1793 = vst [vmem:[%s4276_s5 + $0x1f8] sm:$0xff] %v1729_v34 }

// kernel: d1_forward.7
= control target key start
LH: loop header
LB: loop body
LE: loop exit
PB: predicated region body
PF: predicated region fallthrough
CT: control target
= control target key end

     0   :  { %s817_s1 = inlined_call_operand.vmem [shape: bf16[128,128], index: 1, kind: input, shape index: {}]   ;;  %s818_s0 = inlined_call_operand.vmem [shape: bf16[128,128], index: 0, kind: input, shape index: {}]   ;;  %s819_s2 = inlined_call_operand.vmem [shape: f32[1,128], index: 2, kind: input, shape index: {}]   ;;  %s820_s3 = inlined_call_operand.vmem [shape: f32[1,128], index: 3, kind: input, shape index: {}]   ;;  %s821_s4 = inlined_call_operand.vmem [shape: f32[1,128], index: 4, kind: input, shape index: {}]   ;;  %s822_s5 = inlined_call_operand.vmem [shape: f32[128,128], index: 5, kind: output, shape index: {}]  }
   0x1   :  { %v648_v0 = vld [vmem:[%s817_s1] sm:$0xff]   ;;  %v649_v1 = vld [vmem:[%s817_s1 + $0x8] sm:$0xff]   ;;  %v650_v2 = vld [vmem:[%s817_s1 + $0x10] sm:$0xff]  }
   0x2   :  { %600 = vmatprep.subr.bf16.mxu0 %v648_v0  ;;  %632 = vmatprep.subr.bf16.mxu1 %v648_v0  ;;  %v651_v3 = vld [vmem:[%s817_s1 + $0x18] sm:$0xff]   ;;  %v656_v4 = vld [vmem:[%s818_s0] sm:$0xff]   ;;  %v653_v7 = vld [vmem:[%s817_s1 + $0x28] sm:$0xff]  }
   0x3   :  { %601 = vmatpush3.bf16.msra.mxu0 %v648_v0  ;;  %640 = vmatpush3.bf16.msra.mxu1 %v648_v0  ;;  %v652_v5 = vld [vmem:[%s817_s1 + $0x20] sm:$0xff]   ;;  %v654_v8 = vld [vmem:[%s817_s1 + $0x30] sm:$0xff]   ;;  %v655_v9 = vld [vmem:[%s817_s1 + $0x38] sm:$0xff]  }
   0x4   :  { %602 = vmatprep.subr.bf16.mxu0 %v649_v1  ;;  %633 = vmatprep.subr.bf16.mxu1 %v649_v1  ;;  %v660_v6 = vld [vmem:[%s818_s0 + $0x20] sm:$0xff]   ;;  %v657_v10 = vld [vmem:[%s818_s0 + $0x8] sm:$0xff]   ;;  %v658_v12 = vld [vmem:[%s818_s0 + $0x10] sm:$0xff]  }
   0x5   :  { %616 = vmatprep.mubr.bf16.mxu0 %v656_v4  ;;  %624 = vmatprep.mubr.bf16.mxu1 %v660_v6  ;;  %v661_v11 = vld [vmem:[%s818_s0 + $0x28] sm:$0xff]   ;;  %v662_v13 = vld [vmem:[%s818_s0 + $0x30] sm:$0xff]   ;;  %v659_v14 = vld [vmem:[%s818_s0 + $0x18] sm:$0xff]  }
   0x6   :  { %v663_v15 = vld [vmem:[%s818_s0 + $0x38] sm:$0xff]   ;;  %v581_v18 = vld [vmem:[%s819_s2] ss:$0 sm:$0xff] }
   0x7   :  { %603 = vmatpush3.bf16.msra.mxu0 %v649_v1  ;;  %641 = vmatpush3.bf16.msra.mxu1 %v649_v1 }
   0x8   :  { %604 = vmatprep.subr.bf16.mxu0 %v650_v2  ;;  %634 = vmatprep.subr.bf16.mxu1 %v650_v2 }
   0xb   :  { %605 = vmatpush3.bf16.msra.mxu0 %v650_v2  ;;  %642 = vmatpush3.bf16.msra.mxu1 %v650_v2 }
   0xc   :  { %606 = vmatprep.subr.bf16.mxu0 %v651_v3  ;;  %635 = vmatprep.subr.bf16.mxu1 %v651_v3 }
   0xf   :  { %607 = vmatpush3.bf16.msra.mxu0 %v651_v3  ;;  %643 = vmatpush3.bf16.msra.mxu1 %v651_v3 }
  0x10   :  { %608 = vmatprep.subr.bf16.mxu0 %v652_v5  ;;  %636 = vmatprep.subr.bf16.mxu1 %v652_v5 }
  0x13   :  { %609 = vmatpush3.bf16.msra.mxu0 %v652_v5  ;;  %644 = vmatpush3.bf16.msra.mxu1 %v652_v5 }
  0x14   :  { %610 = vmatprep.subr.bf16.mxu0 %v653_v7  ;;  %637 = vmatprep.subr.bf16.mxu1 %v653_v7 }
  0x17   :  { %611 = vmatpush3.bf16.msra.mxu0 %v653_v7  ;;  %645 = vmatpush3.bf16.msra.mxu1 %v653_v7 }
  0x18   :  { %612 = vmatprep.subr.bf16.mxu0 %v654_v8  ;;  %638 = vmatprep.subr.bf16.mxu1 %v654_v8 }
  0x1b   :  { %613 = vmatpush3.bf16.msra.mxu0 %v654_v8  ;;  %646 = vmatpush3.bf16.msra.mxu1 %v654_v8 }
  0x1c   :  { %614 = vmatprep.subr.bf16.mxu0 %v655_v9  ;;  %639 = vmatprep.subr.bf16.mxu1 %v655_v9 }
  0x1f   :  { %615 = vmatpush3.bf16.msra.mxu0 %v655_v9  ;;  %647 = vmatpush3.bf16.msra.mxu1 %v655_v9 }
  0x22   :  { %617 = vmatmul.mubr.bf16.vlgmr.msra.gmra.mrb[0].mxu0 %v657_v10  ;;  %625 = vmatmul.mubr.bf16.vlgmr.msra.gmra.mrb[0].mxu1 %v661_v11 }
  0x23   :  { %620 = vmatprep.mubr.bf16.mxu0 %v658_v12  ;;  %628 = vmatprep.mubr.bf16.mxu1 %v662_v13 }
  0x2a   :  { %621 = vmatmul.mubr.bf16.gmra.mrb[4].mxu0 %v659_v14  ;;  %629 = vmatmul.mubr.bf16.gmra.mrb[4].mxu1 %v663_v15 }
  0xf5   :  { %v618_v16 = vpop.f32.mrb[0].mxu0  ;;  %v626_v17 = vpop.f32.mrb[0].mxu1 }
  0xf6   :  { %v219_v19 = vpop.f32.mrb[1].mxu0  ;;  %v251_v20 = vpop.f32.mrb[1].mxu1  ;;  %v342_v27 = vadd.f32 %v618_v16, %v581_v18  ;;  %v350_v51 = vadd.f32 %v626_v17, %v581_v18 }
  0xf7   :  { %v619_v21 = vpop.f32.mrb[2].mxu0  ;;  %v627_v22 = vpop.f32.mrb[2].mxu1  ;;  %v340_v25 = vadd.f32 %v581_v18, %v219_v19  ;;  %v348_v47 = vadd.f32 %v581_v18, %v251_v20 }
  0xf8   :  { %v222_v23 = vpop.f32.mrb[3].mxu0  ;;  %v254_v24 = vpop.f32.mrb[3].mxu1  ;;  %v343_v29 = vadd.f32 %v619_v21, %v581_v18  ;;  %v351_v53 = vadd.f32 %v627_v22, %v581_v18 }
  0xf9   :  { %v341_v26 = vadd.f32 %v581_v18, %v222_v23  ;;  %v349_v50 = vadd.f32 %v581_v18, %v254_v24 }
  0xfb   :  { %v356_v28 = vadd.f32 %v341_v26, %v340_v25 }
  0xfd   :  { %v357_v30 = vadd.f32 %v356_v28, %v342_v27  ;;  %v622_v31 = vpop.f32.mrb[4].mxu0  ;;  %v630_v32 = vpop.f32.mrb[4].mxu1 }
  0xfe   :  { %v235_v33 = vpop.f32.mrb[5].mxu0  ;;  %v267_v34 = vpop.f32.mrb[5].mxu1  ;;  %v346_v43 = vadd.f32 %v622_v31, %v581_v18  ;;  %v354_v59 = vadd.f32 %v630_v32, %v581_v18 }
  0xff   :  { %v344_v35 = vadd.f32 %v581_v18, %v235_v33  ;;  %v358_v36 = vadd.f32 %v357_v30, %v343_v29  ;;  %v623_v37 = vpop.f32.mrb[6].mxu0  ;;  %v631_v38 = vpop.f32.mrb[6].mxu1  ;;  %v352_v55 = vadd.f32 %v581_v18, %v267_v34 }
 0x100   :  { %v238_v39 = vpop.f32.mrb[7].mxu0  ;;  %v270_v40 = vpop.f32.mrb[7].mxu1  ;;  %v347_v45 = vadd.f32 %v623_v37, %v581_v18  ;;  %v355_v61 = vadd.f32 %v631_v38, %v581_v18 }
 0x101   :  { %v359_v41 = vadd.f32 %v358_v36, %v344_v35  ;;  %v345_v42 = vadd.f32 %v581_v18, %v238_v39  ;;  %v353_v58 = vadd.f32 %v581_v18, %v270_v40 }
 0x103   :  { %v360_v44 = vadd.f32 %v359_v41, %v345_v42 }
 0x105   :  { %v361_v46 = vadd.f32 %v360_v44, %v346_v43 }
 0x107   :  { %v362_v48 = vadd.f32 %v361_v46, %v347_v45 }
 0x109   :  { %v363_v49 = vadd.f32 %v362_v48, %v348_v47 }
 0x10b   :  { %v364_v52 = vadd.f32 %v363_v49, %v349_v50 }
 0x10d   :  { %v365_v54 = vadd.f32 %v364_v52, %v350_v51 }
 0x10f   :  { %v366_v56 = vadd.f32 %v365_v54, %v351_v53 }
 0x111   :  { %v367_v57 = vadd.f32 %v366_v56, %v352_v55 }
 0x113   :  { %v368_v60 = vadd.f32 %v367_v57, %v353_v58 }
 0x115   :  { %v369_v62 = vadd.f32 %v368_v60, %v354_v59 }
 0x117   :  { %v370_v63 = vadd.f32 %v369_v62, %v355_v61 }
 0x119   :  { %v371_v0 = vrot.slane %v370_v63, 4 }
 0x11b   :  { %v372_v1 = vadd.f32 %v371_v0, %v370_v63 }
 0x11d   :  { %v373_v2 = vrot.slane %v372_v1, 2 }
 0x11f   :  { %v374_v3 = vadd.f32 %v373_v2, %v372_v1 }
 0x121   :  { %v375_v4 = vrot.slane %v374_v3, 1 }
 0x123   :  { %v376_v5 = vadd.f32 %v375_v4, %v374_v3 }
 0x125   :  { %v378_v6 = vmul.f32 0.0078125, %v376_v5 }
 0x127   :  { %v379_v7 = vsub.f32 %v340_v25, %v378_v6  ;;  %v380_v8 = vsub.f32 %v341_v26, %v378_v6  ;;  %v381_v9 = vsub.f32 %v342_v27, %v378_v6  ;;  %v382_v10 = vsub.f32 %v343_v29, %v378_v6 }
 0x128   :  { %v383_v11 = vsub.f32 %v344_v35, %v378_v6  ;;  %v384_v12 = vsub.f32 %v345_v42, %v378_v6  ;;  %v385_v13 = vsub.f32 %v346_v43, %v378_v6  ;;  %v386_v14 = vsub.f32 %v347_v45, %v378_v6 }
 0x129   :  { %v387_v15 = vsub.f32 %v348_v47, %v378_v6  ;;  %v388_v16 = vsub.f32 %v349_v50, %v378_v6  ;;  %v389_v17 = vsub.f32 %v350_v51, %v378_v6  ;;  %v390_v18 = vsub.f32 %v351_v53, %v378_v6 }
 0x12a   :  { %v391_v19 = vsub.f32 %v352_v55, %v378_v6  ;;  %v392_v20 = vsub.f32 %v353_v58, %v378_v6  ;;  %v393_v21 = vsub.f32 %v354_v59, %v378_v6  ;;  %v394_v22 = vsub.f32 %v355_v61, %v378_v6 }
 0x12b   :  { %v395_v23 = vmul.f32 %v379_v7, %v379_v7  ;;  %v396_v24 = vmul.f32 %v380_v8, %v380_v8  ;;  %v397_v28 = vmul.f32 %v381_v9, %v381_v9  ;;  %v398_v25 = vmul.f32 %v382_v10, %v382_v10 }
 0x12c   :  { %v399_v27 = vmul.f32 %v383_v11, %v383_v11  ;;  %v400_v31 = vmul.f32 %v384_v12, %v384_v12  ;;  %v401_v33 = vmul.f32 %v385_v13, %v385_v13  ;;  %v402_v35 = vmul.f32 %v386_v14, %v386_v14 }
 0x12d   :  { %v411_v30 = vadd.f32 %v396_v24, %v395_v23  ;;  %v403_v37 = vmul.f32 %v387_v15, %v387_v15  ;;  %v404_v39 = vmul.f32 %v388_v16, %v388_v16  ;;  %v405_v41 = vmul.f32 %v389_v17, %v389_v17  ;;  %v582_v23 = vld [vmem:[%s820_s3] ss:$0 sm:$0xff] }
 0x12e   :  { %v406_v43 = vmul.f32 %v390_v18, %v390_v18  ;;  %v407_v45 = vmul.f32 %v391_v19, %v391_v19  ;;  %v408_v47 = vmul.f32 %v392_v20, %v392_v20  ;;  %v409_v49 = vmul.f32 %v393_v21, %v393_v21 }
 0x12f   :  { %v412_v26 = vadd.f32 %v411_v30, %v397_v28  ;;  %v410_v51 = vmul.f32 %v394_v22, %v394_v22 }
 0x131   :  { %v413_v29 = vadd.f32 %v412_v26, %v398_v25 }
 0x133   :  { %v414_v32 = vadd.f32 %v413_v29, %v399_v27 }
 0x135   :  { %v415_v34 = vadd.f32 %v414_v32, %v400_v31  ;;  %v583_v32 = vld [vmem:[%s821_s4] ss:$0 sm:$0xff] }
 0x137   :  { %v416_v36 = vadd.f32 %v415_v34, %v401_v33 }
 0x139   :  { %v417_v38 = vadd.f32 %v416_v36, %v402_v35 }
 0x13b   :  { %v418_v40 = vadd.f32 %v417_v38, %v403_v37 }
 0x13d   :  { %v419_v42 = vadd.f32 %v418_v40, %v404_v39 }
 0x13f   :  { %v420_v44 = vadd.f32 %v419_v42, %v405_v41 }
 0x141   :  { %v421_v46 = vadd.f32 %v420_v44, %v406_v43 }
 0x143   :  { %v422_v48 = vadd.f32 %v421_v46, %v407_v45 }
 0x145   :  { %v423_v50 = vadd.f32 %v422_v48, %v408_v47 }
 0x147   :  { %v424_v52 = vadd.f32 %v423_v50, %v409_v49 }
 0x149   :  { %v425_v53 = vadd.f32 %v424_v52, %v410_v51 }
 0x14b   :  { %v426_v54 = vrot.slane %v425_v53, 4 }
 0x14d   :  { %v427_v55 = vadd.f32 %v426_v54, %v425_v53 }
 0x14f   :  { %v428_v56 = vrot.slane %v427_v55, 2 }
 0x151   :  { %v429_v57 = vadd.f32 %v428_v56, %v427_v55 }
 0x153   :  { %v430_v58 = vrot.slane %v429_v57, 1 }
 0x155   :  { %v431_v59 = vadd.f32 %v430_v58, %v429_v57 }
 0x157   :  { %v432_v60 = vmul.f32 0.0078125, %v431_v59 }
 0x159   :  { %v433_v61 = vadd.f32 1e-05, %v432_v60 }
 0x15b   :  { %664 = vrsqrt.f32 %v433_v61 }
 0x165   :  { %v665_v62 = vpop.eup %664 }
 0x166   :  { %v435_v63 = vmul.f32 %v665_v62, %v379_v7  ;;  %v436_v0 = vmul.f32 %v665_v62, %v380_v8  ;;  %v437_v1 = vmul.f32 %v665_v62, %v381_v9  ;;  %v438_v2 = vmul.f32 %v665_v62, %v382_v10 }
 0x167   :  { %v439_v3 = vmul.f32 %v665_v62, %v383_v11  ;;  %v440_v4 = vmul.f32 %v665_v62, %v384_v12  ;;  %v441_v5 = vmul.f32 %v665_v62, %v385_v13  ;;  %v442_v6 = vmul.f32 %v665_v62, %v386_v14 }
 0x168   :  { %v443_v24 = vmul.f32 %v665_v62, %v387_v15  ;;  %v444_v28 = vmul.f32 %v665_v62, %v388_v16  ;;  %v445_v30 = vmul.f32 %v665_v62, %v389_v17  ;;  %v446_v25 = vmul.f32 %v665_v62, %v390_v18 }
 0x169   :  { %v447_v26 = vmul.f32 %v665_v62, %v391_v19  ;;  %v448_v27 = vmul.f32 %v665_v62, %v392_v20  ;;  %v449_v29 = vmul.f32 %v665_v62, %v393_v21  ;;  %v450_v31 = vmul.f32 %v665_v62, %v394_v22 }
 0x16a   :  { %v458_v7 = vmul.f32 %v582_v23, %v435_v63  ;;  %v459_v8 = vmul.f32 %v582_v23, %v436_v0  ;;  %v460_v9 = vmul.f32 %v582_v23, %v437_v1  ;;  %v461_v10 = vmul.f32 %v582_v23, %v438_v2 }
 0x16b   :  { %v462_v11 = vmul.f32 %v582_v23, %v439_v3  ;;  %v463_v12 = vmul.f32 %v582_v23, %v440_v4  ;;  %v464_v13 = vmul.f32 %v582_v23, %v441_v5  ;;  %v465_v14 = vmul.f32 %v582_v23, %v442_v6 }
 0x16c   :  { %v466_v15 = vmul.f32 %v582_v23, %v443_v24  ;;  %v467_v16 = vmul.f32 %v582_v23, %v444_v28  ;;  %v468_v17 = vmul.f32 %v582_v23, %v445_v30  ;;  %v469_v18 = vmul.f32 %v582_v23, %v446_v25 }
 0x16d   :  { %v470_v19 = vmul.f32 %v582_v23, %v447_v26  ;;  %v471_v20 = vmul.f32 %v582_v23, %v448_v27  ;;  %v472_v21 = vmul.f32 %v582_v23, %v449_v29  ;;  %v473_v22 = vmul.f32 %v582_v23, %v450_v31 }
 0x16e   :  { %v481_v33 = vadd.f32 %v583_v32, %v458_v7  ;;  %v482_v34 = vadd.f32 %v583_v32, %v459_v8  ;;  %v483_v35 = vadd.f32 %v583_v32, %v460_v9  ;;  %v484_v36 = vadd.f32 %v583_v32, %v461_v10 }
 0x16f   :  { %v485_v37 = vadd.f32 %v583_v32, %v462_v11  ;;  %v486_v38 = vadd.f32 %v583_v32, %v463_v12  ;;  %v487_v39 = vadd.f32 %v583_v32, %v464_v13  ;;  %v488_v40 = vadd.f32 %v583_v32, %v465_v14 }
 0x170   :  { %v489_v41 = vadd.f32 %v583_v32, %v466_v15  ;;  %v490_v42 = vadd.f32 %v583_v32, %v467_v16  ;;  %v491_v43 = vadd.f32 %v583_v32, %v468_v17  ;;  %v492_v44 = vadd.f32 %v583_v32, %v469_v18 }
 0x171   :  { %v493_v45 = vadd.f32 %v583_v32, %v470_v19  ;;  %v494_v46 = vadd.f32 %v583_v32, %v471_v20  ;;  %v495_v47 = vadd.f32 %v583_v32, %v472_v21  ;;  %v496_v48 = vadd.f32 %v583_v32, %v473_v22 }
 0x172   :  { %vm497_vm0 = vcmp.gt.f32.partialorder %v481_v33, 0.0  ;;  %vm498_vm1 = vcmp.gt.f32.partialorder %v482_v34, 0.0  ;;  %vm499_vm2 = vcmp.gt.f32.partialorder %v483_v35, 0.0  ;;  %vm500_vm3 = vcmp.gt.f32.partialorder %v484_v36, 0.0 }
 0x173   :  { %vm501_vm4 = vcmp.gt.f32.partialorder %v485_v37, 0.0  ;;  %vm502_vm5 = vcmp.gt.f32.partialorder %v486_v38, 0.0  ;;  %vm503_vm6 = vcmp.gt.f32.partialorder %v487_v39, 0.0  ;;  %vm504_vm7 = vcmp.gt.f32.partialorder %v488_v40, 0.0 }
 0x174   :  { %vm505_vm8 = vcmp.gt.f32.partialorder %v489_v41, 0.0  ;;  %vm506_vm9 = vcmp.gt.f32.partialorder %v490_v42, 0.0  ;;  %vm507_vm10 = vcmp.gt.f32.partialorder %v491_v43, 0.0  ;;  %vm508_vm11 = vcmp.gt.f32.partialorder %v492_v44, 0.0 }
 0x175   :  { %vm509_vm12 = vcmp.gt.f32.partialorder %v493_v45, 0.0  ;;  %vm510_vm13 = vcmp.gt.f32.partialorder %v494_v46, 0.0  ;;  %vm511_vm14 = vcmp.gt.f32.partialorder %v495_v47, 0.0  ;;  %vm512_vm15 = vcmp.gt.f32.partialorder %v496_v48, 0.0 }
 0x176   :  { %v513_v49 = vmul.f32 0.2, %v481_v33  ;;  %v514_v50 = vmul.f32 0.2, %v482_v34  ;;  %v515_v51 = vmul.f32 0.2, %v483_v35 }
 0x177   :  { %v516_v52 = vmul.f32 0.2, %v484_v36  ;;  %v517_v53 = vmul.f32 0.2, %v485_v37  ;;  %v518_v54 = vmul.f32 0.2, %v486_v38 }
 0x178   :  { %v519_v55 = vmul.f32 0.2, %v487_v39  ;;  %v520_v56 = vmul.f32 0.2, %v488_v40  ;;  %v521_v57 = vmul.f32 0.2, %v489_v41  ;;  %v529_v58 = vsel %vm497_vm0, %v481_v33, %v513_v49 }
 0x179   :  { %v522_v59 = vmul.f32 0.2, %v490_v42  ;;  %v523_v60 = vmul.f32 0.2, %v491_v43  ;;  %v524_v61 = vmul.f32 0.2, %v492_v44  ;;  %v530_v62 = vsel %vm498_vm1, %v482_v34, %v514_v50  ;;  %545 = vst [vmem:[%s822_s5] sm:$0xff] %v529_v58 }
 0x17a   :  { %v525_v63 = vmul.f32 0.2, %v493_v45  ;;  %v526_v0 = vmul.f32 0.2, %v494_v46  ;;  %v527_v1 = vmul.f32 0.2, %v495_v47  ;;  %v531_v2 = vsel %vm499_vm2, %v483_v35, %v515_v51 }
 0x17b   :  { %546 = vst [vmem:[%s822_s5 + $0x8] sm:$0xff] %v530_v62  ;;  %v528_v3 = vmul.f32 0.2, %v496_v48  ;;  %v532_v4 = vsel %vm500_vm3, %v484_v36, %v516_v52  ;;  %v533_v5 = vsel %vm501_vm4, %v485_v37, %v517_v53  ;;  %v534_v6 = vsel %vm502_vm5, %v486_v38, %v518_v54  ;;  %547 = vst [vmem:[%s822_s5 + $0x10] sm:$0xff] %v531_v2 }
 0x17c   :  { %v535_v23 = vsel %vm503_vm6, %v487_v39, %v519_v55  ;;  %v536_v24 = vsel %vm504_vm7, %v488_v40, %v520_v56  ;;  %v537_v28 = vsel %vm505_vm8, %v489_v41, %v521_v57  ;;  %v538_v30 = vsel %vm506_vm9, %v490_v42, %v522_v59  ;;  %548 = vst [vmem:[%s822_s5 + $0x18] sm:$0xff] %v532_v4 }
 0x17d   :  { %549 = vst [vmem:[%s822_s5 + $0x20] sm:$0xff] %v533_v5  ;;  %550 = vst [vmem:[%s822_s5 + $0x28] sm:$0xff] %v534_v6  ;;  %v539_v25 = vsel %vm507_vm10, %v491_v43, %v523_v60  ;;  %v540_v26 = vsel %vm508_vm11, %v492_v44, %v524_v61  ;;  %v541_v27 = vsel %vm509_vm12, %v493_v45, %v525_v63 }
 0x17e   :  { %v542_v29 = vsel %vm510_vm13, %v494_v46, %v526_v0  ;;  %551 = vst [vmem:[%s822_s5 + $0x30] sm:$0xff] %v535_v23  ;;  %552 = vst [vmem:[%s822_s5 + $0x38] sm:$0xff] %v536_v24  ;;  %v543_v31 = vsel %vm511_vm14, %v495_v47, %v527_v1  ;;  %v544_v7 = vsel %vm512_vm15, %v496_v48, %v528_v3 }
 0x17f   :  { %553 = vst [vmem:[%s822_s5 + $0x40] sm:$0xff] %v537_v28  ;;  %554 = vst [vmem:[%s822_s5 + $0x48] sm:$0xff] %v538_v30 }
 0x180   :  { %555 = vst [vmem:[%s822_s5 + $0x50] sm:$0xff] %v539_v25  ;;  %556 = vst [vmem:[%s822_s5 + $0x58] sm:$0xff] %v540_v26 }
 0x181   :  { %557 = vst [vmem:[%s822_s5 + $0x60] sm:$0xff] %v541_v27  ;;  %558 = vst [vmem:[%s822_s5 + $0x68] sm:$0xff] %v542_v29 }
 0x182   :  { %559 = vst [vmem:[%s822_s5 + $0x70] sm:$0xff] %v543_v31  ;;  %560 = vst [vmem:[%s822_s5 + $0x78] sm:$0xff] %v544_v7 }

// kernel: d1_forward.8
= control target key start
LH: loop header
LB: loop body
LE: loop exit
PB: predicated region body
PF: predicated region fallthrough
CT: control target
= control target key end

     0   :  { %s721_s18 = smov 0   ;;  %s723_s19 = smov 0   ;;  %s814_s0 = inlined_call_operand.vmem [shape: bf16[32,256], index: 0, kind: input, shape index: {}]   ;;  %s815_s1 = inlined_call_operand.vmem [shape: bf16[256,128], index: 1, kind: input, shape index: {}]   ;;  %s816_s2 = inlined_call_operand.vmem [shape: f32[1,128], index: 2, kind: input, shape index: {}]   ;;  %s817_s3 = inlined_call_operand.vmem [shape: f32[1,128], index: 3, kind: input, shape index: {}]   ;;  %s818_s4 = inlined_call_operand.vmem [shape: f32[1,128], index: 4, kind: input, shape index: {}]   ;;  %s819_s5 = inlined_call_operand.vmem [shape: f32[32,128], index: 5, kind: output, shape index: {}]  }
   0x1   :  { %s725_s20 = smov 0  }
   0x2 LB: > { %s737_s21 = sadd.s32 4294967295, %s688_s20   ;;  %s740_s22 = sadd.s32 1, %s688_s20   ;;  %s688_s20 = sphi %s725_s20, %s822_s20   ;;  %s684_s19 = sphi %s723_s19, %s821_s19   ;;  %s680_s18 = sphi %s721_s18, %s820_s18  }
   0x3   : > { %s19_s23 = ssub.s32 %s688_s20, %s740_s22  ;;  %s22_s24 = sadd.s32 1, %s684_s19 }
   0x4   : > { %p20_p0 = scmp.eq.s32.totalorder %s19_s23, 0  ;;  %p29_p1 = scmp.ne.s32.totalorder %s684_s19, %s680_s18 }
   0x5   : > { %p30_p2 = scmp.eq.s32.totalorder %s688_s20, 0  ;;  %p575_p4 = scmp.ge.s32.totalorder %s688_s20, 2 }
   0x6   : > { %s749_s25 = scalar_select %p20_p0, %s684_s19, %s22_s24  }
   0x7   : > { %p31_p3 = por %p30_p2, %p29_p1  ;;  %174 = sbr.rel (%p575_p4) target bundleno = 21 (0x15), region = 28 }
   0xe   : > { %177 = sbr.rel (!%p31_p3) target bundleno = 21 (0x15), region = 32  ;;  %s179_s26 = sand.u32 (%p31_p3), 1, %s684_s19  }
   0xf   : > { %s577_s27 = sshll.u32 (%p31_p3), %s688_s20, 2  ;;  %s576_s28 = sshll.u32 (%p31_p3), %s179_s26, 4 }
  0x10   : > { %s183_s6 = scalar_lea.vmem (%p31_p3), %s814_s0, %s577_s27  ;;  %s181_s7 = scalar_lea.vmem (%p31_p3), [#allocation3], %s576_s28 }
  0x11   : > { %v199_v0 = vld [vmem:[%s183_s6] sm:$0xf] (%p31_p3)  ;;  %v201_v1 = vld [vmem:[%s183_s6 + $0x8] sm:$0xf] (%p31_p3)  ;;  %v203_v2 = vld [vmem:[%s183_s6 + $0x10] sm:$0xf] (%p31_p3) }
  0x12   : > { %200 = vst [vmem:[%s181_s7] sm:$0xf] (%p31_p3), %v199_v0  ;;  %202 = vst [vmem:[%s181_s7 + $0x4] sm:$0xf] (%p31_p3), %v201_v1  ;;  %v205_v3 = vld [vmem:[%s183_s6 + $0x18] sm:$0xf] (%p31_p3) }
  0x13   : > { %204 = vst [vmem:[%s181_s7 + $0x8] sm:$0xf] (%p31_p3), %v203_v2  ;;  %206 = vst [vmem:[%s181_s7 + $0xc] sm:$0xf] (%p31_p3), %v205_v3 }
  0x15 PF: > { %p578_p5 = scmp.ge.s32.totalorder %s688_s20, 1  ;;  %p245_p6 = scmp.lt.s32.totalorder %s688_s20, 3 }
  0x17   : > { %p246_p7 = pnand %p578_p5, %p245_p6 }
  0x18   : > { %s252_s8 = sand.u32 (!%p246_p7), 1, %s680_s18   ;;  %s580_s9 = sshll.u32 (!%p246_p7), %s737_s21, 4 }
  0x19   : > { %249 = sbr.rel (%p246_p7) target bundleno = 367 (0x16f), region = 77  ;;  %s761_s10 = sshll.u32 (!%p246_p7), %s252_s8, 4 }
  0x1a   : > { %p280_p8 = scmp.lt.s32.totalorder (!%p246_p7), %s580_s9, 31  ;;  %s254_s15 = scalar_lea.vmem (!%p246_p7), [#allocation3], %s761_s10 }
  0x1b   : > { %p582_p9 = scmp.ne.s32.totalorder (!%p246_p7), %s737_s21, 0 }
  0x20   : > { %s824_s9 = smov (!%p280_p8, %s580_s9), 31  ;;  %289 = sbr.rel (%p582_p9) target bundleno = 39 (0x27), region = 85 }
  0x21   : > { %s581_s11 = sshll.u32 %s824_s9, 2  ;;  %v690_v4 = vmov (!%p582_p9), 0.0  }
  0x22   : > { %s766_s14 = scalar_lea.vmem %s815_s1, %s581_s11  ;;  %290 = vst [vmem:[#allocation2] sm:$0xff] (!%p582_p9), %v690_v4  ;;  %291 = vst [vmem:[#allocation2 + $0x8] sm:$0xff] (!%p582_p9), %v690_v4 }
  0x23   : > { %292 = vst [vmem:[#allocation2 + $0x10] sm:$0xff] (!%p582_p9), %v690_v4  ;;  %293 = vst [vmem:[#allocation2 + $0x18] sm:$0xff] (!%p582_p9), %v690_v4 }
  0x27 PF: > { %v654_v5 = vld [vmem:[%s766_s14] sm:$0xff]   ;;  %v655_v6 = vld [vmem:[%s766_s14 + $0x8] sm:$0xff]   ;;  %v656_v7 = vld [vmem:[%s766_s14 + $0x10] sm:$0xff]   ;;  %p593_p10 = scmp.ne.s32.totalorder %s737_s21, 1 }
  0x28   : > { %609 = vmatprep.subr.bf16.mxu0 %v654_v5  ;;  %v657_v8 = vld [vmem:[%s766_s14 + $0x18] sm:$0xff]   ;;  %v662_v9 = vld [vmem:[%s254_s15] sm:$0xff]   ;;  %v659_v11 = vld [vmem:[%s766_s14 + $0x28] sm:$0xff]  }
  0x29   : > { %610 = vmatpush3.bf16.msra.mxu0 %v654_v5  ;;  %625 = vmatprep.mubr.bf16.mxu0 %v662_v9  ;;  %v658_v10 = vld [vmem:[%s766_s14 + $0x20] sm:$0xff]   ;;  %v660_v12 = vld [vmem:[%s766_s14 + $0x30] sm:$0xff]   ;;  %v661_v13 = vld [vmem:[%s766_s14 + $0x38] sm:$0xff]  }
  0x2a   : > { %611 = vmatprep.subr.bf16.mxu0 %v655_v6  ;;  %v663_v14 = vld [vmem:[%s254_s15 + $0x8] sm:$0xff]   ;;  %v296_v15 = vld [vmem:[#allocation2 + $0x10] sm:$0xff]  ;;  %v294_v16 = vld [vmem:[#allocation2] sm:$0xff] }
  0x2b   : > { %v297_v18 = vld [vmem:[#allocation2 + $0x18] sm:$0xff]  ;;  %v295_v21 = vld [vmem:[#allocation2 + $0x8] sm:$0xff]  ;;  %v594_v31 = vld [vmem:[%s816_s2] ss:$0 sm:$0xff] (!%p593_p10) }
  0x2c   : > { %v595_v2 = vld [vmem:[%s817_s3] ss:$0 sm:$0xff] (!%p593_p10) }
  0x2d   : > { %612 = vmatpush3.bf16.msra.mxu0 %v655_v6 }
  0x2e   : > { %613 = vmatprep.subr.bf16.mxu0 %v656_v7 }
  0x31   : > { %614 = vmatpush3.bf16.msra.mxu0 %v656_v7  ;;  %v596_v7 = vld [vmem:[%s818_s4] ss:$0 sm:$0xff] (!%p593_p10) }
  0x32   : > { %615 = vmatprep.subr.bf16.mxu0 %v657_v8 }
  0x35   : > { %616 = vmatpush3.bf16.msra.mxu0 %v657_v8 }
  0x36   : > { %617 = vmatprep.subr.bf16.mxu0 %v658_v10 }
  0x39   : > { %618 = vmatpush3.bf16.msra.mxu0 %v658_v10 }
  0x3a   : > { %619 = vmatprep.subr.bf16.mxu0 %v659_v11 }
  0x3d   : > { %620 = vmatpush3.bf16.msra.mxu0 %v659_v11 }
  0x3e   : > { %621 = vmatprep.subr.bf16.mxu0 %v660_v12 }
  0x41   : > { %622 = vmatpush3.bf16.msra.mxu0 %v660_v12 }
  0x42   : > { %623 = vmatprep.subr.bf16.mxu0 %v661_v13 }
  0x45   : > { %624 = vmatpush3.bf16.msra.mxu0 %v661_v13 }
  0x48   : > { %626 = vmatmul.mubr.bf16.vlgmr.msra.gmra.mrb[0].mxu0 %v663_v14 }
 0x11b   : > { %v627_v17 = vpop.f32.mrb[0].mxu0  ;;  %438 = sbr.rel (%p593_p10) target bundleno = 367 (0x16f), region = 89 }
 0x11c   : > { %v429_v19 = vadd.f32 %v627_v17, %v296_v15  ;;  %v412_v20 = vpop.f32.mrb[1].mxu0 }
 0x11d   : > { %v427_v22 = vadd.f32 %v412_v20, %v294_v16  ;;  %v628_v23 = vpop.f32.mrb[2].mxu0 }
 0x11e   : > { %433 = vst [vmem:[#allocation2 + $0x10] sm:$0xff] %v429_v19  ;;  %v430_v24 = vadd.f32 %v628_v23, %v297_v18  ;;  %v415_v25 = vpop.f32.mrb[3].mxu0 }
 0x11f   : > { %431 = vst [vmem:[#allocation2] sm:$0xff] %v427_v22  ;;  %v428_v26 = vadd.f32 %v415_v25, %v295_v21 }
 0x120   : > { %434 = vst [vmem:[#allocation2 + $0x18] sm:$0xff] %v430_v24 }
 0x121   : > { %432 = vst [vmem:[#allocation2 + $0x8] sm:$0xff] %v428_v26 }
 0x125   : > { %v441_v29 = vld [vmem:[#allocation2 + $0x10] sm:$0xff] }
 0x126   : > { %v439_v27 = vld [vmem:[#allocation2] sm:$0xff]  ;;  %v452_v34 = vadd.f32 %v594_v31, %v441_v29 }
 0x127   : > { %v442_v30 = vld [vmem:[#allocation2 + $0x18] sm:$0xff]  ;;  %v450_v32 = vadd.f32 %v594_v31, %v439_v27 }
 0x128   : > { %v440_v28 = vld [vmem:[#allocation2 + $0x8] sm:$0xff]  ;;  %v453_v35 = vadd.f32 %v594_v31, %v442_v30 }
 0x129   : > { %v451_v33 = vadd.f32 %v594_v31, %v440_v28 }
 0x12b   : > { %v454_v36 = vadd.f32 %v451_v33, %v450_v32 }
 0x12d   : > { %v455_v37 = vadd.f32 %v454_v36, %v452_v34 }
 0x12f   : > { %v456_v38 = vadd.f32 %v455_v37, %v453_v35 }
 0x131   : > { %v457_v39 = vrot.slane %v456_v38, 4 }
 0x133   : > { %v458_v40 = vadd.f32 %v457_v39, %v456_v38 }
 0x135   : > { %v459_v41 = vrot.slane %v458_v40, 2 }
 0x137   : > { %v460_v42 = vadd.f32 %v459_v41, %v458_v40 }
 0x139   : > { %v461_v43 = vrot.slane %v460_v42, 1 }
 0x13b   : > { %v462_v44 = vadd.f32 %v461_v43, %v460_v42 }
 0x13d   : > { %v464_v45 = vmul.f32 0.03125, %v462_v44 }
 0x13f   : > { %v465_v46 = vsub.f32 %v450_v32, %v464_v45  ;;  %v466_v47 = vsub.f32 %v451_v33, %v464_v45  ;;  %v467_v48 = vsub.f32 %v452_v34, %v464_v45  ;;  %v468_v49 = vsub.f32 %v453_v35, %v464_v45 }
 0x141   : > { %v469_v50 = vmul.f32 %v465_v46, %v465_v46  ;;  %v470_v51 = vmul.f32 %v466_v47, %v466_v47  ;;  %v471_v52 = vmul.f32 %v467_v48, %v467_v48  ;;  %v472_v53 = vmul.f32 %v468_v49, %v468_v49 }
 0x143   : > { %v473_v54 = vadd.f32 %v470_v51, %v469_v50 }
 0x145   : > { %v474_v55 = vadd.f32 %v473_v54, %v471_v52 }
 0x147   : > { %v475_v56 = vadd.f32 %v474_v55, %v472_v53 }
 0x149   : > { %v476_v57 = vrot.slane %v475_v56, 4 }
 0x14b   : > { %v477_v58 = vadd.f32 %v476_v57, %v475_v56 }
 0x14d   : > { %v478_v59 = vrot.slane %v477_v58, 2 }
 0x14f   : > { %v479_v60 = vadd.f32 %v478_v59, %v477_v58 }
 0x151   : > { %v480_v61 = vrot.slane %v479_v60, 1 }
 0x153   : > { %v481_v62 = vadd.f32 %v480_v61, %v479_v60 }
 0x155   : > { %v482_v63 = vmul.f32 0.03125, %v481_v62 }
 0x157   : > { %v483_v0 = vadd.f32 1e-05, %v482_v63 }
 0x159   : > { %664 = vrsqrt.f32 %v483_v0 }
 0x163   : > { %v665_v1 = vpop.eup %664 }
 0x164   : > { %v485_v3 = vmul.f32 %v665_v1, %v465_v46  ;;  %v486_v4 = vmul.f32 %v665_v1, %v466_v47  ;;  %v487_v5 = vmul.f32 %v665_v1, %v467_v48  ;;  %v488_v6 = vmul.f32 %v665_v1, %v468_v49 }
 0x166   : > { %v496_v8 = vmul.f32 %v595_v2, %v485_v3  ;;  %v497_v9 = vmul.f32 %v595_v2, %v486_v4  ;;  %v498_v10 = vmul.f32 %v595_v2, %v487_v5  ;;  %v499_v11 = vmul.f32 %v595_v2, %v488_v6 }
 0x168   : > { %v507_v12 = vadd.f32 %v596_v7, %v496_v8  ;;  %v508_v13 = vadd.f32 %v596_v7, %v497_v9  ;;  %v509_v14 = vadd.f32 %v596_v7, %v498_v10  ;;  %v510_v15 = vadd.f32 %v596_v7, %v499_v11 }
 0x16a   : > { %vm511_vm0 = vcmp.gt.f32.partialorder %v507_v12, 0.0  ;;  %v515_v16 = vmul.f32 0.2, %v507_v12  ;;  %vm512_vm1 = vcmp.gt.f32.partialorder %v508_v13, 0.0  ;;  %v516_v17 = vmul.f32 0.2, %v508_v13 }
 0x16b   : > { %vm513_vm2 = vcmp.gt.f32.partialorder %v509_v14, 0.0  ;;  %v517_v18 = vmul.f32 0.2, %v509_v14  ;;  %vm514_vm3 = vcmp.gt.f32.partialorder %v510_v15, 0.0  ;;  %v518_v19 = vmul.f32 0.2, %v510_v15 }
 0x16c   : > { %v519_v20 = vsel %vm511_vm0, %v507_v12, %v515_v16  ;;  %v520_v21 = vsel %vm512_vm1, %v508_v13, %v516_v17 }
 0x16d   : > { %523 = vst [vmem:[%s819_s5] sm:$0xff] %v519_v20  ;;  %524 = vst [vmem:[%s819_s5 + $0x8] sm:$0xff] %v520_v21  ;;  %v521_v22 = vsel %vm513_vm2, %v509_v14, %v517_v18  ;;  %v522_v23 = vsel %vm514_vm3, %v510_v15, %v518_v19 }
 0x16e   : > { %525 = vst [vmem:[%s819_s5 + $0x10] sm:$0xff] %v521_v22  ;;  %526 = vst [vmem:[%s819_s5 + $0x18] sm:$0xff] %v522_v23 }
 0x16f PF: > { %p12_p11 = scmp.ge.s32.totalorder %s740_s22, 4   ;;  %s820_s18 = smov %s684_s19 }
 0x170   : > { %s821_s19 = smov %s749_s25  ;;  %s822_s20 = smov %s740_s22 }
 0x171   :  { %14 = sbr.rel (!%p12_p11) target bundleno = 2 (0x2), region = 123 }

// kernel: d1_forward.9
= control target key start
LH: loop header
LB: loop body
LE: loop exit
PB: predicated region body
PF: predicated region fallthrough
CT: control target
= control target key end

     0   :  { %v1481_v22 = vmov 1983009808   ;;  %v48_v24 = vlaneseq  ;;  %vm1483_vm0 = vmmov 0   ;;  %vm1136_vm5 = vcmask 1041409   ;;  %s1844_s2 = inlined_call_operand.vmem [shape: bf16[1024,128], index: 2, kind: input, shape index: {}]   ;;  %s1845_s1 = inlined_call_operand.vmem [shape: f32[2,1024], index: 1, kind: input, shape index: {}]   ;;  %s1846_s4 = inlined_call_operand.vmem [shape: bf16[128,128], index: 4, kind: input, shape index: {}]   ;;  %s1847_s5 = inlined_call_operand.vmem [shape: bf16[128,128], index: 5, kind: input, shape index: {}]   ;;  %s1848_s0 = inlined_call_operand.vmem [shape: f32[32,128], index: 0, kind: input, shape index: {}]   ;;  %s1849_s3 = inlined_call_operand.vmem [shape: f32[1,128], index: 3, kind: input, shape index: {}]   ;;  %s1850_s6 = inlined_call_operand.vmem [shape: f32[1,128], index: 6, kind: input, shape index: {}]   ;;  %s1851_s7 = inlined_call_operand.vmem [shape: f32[1,128], index: 7, kind: input, shape index: {}]   ;;  %s1852_s8 = inlined_call_operand.vmem [shape: f32[1,128], index: 8, kind: input, shape index: {}]   ;;  %s1853_s9 = inlined_call_operand.vmem [shape: f32[16,128], index: 9, kind: input, shape index: {}]   ;;  %s1854_s10 = inlined_call_operand.<no memory space> [shape: f32[1], index: 10, kind: input, shape index: {}]   ;;  %s1855_s11 = inlined_call_operand.vmem [shape: f32[2,128], index: 11, kind: output, shape index: {}]  }
   0x1   :  { %v1393_v0 = vld [vmem:[%s1844_s2 + $0x40] sm:$0xff]   ;;  %v1397_v4 = vld [vmem:[%s1844_s2 + $0x48] sm:$0xff]   ;;  %v1401_v8 = vld [vmem:[%s1844_s2 + $0x50] sm:$0xff]   ;;  %v46_v23 = vunpack.c.l.s4 %v1481_v22  ;;  %vm1139_vm6 = vcmask 1041408  }
   0x2   :  { %v1394_v1 = vld [vmem:[%s1844_s2 + $0xc0] sm:$0xff]   ;;  %1242 = vmatprep.subr.bf16.mxu0 %v1393_v0  ;;  %v1398_v5 = vld [vmem:[%s1844_s2 + $0xc8] sm:$0xff]   ;;  %v1402_v9 = vld [vmem:[%s1844_s2 + $0xd0] sm:$0xff]   ;;  %v1623_v30 = vshrl.u32 %v48_v24, 7 }
   0x3   :  { %v1395_v2 = vld [vmem:[%s1844_s2] sm:$0xff]   ;;  %1264 = vmatprep.subr.bf16.mxu1 %v1394_v1  ;;  %v1399_v6 = vld [vmem:[%s1844_s2 + $0x8] sm:$0xff]   ;;  %v1403_v10 = vld [vmem:[%s1844_s2 + $0x10] sm:$0xff]   ;;  %v47_v29 = vunpack.c.0.s8 %v46_v23 }
   0x4   :  { %v1396_v3 = vld [vmem:[%s1844_s2 + $0x80] sm:$0xff]   ;;  %1243 = vmatpush3.bf16.msra.mxu0 %v1395_v2  ;;  %v1400_v7 = vld [vmem:[%s1844_s2 + $0x88] sm:$0xff]   ;;  %v1404_v11 = vld [vmem:[%s1844_s2 + $0x90] sm:$0xff]  }
   0x5   :  { %1265 = vmatpush3.bf16.msra.mxu1 %v1396_v3  ;;  %1244 = vmatprep.subr.bf16.mxu0 %v1397_v4  ;;  %v1405_v12 = vld [vmem:[%s1844_s2 + $0x58] sm:$0xff]   ;;  %v1409_v16 = vld [vmem:[%s1844_s2 + $0x60] sm:$0xff]   ;;  %v1413_v20 = vld [vmem:[%s1844_s2 + $0x68] sm:$0xff]   ;;  %v50_v35 = vsub.s32 %v47_v29, %v1623_v30 }
   0x6   :  { %1266 = vmatprep.subr.bf16.mxu1 %v1398_v5  ;;  %v1406_v13 = vld [vmem:[%s1844_s2 + $0xd8] sm:$0xff]   ;;  %v1410_v17 = vld [vmem:[%s1844_s2 + $0xe0] sm:$0xff]   ;;  %v1414_v21 = vld [vmem:[%s1844_s2 + $0xe8] sm:$0xff]  }
   0x7   :  { %v1407_v14 = vld [vmem:[%s1844_s2 + $0x18] sm:$0xff]   ;;  %v1411_v18 = vld [vmem:[%s1844_s2 + $0x20] sm:$0xff]   ;;  %v1415_v25 = vld [vmem:[%s1844_s2 + $0x28] sm:$0xff]  }
   0x8   :  { %1245 = vmatpush3.bf16.msra.mxu0 %v1399_v6  ;;  %v1408_v15 = vld [vmem:[%s1844_s2 + $0x98] sm:$0xff]   ;;  %v1412_v19 = vld [vmem:[%s1844_s2 + $0xa0] sm:$0xff]   ;;  %v1416_v26 = vld [vmem:[%s1844_s2 + $0xa8] sm:$0xff]  }
   0x9   :  { %1267 = vmatpush3.bf16.msra.mxu1 %v1400_v7  ;;  %1246 = vmatprep.subr.bf16.mxu0 %v1401_v8  ;;  %v1417_v27 = vld [vmem:[%s1844_s2 + $0x70] sm:$0xff]   ;;  %v1421_v33 = vld [vmem:[%s1844_s2 + $0x78] sm:$0xff]   ;;  %v40_v38 = vld [vmem:[%s1845_s1] sm:$0xff] }
   0xa   :  { %1268 = vmatprep.subr.bf16.mxu1 %v1402_v9  ;;  %v1418_v28 = vld [vmem:[%s1844_s2 + $0xf0] sm:$0xff]   ;;  %v1422_v34 = vld [vmem:[%s1844_s2 + $0xf8] sm:$0xff]   ;;  %v41_v39 = vld [vmem:[%s1845_s1 + $0x8] sm:$0xff]  ;;  %v51_v40 = vrot.slane %v40_v38, %v50_v35  ;;  %v44_v42 = vcombine.high %v40_v38, %v40_v38 }
   0xb   :  { %v1419_v31 = vld [vmem:[%s1844_s2 + $0x30] sm:$0xff]   ;;  %v1423_v36 = vld [vmem:[%s1844_s2 + $0x38] sm:$0xff]   ;;  %v61_v41 = vcombine.high %v41_v39, %v41_v39  ;;  %v1427_v43 = vld [vmem:[%s1844_s2 + $0x140] sm:$0xff]   ;;  %v1653_v44 = vrot.slane %v41_v39, %v50_v35 }
   0xc   :  { %1247 = vmatpush3.bf16.msra.mxu0 %v1403_v10  ;;  %v1420_v32 = vld [vmem:[%s1844_s2 + $0xb0] sm:$0xff]   ;;  %v1424_v37 = vld [vmem:[%s1844_s2 + $0xb8] sm:$0xff]   ;;  %v1428_v45 = vld [vmem:[%s1844_s2 + $0x1c0] sm:$0xff]   ;;  %v59_v46 = vcombine.high %v51_v40, %v51_v40  ;;  %v58_v47 = vrot.slane %v44_v42, %v50_v35  ;;  %v86_v49 = vpack.c.bf16 %v51_v40, %v51_v40 }
   0xd   :  { %1269 = vmatpush3.bf16.msra.mxu1 %v1404_v11  ;;  %1248 = vmatprep.subr.bf16.mxu0 %v1405_v12  ;;  %v76_v48 = vcombine.high %v1653_v44, %v1653_v44  ;;  %v1660_v50 = vrot.slane %v61_v41, %v50_v35  ;;  %v1429_v53 = vld [vmem:[%s1844_s2 + $0x100] sm:$0xff]   ;;  %v1431_v55 = vld [vmem:[%s1844_s2 + $0x148] sm:$0xff]   ;;  %v1435_v63 = vld [vmem:[%s1844_s2 + $0x150] sm:$0xff]   ;;  %v90_v24 = vpack.c.bf16 %v1653_v44, %v1653_v44 }
   0xe   :  { %1270 = vmatprep.subr.bf16.mxu1 %v1406_v13  ;;  %v87_v51 = vpack.c.bf16 %v59_v46, %v59_v46  ;;  %v60_v52 = vcombine.high %v58_v47, %v58_v47  ;;  %v88_v54 = vpack.c.bf16 %v58_v47, %v58_v47  ;;  %v1430_v58 = vld [vmem:[%s1844_s2 + $0x180] sm:$0xff]   ;;  %v1432_v60 = vld [vmem:[%s1844_s2 + $0x1c8] sm:$0xff]   ;;  %v1436_v1 = vld [vmem:[%s1844_s2 + $0x1d0] sm:$0xff]  }
   0xf   :  { %v77_v56 = vcombine.high %v1660_v50, %v1660_v50  ;;  %v91_v59 = vpack.c.bf16 %v76_v48, %v76_v48  ;;  %v1433_v62 = vld [vmem:[%s1844_s2 + $0x108] sm:$0xff]   ;;  %v1437_v2 = vld [vmem:[%s1844_s2 + $0x110] sm:$0xff]   ;;  %v1439_v3 = vld [vmem:[%s1844_s2 + $0x158] sm:$0xff]  }
  0x10   :  { %1249 = vmatpush3.bf16.msra.mxu0 %v1407_v14  ;;  %645 = vmatprep.mubr.bf16.mxu0 %v87_v51  ;;  %v89_v57 = vpack.c.bf16 %v60_v52, %v60_v52  ;;  %v1434_v0 = vld [vmem:[%s1844_s2 + $0x188] sm:$0xff]   ;;  %v1438_v4 = vld [vmem:[%s1844_s2 + $0x190] sm:$0xff]   ;;  %v1440_v5 = vld [vmem:[%s1844_s2 + $0x1d8] sm:$0xff]  }
  0x11   :  { %1271 = vmatpush3.bf16.msra.mxu1 %v1408_v15  ;;  %1250 = vmatprep.subr.bf16.mxu0 %v1409_v16  ;;  %v93_v61 = vpack.c.bf16 %v77_v56, %v77_v56  ;;  %v1441_v6 = vld [vmem:[%s1844_s2 + $0x118] sm:$0xff]   ;;  %v1443_v7 = vld [vmem:[%s1844_s2 + $0x160] sm:$0xff]   ;;  %v1447_v11 = vld [vmem:[%s1844_s2 + $0x168] sm:$0xff]  }
  0x12   :  { %1272 = vmatprep.subr.bf16.mxu1 %v1410_v17  ;;  %685 = vmatprep.mubr.bf16.mxu1 %v89_v57  ;;  %v1442_v8 = vld [vmem:[%s1844_s2 + $0x198] sm:$0xff]   ;;  %v1444_v9 = vld [vmem:[%s1844_s2 + $0x1e0] sm:$0xff]   ;;  %v1448_v13 = vld [vmem:[%s1844_s2 + $0x1e8] sm:$0xff]  }
  0x13   :  { %v1445_v10 = vld [vmem:[%s1844_s2 + $0x120] sm:$0xff]   ;;  %v1449_v14 = vld [vmem:[%s1844_s2 + $0x128] sm:$0xff]   ;;  %v1451_v15 = vld [vmem:[%s1844_s2 + $0x170] sm:$0xff]  }
  0x14   :  { %1251 = vmatpush3.bf16.msra.mxu0 %v1411_v18  ;;  %v1446_v12 = vld [vmem:[%s1844_s2 + $0x1a0] sm:$0xff]   ;;  %v1450_v16 = vld [vmem:[%s1844_s2 + $0x1a8] sm:$0xff]   ;;  %v1452_v17 = vld [vmem:[%s1844_s2 + $0x1f0] sm:$0xff]  }
  0x15   :  { %1273 = vmatpush3.bf16.msra.mxu1 %v1412_v19  ;;  %1252 = vmatprep.subr.bf16.mxu0 %v1413_v20  ;;  %v1453_v18 = vld [vmem:[%s1844_s2 + $0x130] sm:$0xff]   ;;  %v1455_v19 = vld [vmem:[%s1844_s2 + $0x178] sm:$0xff]   ;;  %v1461_v29 = vld [vmem:[%s1846_s4 + $0x8] sm:$0xff]  }
  0x16   :  { %1274 = vmatprep.subr.bf16.mxu1 %v1414_v21  ;;  %v1454_v20 = vld [vmem:[%s1844_s2 + $0x1b0] sm:$0xff]   ;;  %v1456_v21 = vld [vmem:[%s1844_s2 + $0x1f8] sm:$0xff]   ;;  %v1469_v38 = vld [vmem:[%s1846_s4 + $0x28] sm:$0xff]  }
  0x17   :  { %v1457_v22 = vld [vmem:[%s1844_s2 + $0x138] sm:$0xff]   ;;  %v1470_v39 = vld [vmem:[%s1847_s5 + $0x28] sm:$0xff]   ;;  %v1471_v40 = vld [vmem:[%s1846_s4 + $0x30] sm:$0xff]  }
  0x18   :  { %1253 = vmatpush3.bf16.msra.mxu0 %v1415_v25  ;;  %v1458_v23 = vld [vmem:[%s1844_s2 + $0x1b8] sm:$0xff]   ;;  %v92_v25 = vpack.c.bf16 %v1660_v50, %v1660_v50  ;;  %v1472_v41 = vld [vmem:[%s1847_s5 + $0x30] sm:$0xff]   ;;  %v773_v44 = vld [vmem:[%s1848_s0] sm:$0xff] }
  0x19   :  { %1275 = vmatpush3.bf16.msra.mxu1 %v1416_v26  ;;  %1254 = vmatprep.subr.bf16.mxu0 %v1417_v27  ;;  %v1459_v26 = vld [vmem:[%s1846_s4] sm:$0xff]   ;;  %v1482_v27 = vmov 0.0   ;;  %v1466_v35 = vld [vmem:[%s1847_s5 + $0x18] sm:$0xff]   ;;  %v775_v46 = vld [vmem:[%s1848_s0 + $0x10] sm:$0xff] }
  0x1a   :  { %1276 = vmatprep.subr.bf16.mxu1 %v1418_v28  ;;  %v1460_v28 = vld [vmem:[%s1847_s5] sm:$0xff]   ;;  %v1473_v42 = vld [vmem:[%s1846_s4 + $0x38] sm:$0xff]  }
  0x1b   :  { %v776_v48 = vld [vmem:[%s1848_s0 + $0x18] sm:$0xff]  ;;  %v1157_v51 = vld [vmem:[%s1849_s3] ss:$0 sm:$0xff] }
  0x1c   :  { %1255 = vmatpush3.bf16.msra.mxu0 %v1419_v31  ;;  %v1462_v31 = vld [vmem:[%s1847_s5 + $0x8] sm:$0xff]  }
  0x1d   :  { %1277 = vmatpush3.bf16.msra.mxu1 %v1420_v32  ;;  %1256 = vmatprep.subr.bf16.mxu0 %v1421_v33  ;;  %v1463_v32 = vld [vmem:[%s1846_s4 + $0x10] sm:$0xff]  }
  0x1e   :  { %1278 = vmatprep.subr.bf16.mxu1 %v1422_v34  ;;  %v1464_v33 = vld [vmem:[%s1847_s5 + $0x10] sm:$0xff]   ;;  %v1465_v34 = vld [vmem:[%s1846_s4 + $0x18] sm:$0xff]  }
  0x20   :  { %1257 = vmatpush3.bf16.msra.mxu0 %v1423_v36  ;;  %v1467_v36 = vld [vmem:[%s1846_s4 + $0x20] sm:$0xff]  }
  0x21   :  { %1279 = vmatpush3.bf16.msra.mxu1 %v1424_v37  ;;  %1286 = vmatprep.subr.bf16.mxu0 %v1427_v43  ;;  %v1468_v37 = vld [vmem:[%s1847_s5 + $0x20] sm:$0xff]   ;;  %v1474_v43 = vld [vmem:[%s1847_s5 + $0x38] sm:$0xff]  }
  0x22   :  { %1308 = vmatprep.subr.bf16.mxu1 %v1428_v45  ;;  %v774_v45 = vld [vmem:[%s1848_s0 + $0x8] sm:$0xff] }
  0x23   :  { %646 = vmatmul.mubr.bf16.vlgmr.msra.gmra.mrb[0].mxu0 %v86_v49  ;;  %v777_v47 = vpack.c.bf16 %v774_v45, %v773_v44  ;;  %v778_v49 = vpack.c.bf16 %v776_v48, %v775_v46 }
  0x24   :  { %1287 = vmatpush3.bf16.msra.mxu0 %v1429_v53  ;;  %686 = vmatmul.mubr.bf16.vlgmr.msra.gmra.mrb[0].mxu1 %v88_v54 }
  0x25   :  { %1288 = vmatprep.subr.bf16.mxu0 %v1431_v55  ;;  %1309 = vmatpush3.bf16.msra.mxu1 %v1430_v58 }
  0x26   :  { %725 = vmatprep.mubr.bf16.mxu0 %v91_v59  ;;  %1310 = vmatprep.subr.bf16.mxu1 %v1432_v60 }
  0x27   :  { %765 = vmatprep.mubr.bf16.mxu1 %v93_v61 }
  0x28   :  { %1289 = vmatpush3.bf16.msra.mxu0 %v1433_v62 }
  0x29   :  { %1290 = vmatprep.subr.bf16.mxu0 %v1435_v63  ;;  %1311 = vmatpush3.bf16.msra.mxu1 %v1434_v0 }
  0x2a   :  { %1312 = vmatprep.subr.bf16.mxu1 %v1436_v1 }
  0x2c   :  { %1291 = vmatpush3.bf16.msra.mxu0 %v1437_v2 }
  0x2d   :  { %1292 = vmatprep.subr.bf16.mxu0 %v1439_v3  ;;  %1313 = vmatpush3.bf16.msra.mxu1 %v1438_v4 }
  0x2e   :  { %1314 = vmatprep.subr.bf16.mxu1 %v1440_v5 }
  0x30   :  { %1293 = vmatpush3.bf16.msra.mxu0 %v1441_v6 }
  0x31   :  { %1294 = vmatprep.subr.bf16.mxu0 %v1443_v7  ;;  %1315 = vmatpush3.bf16.msra.mxu1 %v1442_v8 }
  0x32   :  { %1316 = vmatprep.subr.bf16.mxu1 %v1444_v9 }
  0x34   :  { %1295 = vmatpush3.bf16.msra.mxu0 %v1445_v10 }
  0x35   :  { %1296 = vmatprep.subr.bf16.mxu0 %v1447_v11  ;;  %1317 = vmatpush3.bf16.msra.mxu1 %v1446_v12 }
  0x36   :  { %1318 = vmatprep.subr.bf16.mxu1 %v1448_v13 }
  0x38   :  { %1297 = vmatpush3.bf16.msra.mxu0 %v1449_v14 }
  0x39   :  { %1298 = vmatprep.subr.bf16.mxu0 %v1451_v15  ;;  %1319 = vmatpush3.bf16.msra.mxu1 %v1450_v16  ;;  %v1484_v16 = vmov 1966171168  }
  0x3a   :  { %1320 = vmatprep.subr.bf16.mxu1 %v1452_v17  ;;  %v999_v17 = vunpack.c.l.s4 %v1484_v16 }
  0x3c   :  { %1299 = vmatpush3.bf16.msra.mxu0 %v1453_v18  ;;  %v1000_v18 = vunpack.c.0.s8 %v999_v17 }
  0x3d   :  { %1300 = vmatprep.subr.bf16.mxu0 %v1455_v19  ;;  %1321 = vmatpush3.bf16.msra.mxu1 %v1454_v20 }
  0x3e   :  { %1322 = vmatprep.subr.bf16.mxu1 %v1456_v21  ;;  %v1003_v19 = vsub.s32 %v1000_v18, %v1623_v30 }
  0x40   :  { %1301 = vmatpush3.bf16.msra.mxu0 %v1457_v22  ;;  %v1022_v22 = vsub.s32 0, %v1623_v30 }
  0x41   :  { %1323 = vmatpush3.bf16.msra.mxu1 %v1458_v23  ;;  %1349 = vmatprep.subr.bf16.mxu0 %v1459_v26 }
  0x42   :  { %1369 = vmatprep.subr.bf16.mxu1 %v1482_v27 }
  0x43   :  { %726 = vmatmul.mubr.bf16.vlgmr.msra.gmra.mrb[4].mxu0 %v90_v24 }
  0x44   :  { %766 = vmatmul.mubr.bf16.vlgmr.msra.gmra.mrb[4].mxu1 %v92_v25  ;;  %1350 = vmatpush3.bf16.msra.mxu0 %v1459_v26 }
  0x45   :  { %1370 = vmatpush3.bf16.msra.mxu1 %v1460_v28  ;;  %1351 = vmatprep.subr.bf16.mxu0 %v1461_v29 }
  0x46   :  { %1371 = vmatprep.subr.bf16.mxu1 %v1482_v27  ;;  %1385 = vmatprep.mubr.msk.bf16.mxu1 %vm1483_vm0, %v1482_v27 }
  0x47   :  { %1365 = vmatprep.mubr.bf16.mxu0 %v777_v47 }
  0x48   :  { %1352 = vmatpush3.bf16.msra.mxu0 %v1461_v29 }
  0x49   :  { %1372 = vmatpush3.bf16.msra.mxu1 %v1462_v31  ;;  %1353 = vmatprep.subr.bf16.mxu0 %v1463_v32  ;;  %v1238_v31 = vld [vmem:[%s1850_s6] ss:$0 sm:$0xff] }
  0x4a   :  { %1373 = vmatprep.subr.bf16.mxu1 %v1482_v27 }
  0x4c   :  { %1354 = vmatpush3.bf16.msra.mxu0 %v1463_v32 }
  0x4d   :  { %1374 = vmatpush3.bf16.msra.mxu1 %v1464_v33  ;;  %1355 = vmatprep.subr.bf16.mxu0 %v1465_v34 }
  0x4e   :  { %1375 = vmatprep.subr.bf16.mxu1 %v1482_v27 }
  0x50   :  { %1356 = vmatpush3.bf16.msra.mxu0 %v1465_v34 }
  0x51   :  { %1376 = vmatpush3.bf16.msra.mxu1 %v1466_v35  ;;  %1357 = vmatprep.subr.bf16.mxu0 %v1467_v36 }
  0x52   :  { %1377 = vmatprep.subr.bf16.mxu1 %v1482_v27 }
  0x54   :  { %1358 = vmatpush3.bf16.msra.mxu0 %v1467_v36 }
  0x55   :  { %1378 = vmatpush3.bf16.msra.mxu1 %v1468_v37  ;;  %1359 = vmatprep.subr.bf16.mxu0 %v1469_v38 }
  0x56   :  { %1379 = vmatprep.subr.bf16.mxu1 %v1482_v27 }
  0x58   :  { %1360 = vmatpush3.bf16.msra.mxu0 %v1469_v38 }
  0x59   :  { %1380 = vmatpush3.bf16.msra.mxu1 %v1470_v39  ;;  %1361 = vmatprep.subr.bf16.mxu0 %v1471_v40 }
  0x5a   :  { %1381 = vmatprep.subr.bf16.mxu1 %v1482_v27 }
  0x5c   :  { %1362 = vmatpush3.bf16.msra.mxu0 %v1471_v40 }
  0x5d   :  { %1382 = vmatpush3.bf16.msra.mxu1 %v1472_v41  ;;  %1363 = vmatprep.subr.bf16.mxu0 %v1473_v42 }
  0x5e   :  { %1383 = vmatprep.subr.bf16.mxu1 %v1482_v27 }
  0x60   :  { %1364 = vmatpush3.bf16.msra.mxu0 %v1473_v42 }
  0x61   :  { %1384 = vmatpush3.bf16.msra.mxu1 %v1474_v43 }
  0x63   :  { %1366 = vmatmul.mubr.bf16.vlgmr.msra.gmra.mrb[8].mxu0 %v778_v49 }
  0xf6   :  { %v1258_v50 = vpop.f32.mrb[0].mxu0 }
  0xf7   :  { %v1259_v52 = vpop.f32.mrb[1].mxu0  ;;  %v1280_v53 = vpop.f32.mrb[0].mxu1 }
  0xf8   :  { %v1260_v54 = vadd.f32 %v1259_v52, %v1258_v50  ;;  %v1261_v55 = vpop.f32.mrb[2].mxu0  ;;  %v1281_v56 = vpop.f32.mrb[1].mxu1 }
  0xf9   :  { %v1262_v57 = vpop.f32.mrb[3].mxu0  ;;  %v1282_v59 = vadd.f32 %v1281_v56, %v1280_v53  ;;  %v1283_v60 = vpop.f32.mrb[2].mxu1 }
  0xfa   :  { %v648_v58 = vadd.f32 %v1260_v54, %v1157_v51  ;;  %v1284_v61 = vpop.f32.mrb[3].mxu1 }
  0xfc   :  { %v688_v62 = vadd.f32 %v1282_v59, %v648_v58 }
 0x116   :  { %v1302_v63 = vpop.f32.mrb[4].mxu0 }
 0x117   :  { %v1303_v0 = vpop.f32.mrb[5].mxu0  ;;  %v1324_v1 = vpop.f32.mrb[4].mxu1 }
 0x118   :  { %v1304_v2 = vadd.f32 %v1303_v0, %v1302_v63  ;;  %v1305_v3 = vpop.f32.mrb[6].mxu0  ;;  %v1325_v4 = vpop.f32.mrb[5].mxu1 }
 0x119   :  { %v1306_v5 = vpop.f32.mrb[7].mxu0  ;;  %v1326_v7 = vadd.f32 %v1325_v4, %v1324_v1  ;;  %v1327_v8 = vpop.f32.mrb[6].mxu1 }
 0x11a   :  { %v728_v6 = vadd.f32 %v1304_v2, %v688_v62  ;;  %v1328_v9 = vpop.f32.mrb[7].mxu1 }
 0x11c   :  { %v768_v10 = vadd.f32 %v1326_v7, %v728_v6  ;;  %v1239_v6 = vld [vmem:[%s1851_s7] ss:$0 sm:$0xff] }
 0x11e   :  { %v892_v11 = vpack.c.bf16 %v768_v10, %v768_v10 }
 0x120   :  { %1386 = vmatmul.mubr.bf16.vlgmr.msra.gmra.mrb[8].mxu1 %v892_v11  ;;  %v1240_v11 = vld [vmem:[%s1852_s8] ss:$0 sm:$0xff] }
 0x136   :  { %v1367_v12 = vpop.f32.mrb[8].mxu0 }
 0x137   :  { %v877_v13 = vpop.f32.mrb[9].mxu0 }
 0x138   :  { %v1368_v14 = vpop.f32.mrb[10].mxu0 }
 0x139   :  { %v880_v15 = vpop.f32.mrb[11].mxu0 }
 0x1f3   :  { %v991_v20 = vpop.f32.mrb[8].mxu1 }
 0x1f4   :  { %v1004_v21 = vrot.slane %v991_v20, %v1003_v19  ;;  %v1387_v23 = vpop.f32.mrb[9].mxu1 }
 0x1f5   :  { %v994_v24 = vpop.f32.mrb[10].mxu1 }
 0x1f6   :  { %v1005_v25 = vcombine.high %v1004_v21, %v1004_v21  ;;  %v1012_v26 = vrot.slane %v1004_v21, %v1003_v19  ;;  %v1388_v27 = vpop.f32.mrb[11].mxu1  ;;  %v1115_v21 = vld [vmem:[%s1853_s9 + $0x8] sm:$0xff]  ;;  %v1114_v24 = vld [vmem:[%s1853_s9] sm:$0xff] }
 0x1f8   :  { %v1023_v28 = vrot.slane %v1012_v26, %v1022_v22  ;;  %v1019_v29 = vrot.slane %v1005_v25, %v1003_v19 }
 0x1fa   :  { %v1030_v32 = vadd.f32 %v1023_v28, %v877_v13  ;;  %v1027_v33 = vrot.slane %v1019_v29, %v1022_v22  ;;  %v1031_v34 = vadd.f32 %v1023_v28, %v880_v15 }
 0x1fc   :  { %v1041_v35 = vadd.f32 %v1238_v31, %v1030_v32  ;;  %v1032_v36 = vadd.f32 %v1367_v12, %v1027_v33  ;;  %v1033_v37 = vadd.f32 %v1368_v14, %v1027_v33  ;;  %v1042_v38 = vadd.f32 %v1238_v31, %v1031_v34 }
 0x1fe   :  { %v1043_v39 = vadd.f32 %v1238_v31, %v1032_v36  ;;  %v1045_v30 = vadd.f32 %v1042_v38, %v1041_v35  ;;  %v1044_v40 = vadd.f32 %v1238_v31, %v1033_v37 }
 0x200   :  { %v1046_v41 = vadd.f32 %v1045_v30, %v1043_v39 }
 0x202   :  { %v1047_v42 = vadd.f32 %v1046_v41, %v1044_v40 }
 0x204   :  { %v1048_v43 = vrot.slane %v1047_v42, 4 }
 0x206   :  { %v1049_v44 = vadd.f32 %v1048_v43, %v1047_v42 }
 0x208   :  { %v1050_v45 = vrot.slane %v1049_v44, 2 }
 0x20a   :  { %v1051_v46 = vadd.f32 %v1050_v45, %v1049_v44 }
 0x20c   :  { %v1052_v47 = vrot.slane %v1051_v46, 1 }
 0x20e   :  { %v1053_v48 = vadd.f32 %v1052_v47, %v1051_v46 }
 0x210   :  { %v1055_v49 = vmul.f32 0.03125, %v1053_v48 }
 0x212   :  { %v1056_v50 = vsub.f32 %v1041_v35, %v1055_v49  ;;  %v1057_v51 = vsub.f32 %v1042_v38, %v1055_v49  ;;  %v1058_v52 = vsub.f32 %v1043_v39, %v1055_v49  ;;  %v1059_v53 = vsub.f32 %v1044_v40, %v1055_v49 }
 0x214   :  { %v1060_v54 = vmul.f32 %v1056_v50, %v1056_v50  ;;  %v1061_v55 = vmul.f32 %v1057_v51, %v1057_v51  ;;  %v1062_v56 = vmul.f32 %v1058_v52, %v1058_v52  ;;  %v1063_v58 = vmul.f32 %v1059_v53, %v1059_v53 }
 0x216   :  { %v1064_v57 = vadd.f32 %v1061_v55, %v1060_v54 }
 0x218   :  { %v1065_v59 = vadd.f32 %v1064_v57, %v1062_v56 }
 0x21a   :  { %v1066_v60 = vadd.f32 %v1065_v59, %v1063_v58 }
 0x21c   :  { %v1067_v61 = vrot.slane %v1066_v60, 4 }
 0x21e   :  { %v1068_v62 = vadd.f32 %v1067_v61, %v1066_v60 }
 0x220   :  { %v1069_v63 = vrot.slane %v1068_v62, 2 }
 0x222   :  { %v1070_v0 = vadd.f32 %v1069_v63, %v1068_v62 }
 0x224   :  { %v1071_v1 = vrot.slane %v1070_v0, 1 }
 0x226   :  { %v1072_v2 = vadd.f32 %v1071_v1, %v1070_v0 }
 0x228   :  { %v1073_v3 = vmul.f32 0.03125, %v1072_v2 }
 0x22a   :  { %v1074_v4 = vadd.f32 1e-05, %v1073_v3 }
 0x22c   :  { %1475 = vrsqrt.f32 %v1074_v4 }
 0x236   :  { %v1476_v5 = vpop.eup %1475 }
 0x237   :  { %v1076_v7 = vmul.f32 %v1476_v5, %v1056_v50  ;;  %v1077_v8 = vmul.f32 %v1476_v5, %v1057_v51  ;;  %v1078_v9 = vmul.f32 %v1476_v5, %v1058_v52  ;;  %v1079_v10 = vmul.f32 %v1476_v5, %v1059_v53 }
 0x238   :  { %v1144_v50 = vstv %s1854_s10 }
 0x239   :  { %v1087_v12 = vmul.f32 %v1239_v6, %v1076_v7  ;;  %v1088_v13 = vmul.f32 %v1239_v6, %v1077_v8  ;;  %v1089_v14 = vmul.f32 %v1239_v6, %v1078_v9  ;;  %v1090_v15 = vmul.f32 %v1239_v6, %v1079_v10 }
 0x23b   :  { %v1098_v16 = vadd.f32 %v1240_v11, %v1087_v12  ;;  %v1099_v17 = vadd.f32 %v1240_v11, %v1088_v13  ;;  %v1100_v18 = vadd.f32 %v1240_v11, %v1089_v14  ;;  %v1101_v19 = vadd.f32 %v1240_v11, %v1090_v15 }
 0x23d   :  { %vm1103_vm1 = vcmp.gt.f32.partialorder %v1099_v17, 0.0  ;;  %v1107_v20 = vmul.f32 0.2, %v1099_v17  ;;  %vm1102_vm2 = vcmp.gt.f32.partialorder %v1098_v16, 0.0  ;;  %vm1104_vm3 = vcmp.gt.f32.partialorder %v1100_v18, 0.0 }
 0x23e   :  { %vm1105_vm4 = vcmp.gt.f32.partialorder %v1101_v19, 0.0  ;;  %v1106_v22 = vmul.f32 0.2, %v1098_v16  ;;  %v1108_v23 = vmul.f32 0.2, %v1100_v18 }
 0x23f   :  { %v1109_v25 = vmul.f32 0.2, %v1101_v19  ;;  %v1111_v26 = vsel %vm1103_vm1, %v1099_v17, %v1107_v20 }
 0x240   :  { %v1110_v27 = vsel %vm1102_vm2, %v1098_v16, %v1106_v22  ;;  %v1112_v28 = vsel %vm1104_vm3, %v1100_v18, %v1108_v23  ;;  %v1117_v29 = vmul.f32 %v1115_v21, %v1111_v26 }
 0x241   :  { %v1113_v31 = vsel %vm1105_vm4, %v1101_v19, %v1109_v25  ;;  %v1116_v32 = vmul.f32 %v1114_v24, %v1110_v27  ;;  %v1118_v33 = vmul.f32 %v1114_v24, %v1112_v28 }
 0x242   :  { %v1119_v34 = vmul.f32 %v1115_v21, %v1113_v31 }
 0x243   :  { %v1120_v35 = vadd.f32 %v1117_v29, %v1116_v32 }
 0x244   :  { %v1127_v36 = vadd.f32 %v1119_v34, %v1118_v33 }
 0x245   :  { %v1121_v37 = vrot.slane %v1120_v35, 4 }
 0x246   :  { %v1128_v38 = vrot.slane %v1127_v36, 4 }
 0x247   :  { %v1122_v39 = vadd.f32 %v1121_v37, %v1120_v35 }
 0x248   :  { %v1129_v30 = vadd.f32 %v1128_v38, %v1127_v36 }
 0x249   :  { %v1123_v40 = vrot.slane %v1122_v39, 2 }
 0x24a   :  { %v1130_v41 = vrot.slane %v1129_v30, 2 }
 0x24b   :  { %v1124_v42 = vadd.f32 %v1123_v40, %v1122_v39 }
 0x24c   :  { %v1131_v43 = vadd.f32 %v1130_v41, %v1129_v30 }
 0x24d   :  { %v1125_v44 = vrot.slane %v1124_v42, 1 }
 0x24e   :  { %v1132_v45 = vrot.slane %v1131_v43, 1 }
 0x24f   :  { %v1126_v46 = vadd.f32 %v1125_v44, %v1124_v42 }
 0x250   :  { %v1133_v47 = vadd.f32 %v1132_v45, %v1131_v43 }
 0x252   :  { %v1137_v48 = vsel %vm1136_vm5, %v1133_v47, %v1126_v46 }
 0x253   :  { %v1140_v49 = vsel %vm1139_vm6, %v1137_v48, 0.0 }
 0x254   :  { %1141 = vadd.xlane.f32.xlu0 %v1140_v49 }
 0x2e1   :  { %v1142_v51 = vpop.xlane.xlu0 %1141 }
 0x2e2   :  { %v1145_v52 = vadd.f32 %v1144_v50, %v1142_v51 }
 0x2e4   :  { %v1241_v53 = vmul.f32 -1.442695, %v1145_v52 }
 0x2e6   :  { %1477 = vpow2.f32 %v1241_v53 }
 0x2f0   :  { %v1478_v54 = vpop.eup %1477 }
 0x2f1   :  { %v1149_v55 = vadd.f32 1.0, %v1478_v54 }
 0x2f3   :  { %1479 = vrcp.f32 %v1149_v55 }
 0x2fd   :  { %v1480_v56 = vpop.eup %1479 }
 0x2fe   :  { %1152 = vst [vmem:[%s1855_s11] sm:$0x3] %v1480_v56 }

</bundles_post_ra>
